<compile_context>
chip_gen: v5e
topology: v5e:2x2
jax: 0.10.0
libtpu: 0.0.40
codegen_flags: <defaults>
</compile_context>

<pallas_src>
import functools

import jax
import jax.numpy as jnp
from jax.experimental import pallas as pl
from jax.experimental.pallas import tpu as pltpu


KP = 8  # im2col rows reserved per conv tap (C=3 data rows + 5 zero rows => full-tile stores)


# ----------------------------------------------------------------------------- #
# Single fused kernel: one batch block (B_blk images) per grid step.
# ----------------------------------------------------------------------------- #
def net_kernel(x_ref, mask_ref, w1m_ref, b1c_ref, w2m_ref, b2c_ref,
               w1s_ref, b1f_ref, w2p_ref, b2p_ref,
               o_ref, patch_ref, act_ref, *, B_blk, H, W, shifts):
    HW = H * W
    C = x_ref.shape[0]
    L = B_blk * HW                                   # batch-concatenated lane axis

    zero_rows = jnp.zeros((KP - C, L), jnp.float32)  # hoisted pad rows, shared by every tap

    def conv3x3_relu(h, wm_ref, bc_ref):
        # im2col on the lane-dense layout: 9 lane-rolled + masked copies of h, each written
        # as a FULL 8-row tile-aligned slab (unmasked vst, no memset, no uninitialized VMEM).
        for t, shift in enumerate(shifts):
            s = h if shift == 0 else pltpu.roll(h, shift, 1)
            patch_ref[t * KP:(t + 1) * KP, :] = jnp.concatenate(
                [s * mask_ref[t:t + 1, :], zero_rows], axis=0)
        out = jnp.dot(wm_ref[...], patch_ref[...],
                      preferred_element_type=jnp.float32) + bc_ref[...]
        return jnp.maximum(out, 0.0)

    x = x_ref[...]                                   # (C, L) lane-dense, batch-major lanes
    h1 = conv3x3_relu(x, w1m_ref, b1c_ref)           # conv1 + ReLU
    h2 = conv3x3_relu(h1, w2m_ref, b2c_ref)          # conv2 + ReLU

    # 2x2 max-pool: lane p holds max{p, p+1, p+W, p+W+1}; only even-row/even-col anchor
    # lanes are consumed by fc1 (non-anchor / cross-image-wrap lanes hit zero weight rows).
    pool = jnp.maximum(
        jnp.maximum(h2, pltpu.roll(h2, L - 1, 1)),
        jnp.maximum(pltpu.roll(h2, L - W, 1), pltpu.roll(h2, L - W - 1, 1)))

    # dropout1 / dropout2: identity in eval mode.

    # Batch -> M transition for the FC layers: act[b, c*HW + p] = pool[c, b*HW + p].
    for b in range(B_blk):
        for c in range(C):
            act_ref[b:b + 1, c * HW:(c + 1) * HW] = pool[c:c + 1, b * HW:(b + 1) * HW]

    # fc1 (+bias, ReLU): single (B_blk, C*HW) x (C*HW, 128) matmul, bf16 in / f32 accumulate.
    h = jnp.dot(act_ref[...].astype(jnp.bfloat16), w1s_ref[...],
                preferred_element_type=jnp.float32) + b1f_ref[...]
    h = jnp.maximum(h, 0.0)

    # fc2 + log_softmax in a lane-dense 128-wide slab; padded classes carry a -1e30 bias so
    # they vanish from max / sum-exp.  Full 128-lane store; wrapper slices the 10 real classes.
    logits = jnp.dot(h.astype(jnp.bfloat16), w2p_ref[...],
                     preferred_element_type=jnp.float32) + b2p_ref[...]
    m = jnp.max(logits, axis=-1, keepdims=True)
    lse = jnp.log(jnp.sum(jnp.exp(logits - m), axis=-1, keepdims=True)) + m
    o_ref[0] = logits - lse


# ----------------------------------------------------------------------------- #
# Wrapper: one-off parameter re-layouts (XLA glue on weights only) + pallas_call.
# ----------------------------------------------------------------------------- #
@jax.jit
def net_forward(x, params):
    w1c, b1c, w2c, b2c, w1f, b1f, w2f, b2f = params
    N, C, H, W = x.shape
    HW = H * W
    n_hidden = w1f.shape[1]          # 128
    n_cls = w2f.shape[1]             # 10

    # Batch blocking: keep >= 2 grid steps so both v7x TensorCores get work; each step
    # handles B_blk images concatenated on the lane axis.
    n_steps = 2 if (N % 2 == 0 and N >= 2) else 1
    B_blk = N // n_steps
    L = B_blk * HW
    assert L % 128 == 0

    def conv_w(w):                   # (Co, Ci, 3, 3) -> (Co, 9*KP), tap-major, zero-padded
        Co, Ci = w.shape[:2]
        wt = jnp.transpose(w, (0, 2, 3, 1)).reshape(Co, 9, Ci)     # [co, tap, ci]
        return jnp.pad(wt, ((0, 0), (0, 0), (0, KP - Ci))).reshape(Co, 9 * KP)

    w1m, w2m = conv_w(w1c), conv_w(w2c)
    b1m, b2m = b1c.reshape(-1, 1), b2c.reshape(-1, 1)

    # fc1 weight scattered onto the (C, HW) conv layout (pool-anchor lane 2*y2*W + 2*x2 gets
    # the fc1 row for pooled index c*(H/2*W/2)+y2*(W/2)+x2; every other lane -> 0), then
    # pre-flattened to (C*HW, 128) so fc1 is one contraction.  Stored bf16 (f32 accumulate).
    w1s = jnp.zeros((C, H // 2, 2, W // 2, 2, n_hidden), w1f.dtype)
    w1s = w1s.at[:, :, 0, :, 0, :].set(w1f.reshape(C, H // 2, W // 2, n_hidden))
    w1s_flat = w1s.reshape(C * HW, n_hidden).astype(jnp.bfloat16)
    b1v = b1f.reshape(1, -1)

    # fc2 padded to a full 128-lane slab; padded classes get a -1e30 bias.  Weight in bf16.
    w2p = jnp.pad(w2f, ((0, 0), (0, 128 - n_cls))).astype(jnp.bfloat16)
    b2p = jnp.pad(b2f, (0, 128 - n_cls), constant_values=-1e30).reshape(1, 128)

    # Hoisted conv boundary masks (mod HW => per-image; tiled over the batch block) and the
    # matching lane-roll shifts (mod L).  padding=1 == "tap reads 0 when outside the image".
    pidx = jnp.arange(L, dtype=jnp.int32) % HW
    col, row = pidx % W, pidx // W
    masks, shifts = [], []
    for dy in (-1, 0, 1):
        for dx in (-1, 0, 1):
            masks.append((col + dx >= 0) & (col + dx < W) &
                         (row + dy >= 0) & (row + dy < H))
            shifts.append((-(dy * W + dx)) % L)
    mask = jnp.stack(masks).astype(jnp.float32)       # (9, L)

    # Lane-dense batched input: image b of grid step i occupies lanes [b*HW, (b+1)*HW).
    x_l = jnp.transpose(x.reshape(N, C, HW), (1, 0, 2)).reshape(C, N * HW)

    out = pl.pallas_call(
        functools.partial(net_kernel, B_blk=B_blk, H=H, W=W, shifts=tuple(shifts)),
        out_shape=jax.ShapeDtypeStruct((n_steps, B_blk, 128), jnp.float32),
        grid=(n_steps,),
        in_specs=[
            pl.BlockSpec((C, L), lambda i: (0, i)),              # x (B_blk images / step)
            pl.BlockSpec((9, L), lambda i: (0, 0)),              # conv boundary masks
            pl.BlockSpec((C, 9 * KP), lambda i: (0, 0)),         # conv1 weight (im2col layout)
            pl.BlockSpec((C, 1), lambda i: (0, 0)),              # conv1 bias
            pl.BlockSpec((C, 9 * KP), lambda i: (0, 0)),         # conv2 weight
            pl.BlockSpec((C, 1), lambda i: (0, 0)),              # conv2 bias
            pl.BlockSpec((C * HW, n_hidden), lambda i: (0, 0)),  # fc1 weight (scattered, bf16)
            pl.BlockSpec((1, n_hidden), lambda i: (0, 0)),       # fc1 bias
            pl.BlockSpec((n_hidden, 128), lambda i: (0, 0)),     # fc2 weight (padded, bf16)
            pl.BlockSpec((1, 128), lambda i: (0, 0)),            # fc2 bias (padded)
        ],
        out_specs=pl.BlockSpec((1, B_blk, 128), lambda i: (i, 0, 0)),
        scratch_shapes=[pltpu.VMEM((9 * KP, L), jnp.float32),        # im2col patches
                        pltpu.VMEM((B_blk, C * HW), jnp.float32)],   # fc1 activations (M=batch)
        compiler_params=pltpu.CompilerParams(
            dimension_semantics=("parallel",)),                  # megacore on v7x
    )(x_l, mask, w1m, b1m, w2m, b2m, w1s_flat, b1v, w2p, b2p)
    return out.reshape(N, 128)[:, :n_cls]


# ----------------------------------------------------------------------------- #
# Pure-JAX reference of Net.forward (eval mode) for correctness checking.
# ----------------------------------------------------------------------------- #
@jax.jit
def ref_forward(x, params):
    w1c, b1c, w2c, b2c, w1f, b1f, w2f, b2f = params
    hp = jax.lax.Precision.HIGHEST

    def conv(h, w, b):
        out = jax.lax.conv_general_dilated(
            h, w, window_strides=(1, 1), padding=((1, 1), (1, 1)),
            dimension_numbers=("NCHW", "OIHW", "NCHW"), precision=hp)
        return jax.nn.relu(out + b[None, :, None, None])

    h = conv(x, w1c, b1c)
    h = conv(h, w2c, b2c)
    N, C, H, W = h.shape
    h = h.reshape(N, C, H // 2, 2, W // 2, 2).max(axis=(3, 5)).reshape(N, -1)
    h = jax.nn.relu(jnp.dot(h, w1f, precision=hp) + b1f)
    logits = jnp.dot(h, w2f, precision=hp) + b2f
    return jax.nn.log_softmax(logits, axis=-1)


def init_params(key, in_ch=3, H=16, W=16):
    """Deterministic synthetic parameters matching the module's layer shapes
    (fc1 in_features adapted to the small spatial size)."""
    ks = jax.random.split(key, 8)
    F = 3 * (H // 2) * (W // 2)

    def u(k, shape, fan_in):
        bound = 1.0 / jnp.sqrt(fan_in)
        return jax.random.uniform(k, shape, jnp.float32, -bound, bound)

    w1c = u(ks[0], (3, in_ch, 3, 3), in_ch * 9)
    b1c = u(ks[1], (3,), in_ch * 9)
    w2c = u(ks[2], (3, 3, 3, 3), 3 * 9)
    b2c = u(ks[3], (3,), 3 * 9)
    w1f = u(ks[4], (F, 128), F)       # stored already transposed (in, out)
    b1f = u(ks[5], (128,), F)
    w2f = u(ks[6], (128, 10), 128)
    b2f = u(ks[7], (10,), 128)
    return (w1c, b1c, w2c, b2c, w1f, b1f, w2f, b2f)


if __name__ == "__main__":
    key = jax.random.PRNGKey(0)
    kx, kp = jax.random.split(key)
    # Small shapes consistent with the module: batch=8 (4 images per grid step, 2 steps),
    # channels=3 (conv1 requires 3), 16x16 spatial.
    x = jax.random.normal(kx, (8, 3, 16, 16), dtype=jnp.float32)
    params = init_params(kp, in_ch=3, H=16, W=16)

    out = jax.block_until_ready(net_forward(x, params))
    ref = jax.block_until_ready(ref_forward(x, params))

    # Sanity: shape, finiteness, log_softmax rows exponentiate-sum to 1, matches reference.
    assert out.shape == (8, 10)
    assert bool(jnp.all(jnp.isfinite(out)))
    assert bool(jnp.allclose(jnp.sum(jnp.exp(out), axis=1), 1.0, atol=1e-4))
    assert bool(jnp.allclose(out, ref, atol=5e-2, rtol=5e-2))
    print("KERNEL_OK")
</pallas_src>

<mosaic_0001>
module attributes {stable_mosaic.version = 11 : i64} {
  func.func @net_kernel(%arg0: i32, %arg1: memref<3x1024xf32, #tpu.memory_space<vmem>>, %arg2: memref<9x1024xf32, #tpu.memory_space<vmem>>, %arg3: memref<3x72xf32, #tpu.memory_space<vmem>>, %arg4: memref<3x1xf32, #tpu.memory_space<vmem>>, %arg5: memref<3x72xf32, #tpu.memory_space<vmem>>, %arg6: memref<3x1xf32, #tpu.memory_space<vmem>>, %arg7: memref<768x128xbf16, #tpu.memory_space<vmem>>, %arg8: memref<1x128xf32, #tpu.memory_space<vmem>>, %arg9: memref<128x128xbf16, #tpu.memory_space<vmem>>, %arg10: memref<1x128xf32, #tpu.memory_space<vmem>>, %arg11: memref<1x4x128xf32, #tpu.memory_space<vmem>>, %arg12: memref<72x1024xf32, #tpu.memory_space<vmem>>, %arg13: memref<4x768xf32, #tpu.memory_space<vmem>>) attributes {dimension_semantics = [#tpu.dimension_semantics<parallel>], iteration_bounds = array<i64: 2>, scalar_prefetch = 0 : i64, scratch_operands = 2 : i64, tpu.core_type = #tpu.core_type<tc>, window_params = [{transform_indices = @transform_0, window_bounds = array<i64: 3, 1024>}, {pipeline_mode = #tpu.pipeline_mode<synchronous>, transform_indices = @transform_1, window_bounds = array<i64: 9, 1024>}, {pipeline_mode = #tpu.pipeline_mode<synchronous>, transform_indices = @transform_2, window_bounds = array<i64: 3, 72>}, {pipeline_mode = #tpu.pipeline_mode<synchronous>, transform_indices = @transform_3, window_bounds = array<i64: 3, 1>}, {pipeline_mode = #tpu.pipeline_mode<synchronous>, transform_indices = @transform_4, window_bounds = array<i64: 3, 72>}, {pipeline_mode = #tpu.pipeline_mode<synchronous>, transform_indices = @transform_5, window_bounds = array<i64: 3, 1>}, {pipeline_mode = #tpu.pipeline_mode<synchronous>, transform_indices = @transform_6, window_bounds = array<i64: 768, 128>}, {pipeline_mode = #tpu.pipeline_mode<synchronous>, transform_indices = @transform_7, window_bounds = array<i64: 1, 128>}, {pipeline_mode = #tpu.pipeline_mode<synchronous>, transform_indices = @transform_8, window_bounds = array<i64: 128, 128>}, {pipeline_mode = #tpu.pipeline_mode<synchronous>, transform_indices = @transform_9, window_bounds = array<i64: 1, 128>}, {transform_indices = @transform_10, window_bounds = array<i64: 1, 4, 128>}]} {
    %cst = arith.constant 0.000000e+00 : f32
    %0 = vector.broadcast %cst : f32 to vector<5x1024xf32>
    %c0 = arith.constant 0 : index
    %c0_0 = arith.constant 0 : index
    %1 = vector.load %arg1[%c0, %c0_0] : memref<3x1024xf32, #tpu.memory_space<vmem>>, vector<3x1024xf32>
    %c17_i32 = arith.constant 17 : i32
    %2 = tpu.dynamic_rotate %1 by %c17_i32 dim 1 : vector<3x1024xf32>, i32 -> vector<3x1024xf32>
    %c0_1 = arith.constant 0 : index
    %c0_2 = arith.constant 0 : index
    %3 = vector.load %arg2[%c0_1, %c0_2] : memref<9x1024xf32, #tpu.memory_space<vmem>>, vector<1x1024xf32>
    %4 = vector.broadcast %3 : vector<1x1024xf32> to vector<3x1024xf32>
    %5 = arith.mulf %2, %4 : vector<3x1024xf32>
    %6 = tpu.concatenate %5, %0 in 0 : vector<3x1024xf32>, vector<5x1024xf32> -> vector<8x1024xf32>
    %c0_3 = arith.constant 0 : index
    %c0_4 = arith.constant 0 : index
    %7 = vector.load %arg12[%c0_3, %c0_4] : memref<72x1024xf32, #tpu.memory_space<vmem>>, vector<8x1024xf32>
    tpu.vector_store %arg12[%c0_3, %c0_4], %6 {strides = array<i32>} : memref<72x1024xf32, #tpu.memory_space<vmem>>, vector<8x1024xf32>,
    %c16_i32 = arith.constant 16 : i32
    %8 = tpu.dynamic_rotate %1 by %c16_i32 dim 1 : vector<3x1024xf32>, i32 -> vector<3x1024xf32>
    %c1 = arith.constant 1 : index
    %c0_5 = arith.constant 0 : index
    %9 = vector.load %arg2[%c1, %c0_5] : memref<9x1024xf32, #tpu.memory_space<vmem>>, vector<1x1024xf32>
    %10 = vector.broadcast %9 : vector<1x1024xf32> to vector<3x1024xf32>
    %11 = arith.mulf %8, %10 : vector<3x1024xf32>
    %12 = tpu.concatenate %11, %0 in 0 : vector<3x1024xf32>, vector<5x1024xf32> -> vector<8x1024xf32>
    %c8 = arith.constant 8 : index
    %c0_6 = arith.constant 0 : index
    %13 = vector.load %arg12[%c8, %c0_6] : memref<72x1024xf32, #tpu.memory_space<vmem>>, vector<8x1024xf32>
    tpu.vector_store %arg12[%c8, %c0_6], %12 {strides = array<i32>} : memref<72x1024xf32, #tpu.memory_space<vmem>>, vector<8x1024xf32>,
    %c15_i32 = arith.constant 15 : i32
    %14 = tpu.dynamic_rotate %1 by %c15_i32 dim 1 : vector<3x1024xf32>, i32 -> vector<3x1024xf32>
    %c2 = arith.constant 2 : index
    %c0_7 = arith.constant 0 : index
    %15 = vector.load %arg2[%c2, %c0_7] : memref<9x1024xf32, #tpu.memory_space<vmem>>, vector<1x1024xf32>
    %16 = vector.broadcast %15 : vector<1x1024xf32> to vector<3x1024xf32>
    %17 = arith.mulf %14, %16 : vector<3x1024xf32>
    %18 = tpu.concatenate %17, %0 in 0 : vector<3x1024xf32>, vector<5x1024xf32> -> vector<8x1024xf32>
    %c16 = arith.constant 16 : index
    %c0_8 = arith.constant 0 : index
    %19 = vector.load %arg12[%c16, %c0_8] : memref<72x1024xf32, #tpu.memory_space<vmem>>, vector<8x1024xf32>
    tpu.vector_store %arg12[%c16, %c0_8], %18 {strides = array<i32>} : memref<72x1024xf32, #tpu.memory_space<vmem>>, vector<8x1024xf32>,
    %c1_i32 = arith.constant 1 : i32
    %20 = tpu.dynamic_rotate %1 by %c1_i32 dim 1 : vector<3x1024xf32>, i32 -> vector<3x1024xf32>
    %c3 = arith.constant 3 : index
    %c0_9 = arith.constant 0 : index
    %21 = vector.load %arg2[%c3, %c0_9] : memref<9x1024xf32, #tpu.memory_space<vmem>>, vector<1x1024xf32>
    %22 = vector.broadcast %21 : vector<1x1024xf32> to vector<3x1024xf32>
    %23 = arith.mulf %20, %22 : vector<3x1024xf32>
    %24 = tpu.concatenate %23, %0 in 0 : vector<3x1024xf32>, vector<5x1024xf32> -> vector<8x1024xf32>
    %c24 = arith.constant 24 : index
    %c0_10 = arith.constant 0 : index
    %25 = vector.load %arg12[%c24, %c0_10] : memref<72x1024xf32, #tpu.memory_space<vmem>>, vector<8x1024xf32>
    tpu.vector_store %arg12[%c24, %c0_10], %24 {strides = array<i32>} : memref<72x1024xf32, #tpu.memory_space<vmem>>, vector<8x1024xf32>,
    %c4 = arith.constant 4 : index
    %c0_11 = arith.constant 0 : index
    %26 = vector.load %arg2[%c4, %c0_11] : memref<9x1024xf32, #tpu.memory_space<vmem>>, vector<1x1024xf32>
    %27 = vector.broadcast %26 : vector<1x1024xf32> to vector<3x1024xf32>
    %28 = arith.mulf %1, %27 : vector<3x1024xf32>
    %29 = tpu.concatenate %28, %0 in 0 : vector<3x1024xf32>, vector<5x1024xf32> -> vector<8x1024xf32>
    %c32 = arith.constant 32 : index
    %c0_12 = arith.constant 0 : index
    %30 = vector.load %arg12[%c32, %c0_12] : memref<72x1024xf32, #tpu.memory_space<vmem>>, vector<8x1024xf32>
    tpu.vector_store %arg12[%c32, %c0_12], %29 {strides = array<i32>} : memref<72x1024xf32, #tpu.memory_space<vmem>>, vector<8x1024xf32>,
    %c1023_i32 = arith.constant 1023 : i32
    %31 = tpu.dynamic_rotate %1 by %c1023_i32 dim 1 : vector<3x1024xf32>, i32 -> vector<3x1024xf32>
    %c5 = arith.constant 5 : index
    %c0_13 = arith.constant 0 : index
    %32 = vector.load %arg2[%c5, %c0_13] : memref<9x1024xf32, #tpu.memory_space<vmem>>, vector<1x1024xf32>
    %33 = vector.broadcast %32 : vector<1x1024xf32> to vector<3x1024xf32>
    %34 = arith.mulf %31, %33 : vector<3x1024xf32>
    %35 = tpu.concatenate %34, %0 in 0 : vector<3x1024xf32>, vector<5x1024xf32> -> vector<8x1024xf32>
    %c40 = arith.constant 40 : index
    %c0_14 = arith.constant 0 : index
    %36 = vector.load %arg12[%c40, %c0_14] : memref<72x1024xf32, #tpu.memory_space<vmem>>, vector<8x1024xf32>
    tpu.vector_store %arg12[%c40, %c0_14], %35 {strides = array<i32>} : memref<72x1024xf32, #tpu.memory_space<vmem>>, vector<8x1024xf32>,
    %c1009_i32 = arith.constant 1009 : i32
    %37 = tpu.dynamic_rotate %1 by %c1009_i32 dim 1 : vector<3x1024xf32>, i32 -> vector<3x1024xf32>
    %c6 = arith.constant 6 : index
    %c0_15 = arith.constant 0 : index
    %38 = vector.load %arg2[%c6, %c0_15] : memref<9x1024xf32, #tpu.memory_space<vmem>>, vector<1x1024xf32>
    %39 = vector.broadcast %38 : vector<1x1024xf32> to vector<3x1024xf32>
    %40 = arith.mulf %37, %39 : vector<3x1024xf32>
    %41 = tpu.concatenate %40, %0 in 0 : vector<3x1024xf32>, vector<5x1024xf32> -> vector<8x1024xf32>
    %c48 = arith.constant 48 : index
    %c0_16 = arith.constant 0 : index
    %42 = vector.load %arg12[%c48, %c0_16] : memref<72x1024xf32, #tpu.memory_space<vmem>>, vector<8x1024xf32>
    tpu.vector_store %arg12[%c48, %c0_16], %41 {strides = array<i32>} : memref<72x1024xf32, #tpu.memory_space<vmem>>, vector<8x1024xf32>,
    %c1008_i32 = arith.constant 1008 : i32
    %43 = tpu.dynamic_rotate %1 by %c1008_i32 dim 1 : vector<3x1024xf32>, i32 -> vector<3x1024xf32>
    %c7 = arith.constant 7 : index
    %c0_17 = arith.constant 0 : index
    %44 = vector.load %arg2[%c7, %c0_17] : memref<9x1024xf32, #tpu.memory_space<vmem>>, vector<1x1024xf32>
    %45 = vector.broadcast %44 : vector<1x1024xf32> to vector<3x1024xf32>
    %46 = arith.mulf %43, %45 : vector<3x1024xf32>
    %47 = tpu.concatenate %46, %0 in 0 : vector<3x1024xf32>, vector<5x1024xf32> -> vector<8x1024xf32>
    %c56 = arith.constant 56 : index
    %c0_18 = arith.constant 0 : index
    %48 = vector.load %arg12[%c56, %c0_18] : memref<72x1024xf32, #tpu.memory_space<vmem>>, vector<8x1024xf32>
    tpu.vector_store %arg12[%c56, %c0_18], %47 {strides = array<i32>} : memref<72x1024xf32, #tpu.memory_space<vmem>>, vector<8x1024xf32>,
    %c1007_i32 = arith.constant 1007 : i32
    %49 = tpu.dynamic_rotate %1 by %c1007_i32 dim 1 : vector<3x1024xf32>, i32 -> vector<3x1024xf32>
    %c8_19 = arith.constant 8 : index
    %c0_20 = arith.constant 0 : index
    %50 = vector.load %arg2[%c8_19, %c0_20] : memref<9x1024xf32, #tpu.memory_space<vmem>>, vector<1x1024xf32>
    %51 = vector.broadcast %50 : vector<1x1024xf32> to vector<3x1024xf32>
    %52 = arith.mulf %49, %51 : vector<3x1024xf32>
    %53 = tpu.concatenate %52, %0 in 0 : vector<3x1024xf32>, vector<5x1024xf32> -> vector<8x1024xf32>
    %c64 = arith.constant 64 : index
    %c0_21 = arith.constant 0 : index
    %54 = vector.load %arg12[%c64, %c0_21] : memref<72x1024xf32, #tpu.memory_space<vmem>>, vector<8x1024xf32>
    tpu.vector_store %arg12[%c64, %c0_21], %53 {strides = array<i32>} : memref<72x1024xf32, #tpu.memory_space<vmem>>, vector<8x1024xf32>,
    %c0_22 = arith.constant 0 : index
    %c0_23 = arith.constant 0 : index
    %55 = vector.load %arg3[%c0_22, %c0_23] : memref<3x72xf32, #tpu.memory_space<vmem>>, vector<3x72xf32>
    %c0_24 = arith.constant 0 : index
    %c0_25 = arith.constant 0 : index
    %56 = vector.load %arg12[%c0_24, %c0_25] : memref<72x1024xf32, #tpu.memory_space<vmem>>, vector<72x1024xf32>
    %cst_26 = arith.constant dense<0.000000e+00> : vector<3x1024xf32>
    %57 = tpu.matmul %55, %56, %cst_26 {dimension_numbers = #tpu.dot_dimension_numbers<[1], [0], [0], [1], [0, 0, 1, 1], [], []>} : vector<3x72xf32>, vector<72x1024xf32>, vector<3x1024xf32> -> vector<3x1024xf32>
    %c0_27 = arith.constant 0 : index
    %c0_28 = arith.constant 0 : index
    %58 = vector.load %arg4[%c0_27, %c0_28] : memref<3x1xf32, #tpu.memory_space<vmem>>, vector<3x1xf32>
    %59 = vector.broadcast %58 : vector<3x1xf32> to vector<3x1024xf32>
    %60 = arith.addf %57, %59 : vector<3x1024xf32>
    %cst_29 = arith.constant 0.000000e+00 : f32
    %61 = vector.broadcast %cst_29 : f32 to vector<3x1024xf32>
    %62 = arith.maximumf %60, %61 : vector<3x1024xf32>
    %c17_i32_30 = arith.constant 17 : i32
    %63 = tpu.dynamic_rotate %62 by %c17_i32_30 dim 1 : vector<3x1024xf32>, i32 -> vector<3x1024xf32>
    %c0_31 = arith.constant 0 : index
    %c0_32 = arith.constant 0 : index
    %64 = vector.load %arg2[%c0_31, %c0_32] : memref<9x1024xf32, #tpu.memory_space<vmem>>, vector<1x1024xf32>
    %65 = vector.broadcast %64 : vector<1x1024xf32> to vector<3x1024xf32>
    %66 = arith.mulf %63, %65 : vector<3x1024xf32>
    %67 = tpu.concatenate %66, %0 in 0 : vector<3x1024xf32>, vector<5x1024xf32> -> vector<8x1024xf32>
    %c0_33 = arith.constant 0 : index
    %c0_34 = arith.constant 0 : index
    %68 = vector.load %arg12[%c0_33, %c0_34] : memref<72x1024xf32, #tpu.memory_space<vmem>>, vector<8x1024xf32>
    tpu.vector_store %arg12[%c0_33, %c0_34], %67 {strides = array<i32>} : memref<72x1024xf32, #tpu.memory_space<vmem>>, vector<8x1024xf32>,
    %c16_i32_35 = arith.constant 16 : i32
    %69 = tpu.dynamic_rotate %62 by %c16_i32_35 dim 1 : vector<3x1024xf32>, i32 -> vector<3x1024xf32>
    %c1_36 = arith.constant 1 : index
    %c0_37 = arith.constant 0 : index
    %70 = vector.load %arg2[%c1_36, %c0_37] : memref<9x1024xf32, #tpu.memory_space<vmem>>, vector<1x1024xf32>
    %71 = vector.broadcast %70 : vector<1x1024xf32> to vector<3x1024xf32>
    %72 = arith.mulf %69, %71 : vector<3x1024xf32>
    %73 = tpu.concatenate %72, %0 in 0 : vector<3x1024xf32>, vector<5x1024xf32> -> vector<8x1024xf32>
    %c8_38 = arith.constant 8 : index
    %c0_39 = arith.constant 0 : index
    %74 = vector.load %arg12[%c8_38, %c0_39] : memref<72x1024xf32, #tpu.memory_space<vmem>>, vector<8x1024xf32>
    tpu.vector_store %arg12[%c8_38, %c0_39], %73 {strides = array<i32>} : memref<72x1024xf32, #tpu.memory_space<vmem>>, vector<8x1024xf32>,
    %c15_i32_40 = arith.constant 15 : i32
    %75 = tpu.dynamic_rotate %62 by %c15_i32_40 dim 1 : vector<3x1024xf32>, i32 -> vector<3x1024xf32>
    %c2_41 = arith.constant 2 : index
    %c0_42 = arith.constant 0 : index
    %76 = vector.load %arg2[%c2_41, %c0_42] : memref<9x1024xf32, #tpu.memory_space<vmem>>, vector<1x1024xf32>
    %77 = vector.broadcast %76 : vector<1x1024xf32> to vector<3x1024xf32>
    %78 = arith.mulf %75, %77 : vector<3x1024xf32>
    %79 = tpu.concatenate %78, %0 in 0 : vector<3x1024xf32>, vector<5x1024xf32> -> vector<8x1024xf32>
    %c16_43 = arith.constant 16 : index
    %c0_44 = arith.constant 0 : index
    %80 = vector.load %arg12[%c16_43, %c0_44] : memref<72x1024xf32, #tpu.memory_space<vmem>>, vector<8x1024xf32>
    tpu.vector_store %arg12[%c16_43, %c0_44], %79 {strides = array<i32>} : memref<72x1024xf32, #tpu.memory_space<vmem>>, vector<8x1024xf32>,
    %c1_i32_45 = arith.constant 1 : i32
    %81 = tpu.dynamic_rotate %62 by %c1_i32_45 dim 1 : vector<3x1024xf32>, i32 -> vector<3x1024xf32>
    %c3_46 = arith.constant 3 : index
    %c0_47 = arith.constant 0 : index
    %82 = vector.load %arg2[%c3_46, %c0_47] : memref<9x1024xf32, #tpu.memory_space<vmem>>, vector<1x1024xf32>
    %83 = vector.broadcast %82 : vector<1x1024xf32> to vector<3x1024xf32>
    %84 = arith.mulf %81, %83 : vector<3x1024xf32>
    %85 = tpu.concatenate %84, %0 in 0 : vector<3x1024xf32>, vector<5x1024xf32> -> vector<8x1024xf32>
    %c24_48 = arith.constant 24 : index
    %c0_49 = arith.constant 0 : index
    %86 = vector.load %arg12[%c24_48, %c0_49] : memref<72x1024xf32, #tpu.memory_space<vmem>>, vector<8x1024xf32>
    tpu.vector_store %arg12[%c24_48, %c0_49], %85 {strides = array<i32>} : memref<72x1024xf32, #tpu.memory_space<vmem>>, vector<8x1024xf32>,
    %c4_50 = arith.constant 4 : index
    %c0_51 = arith.constant 0 : index
    %87 = vector.load %arg2[%c4_50, %c0_51] : memref<9x1024xf32, #tpu.memory_space<vmem>>, vector<1x1024xf32>
    %88 = vector.broadcast %87 : vector<1x1024xf32> to vector<3x1024xf32>
    %89 = arith.mulf %62, %88 : vector<3x1024xf32>
    %90 = tpu.concatenate %89, %0 in 0 : vector<3x1024xf32>, vector<5x1024xf32> -> vector<8x1024xf32>
    %c32_52 = arith.constant 32 : index
    %c0_53 = arith.constant 0 : index
    %91 = vector.load %arg12[%c32_52, %c0_53] : memref<72x1024xf32, #tpu.memory_space<vmem>>, vector<8x1024xf32>
    tpu.vector_store %arg12[%c32_52, %c0_53], %90 {strides = array<i32>} : memref<72x1024xf32, #tpu.memory_space<vmem>>, vector<8x1024xf32>,
    %c1023_i32_54 = arith.constant 1023 : i32
    %92 = tpu.dynamic_rotate %62 by %c1023_i32_54 dim 1 : vector<3x1024xf32>, i32 -> vector<3x1024xf32>
    %c5_55 = arith.constant 5 : index
    %c0_56 = arith.constant 0 : index
    %93 = vector.load %arg2[%c5_55, %c0_56] : memref<9x1024xf32, #tpu.memory_space<vmem>>, vector<1x1024xf32>
    %94 = vector.broadcast %93 : vector<1x1024xf32> to vector<3x1024xf32>
    %95 = arith.mulf %92, %94 : vector<3x1024xf32>
    %96 = tpu.concatenate %95, %0 in 0 : vector<3x1024xf32>, vector<5x1024xf32> -> vector<8x1024xf32>
    %c40_57 = arith.constant 40 : index
    %c0_58 = arith.constant 0 : index
    %97 = vector.load %arg12[%c40_57, %c0_58] : memref<72x1024xf32, #tpu.memory_space<vmem>>, vector<8x1024xf32>
    tpu.vector_store %arg12[%c40_57, %c0_58], %96 {strides = array<i32>} : memref<72x1024xf32, #tpu.memory_space<vmem>>, vector<8x1024xf32>,
    %c1009_i32_59 = arith.constant 1009 : i32
    %98 = tpu.dynamic_rotate %62 by %c1009_i32_59 dim 1 : vector<3x1024xf32>, i32 -> vector<3x1024xf32>
    %c6_60 = arith.constant 6 : index
    %c0_61 = arith.constant 0 : index
    %99 = vector.load %arg2[%c6_60, %c0_61] : memref<9x1024xf32, #tpu.memory_space<vmem>>, vector<1x1024xf32>
    %100 = vector.broadcast %99 : vector<1x1024xf32> to vector<3x1024xf32>
    %101 = arith.mulf %98, %100 : vector<3x1024xf32>
    %102 = tpu.concatenate %101, %0 in 0 : vector<3x1024xf32>, vector<5x1024xf32> -> vector<8x1024xf32>
    %c48_62 = arith.constant 48 : index
    %c0_63 = arith.constant 0 : index
    %103 = vector.load %arg12[%c48_62, %c0_63] : memref<72x1024xf32, #tpu.memory_space<vmem>>, vector<8x1024xf32>
    tpu.vector_store %arg12[%c48_62, %c0_63], %102 {strides = array<i32>} : memref<72x1024xf32, #tpu.memory_space<vmem>>, vector<8x1024xf32>,
    %c1008_i32_64 = arith.constant 1008 : i32
    %104 = tpu.dynamic_rotate %62 by %c1008_i32_64 dim 1 : vector<3x1024xf32>, i32 -> vector<3x1024xf32>
    %c7_65 = arith.constant 7 : index
    %c0_66 = arith.constant 0 : index
    %105 = vector.load %arg2[%c7_65, %c0_66] : memref<9x1024xf32, #tpu.memory_space<vmem>>, vector<1x1024xf32>
    %106 = vector.broadcast %105 : vector<1x1024xf32> to vector<3x1024xf32>
    %107 = arith.mulf %104, %106 : vector<3x1024xf32>
    %108 = tpu.concatenate %107, %0 in 0 : vector<3x1024xf32>, vector<5x1024xf32> -> vector<8x1024xf32>
    %c56_67 = arith.constant 56 : index
    %c0_68 = arith.constant 0 : index
    %109 = vector.load %arg12[%c56_67, %c0_68] : memref<72x1024xf32, #tpu.memory_space<vmem>>, vector<8x1024xf32>
    tpu.vector_store %arg12[%c56_67, %c0_68], %108 {strides = array<i32>} : memref<72x1024xf32, #tpu.memory_space<vmem>>, vector<8x1024xf32>,
    %c1007_i32_69 = arith.constant 1007 : i32
    %110 = tpu.dynamic_rotate %62 by %c1007_i32_69 dim 1 : vector<3x1024xf32>, i32 -> vector<3x1024xf32>
    %c8_70 = arith.constant 8 : index
    %c0_71 = arith.constant 0 : index
    %111 = vector.load %arg2[%c8_70, %c0_71] : memref<9x1024xf32, #tpu.memory_space<vmem>>, vector<1x1024xf32>
    %112 = vector.broadcast %111 : vector<1x1024xf32> to vector<3x1024xf32>
    %113 = arith.mulf %110, %112 : vector<3x1024xf32>
    %114 = tpu.concatenate %113, %0 in 0 : vector<3x1024xf32>, vector<5x1024xf32> -> vector<8x1024xf32>
    %c64_72 = arith.constant 64 : index
    %c0_73 = arith.constant 0 : index
    %115 = vector.load %arg12[%c64_72, %c0_73] : memref<72x1024xf32, #tpu.memory_space<vmem>>, vector<8x1024xf32>
    tpu.vector_store %arg12[%c64_72, %c0_73], %114 {strides = array<i32>} : memref<72x1024xf32, #tpu.memory_space<vmem>>, vector<8x1024xf32>,
    %c0_74 = arith.constant 0 : index
    %c0_75 = arith.constant 0 : index
    %116 = vector.load %arg5[%c0_74, %c0_75] : memref<3x72xf32, #tpu.memory_space<vmem>>, vector<3x72xf32>
    %c0_76 = arith.constant 0 : index
    %c0_77 = arith.constant 0 : index
    %117 = vector.load %arg12[%c0_76, %c0_77] : memref<72x1024xf32, #tpu.memory_space<vmem>>, vector<72x1024xf32>
    %cst_78 = arith.constant dense<0.000000e+00> : vector<3x1024xf32>
    %118 = tpu.matmul %116, %117, %cst_78 {dimension_numbers = #tpu.dot_dimension_numbers<[1], [0], [0], [1], [0, 0, 1, 1], [], []>} : vector<3x72xf32>, vector<72x1024xf32>, vector<3x1024xf32> -> vector<3x1024xf32>
    %c0_79 = arith.constant 0 : index
    %c0_80 = arith.constant 0 : index
    %119 = vector.load %arg6[%c0_79, %c0_80] : memref<3x1xf32, #tpu.memory_space<vmem>>, vector<3x1xf32>
    %120 = vector.broadcast %119 : vector<3x1xf32> to vector<3x1024xf32>
    %121 = arith.addf %118, %120 : vector<3x1024xf32>
    %cst_81 = arith.constant 0.000000e+00 : f32
    %122 = vector.broadcast %cst_81 : f32 to vector<3x1024xf32>
    %123 = arith.maximumf %121, %122 : vector<3x1024xf32>
    %c1023_i32_82 = arith.constant 1023 : i32
    %124 = tpu.dynamic_rotate %123 by %c1023_i32_82 dim 1 : vector<3x1024xf32>, i32 -> vector<3x1024xf32>
    %125 = arith.maximumf %123, %124 : vector<3x1024xf32>
    %c1008_i32_83 = arith.constant 1008 : i32
    %126 = tpu.dynamic_rotate %123 by %c1008_i32_83 dim 1 : vector<3x1024xf32>, i32 -> vector<3x1024xf32>
    %c1007_i32_84 = arith.constant 1007 : i32
    %127 = tpu.dynamic_rotate %123 by %c1007_i32_84 dim 1 : vector<3x1024xf32>, i32 -> vector<3x1024xf32>
    %128 = arith.maximumf %126, %127 : vector<3x1024xf32>
    %129 = arith.maximumf %125, %128 : vector<3x1024xf32>
    %130 = vector.extract_strided_slice %129 {offsets = [0, 0], sizes = [1, 256], strides = [1, 1]} : vector<3x1024xf32> to vector<1x256xf32>
    %c0_85 = arith.constant 0 : index
    %c0_86 = arith.constant 0 : index
    %131 = vector.load %arg13[%c0_85, %c0_86] : memref<4x768xf32, #tpu.memory_space<vmem>>, vector<1x256xf32>
    tpu.vector_store %arg13[%c0_85, %c0_86], %130 {strides = array<i32>} : memref<4x768xf32, #tpu.memory_space<vmem>>, vector<1x256xf32>,
    %132 = vector.extract_strided_slice %129 {offsets = [1, 0], sizes = [1, 256], strides = [1, 1]} : vector<3x1024xf32> to vector<1x256xf32>
    %c0_87 = arith.constant 0 : index
    %c256 = arith.constant 256 : index
    %133 = vector.load %arg13[%c0_87, %c256] : memref<4x768xf32, #tpu.memory_space<vmem>>, vector<1x256xf32>
    tpu.vector_store %arg13[%c0_87, %c256], %132 {strides = array<i32>} : memref<4x768xf32, #tpu.memory_space<vmem>>, vector<1x256xf32>,
    %134 = vector.extract_strided_slice %129 {offsets = [2, 0], sizes = [1, 256], strides = [1, 1]} : vector<3x1024xf32> to vector<1x256xf32>
    %c0_88 = arith.constant 0 : index
    %c512 = arith.constant 512 : index
    %135 = vector.load %arg13[%c0_88, %c512] : memref<4x768xf32, #tpu.memory_space<vmem>>, vector<1x256xf32>
    tpu.vector_store %arg13[%c0_88, %c512], %134 {strides = array<i32>} : memref<4x768xf32, #tpu.memory_space<vmem>>, vector<1x256xf32>,
    %136 = vector.extract_strided_slice %129 {offsets = [0, 256], sizes = [1, 256], strides = [1, 1]} : vector<3x1024xf32> to vector<1x256xf32>
    %c1_89 = arith.constant 1 : index
    %c0_90 = arith.constant 0 : index
    %137 = vector.load %arg13[%c1_89, %c0_90] : memref<4x768xf32, #tpu.memory_space<vmem>>, vector<1x256xf32>
    tpu.vector_store %arg13[%c1_89, %c0_90], %136 {strides = array<i32>} : memref<4x768xf32, #tpu.memory_space<vmem>>, vector<1x256xf32>,
    %138 = vector.extract_strided_slice %129 {offsets = [1, 256], sizes = [1, 256], strides = [1, 1]} : vector<3x1024xf32> to vector<1x256xf32>
    %c1_91 = arith.constant 1 : index
    %c256_92 = arith.constant 256 : index
    %139 = vector.load %arg13[%c1_91, %c256_92] : memref<4x768xf32, #tpu.memory_space<vmem>>, vector<1x256xf32>
    tpu.vector_store %arg13[%c1_91, %c256_92], %138 {strides = array<i32>} : memref<4x768xf32, #tpu.memory_space<vmem>>, vector<1x256xf32>,
    %140 = vector.extract_strided_slice %129 {offsets = [2, 256], sizes = [1, 256], strides = [1, 1]} : vector<3x1024xf32> to vector<1x256xf32>
    %c1_93 = arith.constant 1 : index
    %c512_94 = arith.constant 512 : index
    %141 = vector.load %arg13[%c1_93, %c512_94] : memref<4x768xf32, #tpu.memory_space<vmem>>, vector<1x256xf32>
    tpu.vector_store %arg13[%c1_93, %c512_94], %140 {strides = array<i32>} : memref<4x768xf32, #tpu.memory_space<vmem>>, vector<1x256xf32>,
    %142 = vector.extract_strided_slice %129 {offsets = [0, 512], sizes = [1, 256], strides = [1, 1]} : vector<3x1024xf32> to vector<1x256xf32>
    %c2_95 = arith.constant 2 : index
    %c0_96 = arith.constant 0 : index
    %143 = vector.load %arg13[%c2_95, %c0_96] : memref<4x768xf32, #tpu.memory_space<vmem>>, vector<1x256xf32>
    tpu.vector_store %arg13[%c2_95, %c0_96], %142 {strides = array<i32>} : memref<4x768xf32, #tpu.memory_space<vmem>>, vector<1x256xf32>,
    %144 = vector.extract_strided_slice %129 {offsets = [1, 512], sizes = [1, 256], strides = [1, 1]} : vector<3x1024xf32> to vector<1x256xf32>
    %c2_97 = arith.constant 2 : index
    %c256_98 = arith.constant 256 : index
    %145 = vector.load %arg13[%c2_97, %c256_98] : memref<4x768xf32, #tpu.memory_space<vmem>>, vector<1x256xf32>
    tpu.vector_store %arg13[%c2_97, %c256_98], %144 {strides = array<i32>} : memref<4x768xf32, #tpu.memory_space<vmem>>, vector<1x256xf32>,
    %146 = vector.extract_strided_slice %129 {offsets = [2, 512], sizes = [1, 256], strides = [1, 1]} : vector<3x1024xf32> to vector<1x256xf32>
    %c2_99 = arith.constant 2 : index
    %c512_100 = arith.constant 512 : index
    %147 = vector.load %arg13[%c2_99, %c512_100] : memref<4x768xf32, #tpu.memory_space<vmem>>, vector<1x256xf32>
    tpu.vector_store %arg13[%c2_99, %c512_100], %146 {strides = array<i32>} : memref<4x768xf32, #tpu.memory_space<vmem>>, vector<1x256xf32>,
    %148 = vector.extract_strided_slice %129 {offsets = [0, 768], sizes = [1, 256], strides = [1, 1]} : vector<3x1024xf32> to vector<1x256xf32>
    %c3_101 = arith.constant 3 : index
    %c0_102 = arith.constant 0 : index
    %149 = vector.load %arg13[%c3_101, %c0_102] : memref<4x768xf32, #tpu.memory_space<vmem>>, vector<1x256xf32>
    tpu.vector_store %arg13[%c3_101, %c0_102], %148 {strides = array<i32>} : memref<4x768xf32, #tpu.memory_space<vmem>>, vector<1x256xf32>,
    %150 = vector.extract_strided_slice %129 {offsets = [1, 768], sizes = [1, 256], strides = [1, 1]} : vector<3x1024xf32> to vector<1x256xf32>
    %c3_103 = arith.constant 3 : index
    %c256_104 = arith.constant 256 : index
    %151 = vector.load %arg13[%c3_103, %c256_104] : memref<4x768xf32, #tpu.memory_space<vmem>>, vector<1x256xf32>
    tpu.vector_store %arg13[%c3_103, %c256_104], %150 {strides = array<i32>} : memref<4x768xf32, #tpu.memory_space<vmem>>, vector<1x256xf32>,
    %152 = vector.extract_strided_slice %129 {offsets = [2, 768], sizes = [1, 256], strides = [1, 1]} : vector<3x1024xf32> to vector<1x256xf32>
    %c3_105 = arith.constant 3 : index
    %c512_106 = arith.constant 512 : index
    %153 = vector.load %arg13[%c3_105, %c512_106] : memref<4x768xf32, #tpu.memory_space<vmem>>, vector<1x256xf32>
    tpu.vector_store %arg13[%c3_105, %c512_106], %152 {strides = array<i32>} : memref<4x768xf32, #tpu.memory_space<vmem>>, vector<1x256xf32>,
    %c0_107 = arith.constant 0 : index
    %c0_108 = arith.constant 0 : index
    %154 = vector.load %arg13[%c0_107, %c0_108] : memref<4x768xf32, #tpu.memory_space<vmem>>, vector<4x768xf32>
    %155 = arith.truncf %154 : vector<4x768xf32> to vector<4x768xbf16>
    %c0_109 = arith.constant 0 : index
    %c0_110 = arith.constant 0 : index
    %156 = vector.load %arg7[%c0_109, %c0_110] : memref<768x128xbf16, #tpu.memory_space<vmem>>, vector<768x128xbf16>
    %cst_111 = arith.constant dense<0.000000e+00> : vector<4x128xf32>
    %157 = tpu.matmul %155, %156, %cst_111 {dimension_numbers = #tpu.dot_dimension_numbers<[1], [0], [0], [1], [0, 0, 1, 1], [], []>} : vector<4x768xbf16>, vector<768x128xbf16>, vector<4x128xf32> -> vector<4x128xf32>
    %c0_112 = arith.constant 0 : index
    %c0_113 = arith.constant 0 : index
    %158 = vector.load %arg8[%c0_112, %c0_113] : memref<1x128xf32, #tpu.memory_space<vmem>>, vector<1x128xf32>
    %159 = vector.broadcast %158 : vector<1x128xf32> to vector<4x128xf32>
    %160 = arith.addf %157, %159 : vector<4x128xf32>
    %cst_114 = arith.constant 0.000000e+00 : f32
    %161 = vector.broadcast %cst_114 : f32 to vector<4x128xf32>
    %162 = arith.maximumf %160, %161 : vector<4x128xf32>
    %163 = arith.truncf %162 : vector<4x128xf32> to vector<4x128xbf16>
    %c0_115 = arith.constant 0 : index
    %c0_116 = arith.constant 0 : index
    %164 = vector.load %arg9[%c0_115, %c0_116] : memref<128x128xbf16, #tpu.memory_space<vmem>>, vector<128x128xbf16>
    %cst_117 = arith.constant dense<0.000000e+00> : vector<4x128xf32>
    %165 = tpu.matmul %163, %164, %cst_117 {dimension_numbers = #tpu.dot_dimension_numbers<[1], [0], [0], [1], [0, 0, 1, 1], [], []>} : vector<4x128xbf16>, vector<128x128xbf16>, vector<4x128xf32> -> vector<4x128xf32>
    %c0_118 = arith.constant 0 : index
    %c0_119 = arith.constant 0 : index
    %166 = vector.load %arg10[%c0_118, %c0_119] : memref<1x128xf32, #tpu.memory_space<vmem>>, vector<1x128xf32>
    %167 = vector.broadcast %166 : vector<1x128xf32> to vector<4x128xf32>
    %168 = arith.addf %165, %167 : vector<4x128xf32>
    %cst_120 = arith.constant dense<0xFF800000> : vector<4xf32>
    %169 = vector.multi_reduction <maximumf>, %168, %cst_120 [1] : vector<4x128xf32> to vector<4xf32>
    %170 = vector.shape_cast %169 : vector<4xf32> to vector<4x1xf32>
    %171 = vector.broadcast %170 : vector<4x1xf32> to vector<4x128xf32>
    %172 = arith.subf %168, %171 : vector<4x128xf32>
    %173 = math.exp %172 : vector<4x128xf32>
    %cst_121 = arith.constant dense<0.000000e+00> : vector<4xf32>
    %174 = vector.multi_reduction <add>, %173, %cst_121 [1] : vector<4x128xf32> to vector<4xf32>
    %175 = vector.shape_cast %174 : vector<4xf32> to vector<4x1xf32>
    %176 = math.log %175 : vector<4x1xf32>
    %177 = arith.addf %176, %170 : vector<4x1xf32>
    %178 = vector.broadcast %177 : vector<4x1xf32> to vector<4x128xf32>
    %179 = arith.subf %168, %178 : vector<4x128xf32>
    %c0_122 = arith.constant 0 : index
    %c0_123 = arith.constant 0 : index
    %c0_124 = arith.constant 0 : index
    %180 = vector.load %arg11[%c0_122, %c0_123, %c0_124] : memref<1x4x128xf32, #tpu.memory_space<vmem>>, vector<1x4x128xf32>
    %181 = vector.shape_cast %180 : vector<1x4x128xf32> to vector<4x128xf32>
    %182 = vector.shape_cast %179 : vector<4x128xf32> to vector<1x4x128xf32>
    tpu.vector_store %arg11[%c0_122, %c0_123, %c0_124], %182 {strides = array<i32>} : memref<1x4x128xf32, #tpu.memory_space<vmem>>, vector<1x4x128xf32>,
    return
  }
  func.func @transform_0(%arg0: i32) -> (i32, i32) {
    %c0_i32 = arith.constant 0 : i32
    %c0_i32_0 = arith.constant 0 : i32
    return %c0_i32, %arg0 : i32, i32
  }
  func.func @transform_1(%arg0: i32) -> (i32, i32) {
    %c0_i32 = arith.constant 0 : i32
    %c0_i32_0 = arith.constant 0 : i32
    %c0_i32_1 = arith.constant 0 : i32
    return %c0_i32, %c0_i32_0 : i32, i32
  }
  func.func @transform_2(%arg0: i32) -> (i32, i32) {
    %c0_i32 = arith.constant 0 : i32
    %c0_i32_0 = arith.constant 0 : i32
    %c0_i32_1 = arith.constant 0 : i32
    return %c0_i32, %c0_i32_0 : i32, i32
  }
  func.func @transform_3(%arg0: i32) -> (i32, i32) {
    %c0_i32 = arith.constant 0 : i32
    %c0_i32_0 = arith.constant 0 : i32
    %c0_i32_1 = arith.constant 0 : i32
    return %c0_i32, %c0_i32_0 : i32, i32
  }
  func.func @transform_4(%arg0: i32) -> (i32, i32) {
    %c0_i32 = arith.constant 0 : i32
    %c0_i32_0 = arith.constant 0 : i32
    %c0_i32_1 = arith.constant 0 : i32
    return %c0_i32, %c0_i32_0 : i32, i32
  }
  func.func @transform_5(%arg0: i32) -> (i32, i32) {
    %c0_i32 = arith.constant 0 : i32
    %c0_i32_0 = arith.constant 0 : i32
    %c0_i32_1 = arith.constant 0 : i32
    return %c0_i32, %c0_i32_0 : i32, i32
  }
  func.func @transform_6(%arg0: i32) -> (i32, i32) {
    %c0_i32 = arith.constant 0 : i32
    %c0_i32_0 = arith.constant 0 : i32
    %c0_i32_1 = arith.constant 0 : i32
    return %c0_i32, %c0_i32_0 : i32, i32
  }
  func.func @transform_7(%arg0: i32) -> (i32, i32) {
    %c0_i32 = arith.constant 0 : i32
    %c0_i32_0 = arith.constant 0 : i32
    %c0_i32_1 = arith.constant 0 : i32
    return %c0_i32, %c0_i32_0 : i32, i32
  }
  func.func @transform_8(%arg0: i32) -> (i32, i32) {
    %c0_i32 = arith.constant 0 : i32
    %c0_i32_0 = arith.constant 0 : i32
    %c0_i32_1 = arith.constant 0 : i32
    return %c0_i32, %c0_i32_0 : i32, i32
  }
  func.func @transform_9(%arg0: i32) -> (i32, i32) {
    %c0_i32 = arith.constant 0 : i32
    %c0_i32_0 = arith.constant 0 : i32
    %c0_i32_1 = arith.constant 0 : i32
    return %c0_i32, %c0_i32_0 : i32, i32
  }
  func.func @transform_10(%arg0: i32) -> (i32, i32, i32) {
    %c0_i32 = arith.constant 0 : i32
    %c0_i32_0 = arith.constant 0 : i32
    %c0_i32_1 = arith.constant 0 : i32
    return %arg0, %c0_i32, %c0_i32_0 : i32, i32, i32
  }
}

</mosaic_0001>

<bundles_post_ra>
// kernel: net_forward.1
= control target key start
LH: loop header
LB: loop body
LE: loop exit
PB: predicated region body
PF: predicated region fallthrough
CT: control target
= control target key end

     0   :  { %s5717_s0 = inlined_call_operand.vmem [shape: f32[3,2048], index: 0, kind: input, shape index: {}]   ;;  %s5718_s1 = inlined_call_operand.vmem [shape: f32[9,1024], index: 1, kind: input, shape index: {}]   ;;  %s5719_s2 = inlined_call_operand.vmem [shape: f32[3,72], index: 2, kind: input, shape index: {}]   ;;  %s5720_s3 = inlined_call_operand.vmem [shape: f32[3,1], index: 3, kind: input, shape index: {}]   ;;  %s5721_s4 = inlined_call_operand.vmem [shape: f32[3,72], index: 4, kind: input, shape index: {}]   ;;  %s5722_s5 = inlined_call_operand.vmem [shape: f32[3,1], index: 5, kind: input, shape index: {}]   ;;  %s5723_s6 = inlined_call_operand.vmem [shape: bf16[768,128], index: 6, kind: input, shape index: {}]   ;;  %s5724_s7 = inlined_call_operand.vmem [shape: f32[1,128], index: 7, kind: input, shape index: {}]   ;;  %s5725_s8 = inlined_call_operand.vmem [shape: bf16[128,128], index: 8, kind: input, shape index: {}]   ;;  %s5726_s9 = inlined_call_operand.vmem [shape: f32[1,128], index: 9, kind: input, shape index: {}]   ;;  %s5727_s10 = inlined_call_operand.hbm [shape: f32[2,4,128], index: 10, kind: output, shape index: {}]  }
   0x1   :  { %5751 = sst [smem:[#allocation13_spill]] %s5717_s0 }
   0x2   :  { %5752 = sst [smem:[#allocation14_spill]] %s5719_s2 }
   0x3   :  { %15 = vsyncpa [#allocation5], 0 }
   0x4   :  { %17 = vsyncpa [#allocation5 + $0x1], 0  ;;  %s3794_s13 = smov 0   ;;  %s3796_s14 = smov 0  }
   0x5   :  { %s3798_s15 = smov 0   ;;  %s3800_s16 = smov 0  }
   0x6 LB: > { %s3815_s17 = sadd.s32 4294967295, %s3728_s16   ;;  %s3127_s18 = sadd.s32 4294967294, %s3728_s16   ;;  %s3728_s16 = sphi %s3800_s16, %s5791_s16   ;;  %s3724_s15 = sphi %s3798_s15, %s5790_s15   ;;  %s3720_s14 = sphi %s3796_s14, %s5789_s14   ;;  %s3716_s13 = sphi %s3794_s13, %s5788_s13  }
   0x7   : > { %s3819_s19 = sadd.s32 1, %s3728_s16   ;;  %s245_s20 = sadd.s32 1, %s3724_s15 }
   0x8   : > { %s242_s21 = ssub.s32 %s3728_s16, %s3819_s19  ;;  %p255_p0 = scmp.ne.s32.totalorder %s3724_s15, %s3720_s14 }
   0x9   : > { %p243_p1 = scmp.eq.s32.totalorder %s242_s21, 0  ;;  %p256_p2 = scmp.eq.s32.totalorder %s3815_s17, 1 }
   0xa   : > { %p261_p3 = scmp.ne.s32.totalorder %s3720_s14, %s3716_s13  ;;  %p262_p4 = scmp.eq.s32.totalorder %s3127_s18, 1 }
   0xb   : > { %s3830_s22 = scalar_select %p243_p1, %s3724_s15, %s245_s20  }
   0xc   : > { %p3832_p5 = por %p256_p2, %p255_p0  ;;  %p3836_p6 = por %p262_p4, %p261_p3 }
   0xd   : > { %p3130_p7 = scmp.ge.s32.totalorder %s3728_s16, 1  ;;  %p316_p8 = scmp.lt.s32.totalorder %s3728_s16, 3 }
   0xf   : > { %p317_p9 = pnand %p3130_p7, %p316_p8 }
  0x11   : > { %320 = sbr.rel (%p317_p9) target bundleno = 1584 (0x630), region = 60 }
  0x16   : > { %s3132_s25 = sshll.u32 %s3815_s17, 3  ;;  %s5755_s0 = sld [smem:[#allocation13_spill]]  ;;  %v3140_v9 = vld [vmem:[%s5718_s1 + $0x4] ss:$8 sm:$0xf]  ;;  %vm759_vm0 = vcmask 1043456  }
  0x17   : > { %p355_p10 = scmp.lt.s32.totalorder %s3132_s25, 15  ;;  %s5730_s30 = smov 17   ;;  %v3141_v13 = vld [vmem:[%s5718_s1 + $0x4] ss:$8 sm:$0xf0]  ;;  %vm446_vm6 = vcmask 1042432  }
  0x18   : > { %v745_v14 = vor.u32 %v3141_v13, %v3140_v9  ;;  %s5732_s21 = smov 16   ;;  %s5736_s27 = smov 127   ;;  %vm1266_vm10 = vcmask 588800   ;;  %vm2375_vm11 = vcmask 1040384  }
  0x19   : > { %s5793_s25 = smov (!%p355_p10, %s3132_s25), 15  ;;  %s5728_s28 = smov 113  }
  0x1a   : > { %s3133_s26 = sshll.u32 %s5793_s25, 2  ;;  %v750_v19 = vperm.slane %v745_v14, 3  ;;  %v754_v20 = vperm.slane %v745_v14, 7  ;;  %v748_v24 = vperm.slane %v745_v14, 1  ;;  %v749_v26 = vperm.slane %v745_v14, 2  ;;  %s5742_s25 = smov 15  }
  0x1b   : > { %v752_v28 = vperm.slane %v745_v14, 5  ;;  %v753_v29 = vperm.slane %v745_v14, 6  ;;  %v747_v33 = vperm.slane %v745_v14, 0  ;;  %v751_v38 = vperm.slane %v745_v14, 4  ;;  %s5740_s11 = smov 111   ;;  %s5760_s2 = sld [smem:[#allocation14_spill]] }
  0x1c   : > { %s358_s29 = scalar_lea.vmem %s5755_s0, %s3133_s26  ;;  %v756_v27 = vrot.slane %v750_v19, 4  ;;  %v758_v30 = vrot.slane %v754_v20, 4  ;;  %v755_v34 = vrot.slane %v748_v24, 4  ;;  %s5734_s26 = smov 1  }
  0x1d   : > { %v3846_v0 = vld [vmem:[%s358_s29 + $0x18] sm:$0x77]  ;;  %v3848_v1 = vld [vmem:[%s358_s29 + $0x8] sm:$0x77]  ;;  %v3851_v2 = vld [vmem:[%s358_s29] sm:$0x77] }
  0x1e   : > { %374 = vst [vmem:[#allocation1 + $0x30] ss:$2 sm:$0xff] %v3846_v0  ;;  %v3853_v3 = vld [vmem:[%s358_s29 + $0x10] sm:$0x77]  ;;  %v761_v37 = vsel %vm759_vm0, %v749_v26, %v756_v27  ;;  %v757_v39 = vrot.slane %v752_v28, 4  ;;  %v763_v40 = vsel %vm759_vm0, %v753_v29, %v758_v30  ;;  %v760_v45 = vsel %vm759_vm0, %v747_v33, %v755_v34  ;;  %s5738_s29 = smov 112  }
  0x1f   : > { %370 = vst [vmem:[#allocation1 + $0x10] ss:$2 sm:$0xff] %v3848_v1  ;;  %v769_v43 = vmul.f32 %v761_v37, %v3848_v1  ;;  %v771_v47 = vmul.f32 %v763_v40, %v3846_v0  ;;  %v768_v51 = vmul.f32 %v760_v45, %v3851_v2  ;;  %s5765_s12 = smov 15   ;;  %s5766_s18 = smov 111  }
  0x20   : > { %372 = vst [vmem:[#allocation1 + $0x20] ss:$2 sm:$0xff] %v3853_v3  ;;  %v762_v48 = vsel %vm759_vm0, %v751_v38, %v757_v39  ;;  %s5768_s20 = smov 127   ;;  %s5771_s0 = smov 17  }
  0x21   : > { %368 = vst [vmem:[#allocation1] ss:$2 sm:$0xff] %v3851_v2  ;;  %v770_v54 = vmul.f32 %v762_v48, %v3853_v3 }
  0x25   : > { %v382_v4 = vld.sshfl [vmem:[#allocation1 + $0x38] sm:$0xff pattern:$0x75316420]  ;;  %v3858_v5 = vld.sshfl [vmem:[#allocation1 + $0x30] sm:$0xff pattern:$0x75316420] }
  0x26   : > { %405 = vrot.lane.b32.xlu0 %v382_v4, %s5730_s30  ;;  %v3861_v6 = vld.sshfl [vmem:[#allocation1 + $0x10] sm:$0xff pattern:$0x75316420]  ;;  %v3863_v7 = vld.sshfl [vmem:[#allocation1 + $0x18] sm:$0xff pattern:$0x75316420] }
  0x27   : > { %465 = vst [vmem:[#allocation1 + $0x10] ss:$2 sm:$0xff] %v3848_v1  ;;  %v3873_v11 = vld.sshfl [vmem:[#allocation1 + $0x20] sm:$0xff pattern:$0x75316420] }
  0x28   : > { %469 = vst [vmem:[#allocation1 + $0x30] ss:$2 sm:$0xff] %v3846_v0  ;;  %v375_v8 = vld.sshfl [vmem:[#allocation1] sm:$0xff pattern:$0x75316420] }
  0x29   : > { %v3870_v10 = vld.sshfl [vmem:[#allocation1 + $0x8] sm:$0xff pattern:$0x75316420]  ;;  %391 = vrot.lane.b32.xlu2 %v375_v8, %s5730_s30 }
  0x2a   : > { %463 = vst [vmem:[#allocation1] ss:$2 sm:$0xff] %v3851_v2  ;;  %v3876_v12 = vld.sshfl [vmem:[#allocation1 + $0x28] sm:$0xff pattern:$0x75316420] }
  0x2b   : > { %467 = vst [vmem:[#allocation1 + $0x20] ss:$2 sm:$0xff] %v3853_v3 }
  0x2e   : > { %v3882_v15 = vld.sshfl [vmem:[#allocation1 + $0x10] sm:$0xff pattern:$0x75316420]  ;;  %v3884_v16 = vld.sshfl [vmem:[#allocation1 + $0x18] sm:$0xff pattern:$0x75316420] }
  0x2f   : > { %558 = vst [vmem:[#allocation1 + $0x10] ss:$2 sm:$0xff] %v3848_v1  ;;  %v477_v17 = vld.sshfl [vmem:[#allocation1 + $0x38] sm:$0xff pattern:$0x75316420] }
  0x30   : > { %500 = vrot.lane.b32.xlu1 %v477_v17, %s5732_s21  ;;  %v3888_v18 = vld.sshfl [vmem:[#allocation1 + $0x30] sm:$0xff pattern:$0x75316420] }
  0x31   : > { %562 = vst [vmem:[#allocation1 + $0x30] ss:$2 sm:$0xff] %v3846_v0  ;;  %v470_v21 = vld.sshfl [vmem:[#allocation1] sm:$0xff pattern:$0x75316420] }
  0x32   : > { %v3891_v22 = vld.sshfl [vmem:[#allocation1 + $0x8] sm:$0xff pattern:$0x75316420]  ;;  %486 = vrot.lane.b32.xlu0 %v470_v21, %s5732_s21  ;;  %v3894_v23 = vld.sshfl [vmem:[#allocation1 + $0x20] sm:$0xff pattern:$0x75316420] }
  0x33   : > { %556 = vst [vmem:[#allocation1] ss:$2 sm:$0xff] %v3851_v2  ;;  %v3897_v25 = vld.sshfl [vmem:[#allocation1 + $0x28] sm:$0xff pattern:$0x75316420] }
  0x34   : > { %560 = vst [vmem:[#allocation1 + $0x20] ss:$2 sm:$0xff] %v3853_v3 }
  0x36   : > { %v565_v31 = vld.sshfl [vmem:[#allocation1 + $0x10] sm:$0xff pattern:$0x75316420]  ;;  %v3900_v32 = vld.sshfl [vmem:[#allocation1 + $0x18] sm:$0xff pattern:$0x75316420] }
  0x37   : > { %651 = vst [vmem:[#allocation1 + $0x10] ss:$2 sm:$0xff] %v3848_v1 }
  0x38   : > { %v3903_v35 = vld.sshfl [vmem:[#allocation1 + $0x30] sm:$0xff pattern:$0x75316420]  ;;  %v570_v36 = vld.sshfl [vmem:[#allocation1 + $0x38] sm:$0xff pattern:$0x75316420] }
  0x39   : > { %655 = vst [vmem:[#allocation1 + $0x30] ss:$2 sm:$0xff] %v3846_v0  ;;  %593 = vrot.lane.b32.xlu2 %v570_v36, %s5742_s25 }
  0x3a   : > { %v564_v41 = vld.sshfl [vmem:[#allocation1 + $0x8] sm:$0xff pattern:$0x75316420]  ;;  %v563_v42 = vld.sshfl [vmem:[#allocation1] sm:$0xff pattern:$0x75316420] }
  0x3b   : > { %579 = vrot.lane.b32.xlu1 %v563_v42, %s5742_s25  ;;  %649 = vst [vmem:[#allocation1] ss:$2 sm:$0xff] %v3851_v2  ;;  %v3912_v44 = vld.sshfl [vmem:[#allocation1 + $0x20] sm:$0xff pattern:$0x75316420] }
  0x3c   : > { %v3915_v46 = vld.sshfl [vmem:[#allocation1 + $0x28] sm:$0xff pattern:$0x75316420] }
  0x3d   : > { %653 = vst [vmem:[#allocation1 + $0x20] ss:$2 sm:$0xff] %v3853_v3 }
  0x3e   : > { %v658_v49 = vld.sshfl [vmem:[#allocation1 + $0x10] sm:$0xff pattern:$0x75316420]  ;;  %v659_v50 = vld.sshfl [vmem:[#allocation1 + $0x18] sm:$0xff pattern:$0x75316420] }
  0x3f   : > { %778 = vst [vmem:[#allocation1 + $0x10] ss:$2 sm:$0xff] %v769_v43 }
  0x40   : > { %v3921_v52 = vld.sshfl [vmem:[#allocation1 + $0x30] sm:$0xff pattern:$0x75316420]  ;;  %v663_v53 = vld.sshfl [vmem:[#allocation1 + $0x38] sm:$0xff pattern:$0x75316420] }
  0x41   : > { %583 = vrot.lane.b32.xlu2 %v565_v31, %s5742_s25  ;;  %782 = vst [vmem:[#allocation1 + $0x30] ss:$2 sm:$0xff] %v771_v47  ;;  %686 = vrot.lane.b32.xlu0 %v663_v53, %s5734_s26 }
  0x42   : > { %v657_v55 = vld.sshfl [vmem:[#allocation1 + $0x8] sm:$0xff pattern:$0x75316420]  ;;  %v656_v56 = vld.sshfl [vmem:[#allocation1] sm:$0xff pattern:$0x75316420] }
  0x43   : > { %581 = vrot.lane.b32.xlu1 %v564_v41, %s5742_s25  ;;  %776 = vst [vmem:[#allocation1] ss:$2 sm:$0xff] %v768_v51 }
  0x44   : > { %v3927_v57 = vld.sshfl [vmem:[#allocation1 + $0x20] sm:$0xff pattern:$0x75316420]  ;;  %v3929_v58 = vld.sshfl [vmem:[#allocation1 + $0x28] sm:$0xff pattern:$0x75316420] }
  0x45   : > { %780 = vst [vmem:[#allocation1 + $0x20] ss:$2 sm:$0xff] %v770_v54 }
  0x46   : > { %v3931_v59 = vld.sshfl [vmem:[#allocation1 + $0x10] sm:$0xff pattern:$0x75316420]  ;;  %v3933_v60 = vld.sshfl [vmem:[#allocation1 + $0x18] sm:$0xff pattern:$0x75316420] }
  0x47   : > { %817 = vst [vmem:[#allocation1 + $0x10] ss:$2 sm:$0xff] %v3848_v1 }
  0x48   : > { %v3936_v61 = vld.sshfl [vmem:[#allocation1 + $0x30] sm:$0xff pattern:$0x75316420]  ;;  %v3938_v62 = vld.sshfl [vmem:[#allocation1 + $0x38] sm:$0xff pattern:$0x75316420] }
  0x49   : > { %5756 = vst [vmem:[#allocation7_spill] sm:$0xff] %v3936_v61  ;;  %678 = vrot.lane.b32.xlu0 %v659_v50, %s5734_s26  ;;  %672 = vrot.lane.b32.xlu2 %v656_v56, %s5734_s26  ;;  %v5744_v56 = vlaneseq }
  0x4a   : > { %5757 = vst [vmem:[#allocation8_spill] sm:$0xff] %v3938_v62  ;;  %v3943_v63 = vld.sshfl [vmem:[#allocation1] sm:$0xff pattern:$0x75316420] }
  0x4b   : > { %821 = vst [vmem:[#allocation1 + $0x30] ss:$2 sm:$0xff] %v3846_v0  ;;  %v3945_v4 = vld.sshfl [vmem:[#allocation1 + $0x8] sm:$0xff pattern:$0x75316420]  ;;  %674 = vrot.lane.b32.xlu1 %v657_v55, %s5734_s26 }
  0x4c   : > { %815 = vst [vmem:[#allocation1] ss:$2 sm:$0xff] %v3851_v2  ;;  %v3949_v8 = vld.sshfl [vmem:[#allocation1 + $0x20] sm:$0xff pattern:$0x75316420] }
  0x4d   : > { %5758 = vst [vmem:[#allocation9_spill] sm:$0xff] %v3949_v8  ;;  %v3951_v9 = vld.sshfl [vmem:[#allocation1 + $0x28] sm:$0xff pattern:$0x75316420] }
  0x4e   : > { %5759 = vst [vmem:[#allocation10_spill] sm:$0xff] %v3951_v9  ;;  %v824_v13 = vld.sshfl [vmem:[#allocation1 + $0x10] sm:$0xff pattern:$0x75316420] }
  0x4f   : > { %819 = vst [vmem:[#allocation1 + $0x20] ss:$2 sm:$0xff] %v3853_v3  ;;  %v825_v14 = vld.sshfl [vmem:[#allocation1 + $0x18] sm:$0xff pattern:$0x75316420] }
  0x50   : > { %910 = vst [vmem:[#allocation1 + $0x10] ss:$2 sm:$0xff] %v3848_v1 }
  0x51   : > { %676 = vrot.lane.b32.xlu2 %v658_v49, %s5734_s26 }
  0x52   : > { %v3955_v17 = vld.sshfl [vmem:[#allocation1 + $0x30] sm:$0xff pattern:$0x75316420]  ;;  %v3957_v19 = vld.sshfl [vmem:[#allocation1 + $0x38] sm:$0xff pattern:$0x75316420] }
  0x53   : > { %914 = vst [vmem:[#allocation1 + $0x30] ss:$2 sm:$0xff] %v3846_v0  ;;  %v823_v20 = vld.sshfl [vmem:[#allocation1 + $0x8] sm:$0xff pattern:$0x75316420] }
  0x54   : > { %v822_v21 = vld.sshfl [vmem:[#allocation1] sm:$0xff pattern:$0x75316420]  ;;  %840 = vrot.lane.b32.xlu1 %v823_v20, %s5736_s27 }
  0x55   : > { %838 = vrot.lane.b32.xlu0 %v822_v21, %s5736_s27  ;;  %908 = vst [vmem:[#allocation1] ss:$2 sm:$0xff] %v3851_v2 }
  0x56   : > { %v826_v24 = vld.sshfl [vmem:[#allocation1 + $0x20] sm:$0xff pattern:$0x75316420]  ;;  %v3964_v26 = vld.sshfl [vmem:[#allocation1 + $0x28] sm:$0xff pattern:$0x75316420] }
  0x57   : > { %912 = vst [vmem:[#allocation1 + $0x20] ss:$2 sm:$0xff] %v3853_v3  ;;  %v918_v27 = vld.sshfl [vmem:[#allocation1 + $0x18] sm:$0xff pattern:$0x75316420] }
  0x58   : > { %v917_v28 = vld.sshfl [vmem:[#allocation1 + $0x10] sm:$0xff pattern:$0x75316420] }
  0x59   : > { %1003 = vst [vmem:[#allocation1 + $0x10] ss:$2 sm:$0xff] %v3848_v1  ;;  %842 = vrot.lane.b32.xlu2 %v824_v13, %s5736_s27  ;;  %v4051_v13 = vand.u32 127, %v5744_v56 }
  0x5a   : > { %v3968_v29 = vld.sshfl [vmem:[#allocation1 + $0x30] sm:$0xff pattern:$0x75316420]  ;;  %v922_v30 = vld.sshfl [vmem:[#allocation1 + $0x38] sm:$0xff pattern:$0x75316420] }
  0x5b   : > { %1007 = vst [vmem:[#allocation1 + $0x30] ss:$2 sm:$0xff] %v3846_v0  ;;  %vm688_vm1 = vcmp.lt.s32.totalorder %v4051_v13, 1  ;;  %vm1133_vm2 = vcmp.lt.s32.totalorder %v4051_v13, 111  ;;  %vm854_vm3 = vcmp.lt.s32.totalorder %v4051_v13, 127  ;;  %vm1040_vm4 = vcmp.lt.s32.totalorder %v4051_v13, 112 }
  0x5c   : > { %v915_v31 = vld.sshfl [vmem:[#allocation1] sm:$0xff pattern:$0x75316420]  ;;  %v916_v33 = vld.sshfl [vmem:[#allocation1 + $0x8] sm:$0xff pattern:$0x75316420]  ;;  %846 = vrot.lane.b32.xlu1 %v826_v24, %s5736_s27 }
  0x5d   : > { %844 = vrot.lane.b32.xlu0 %v825_v14, %s5736_s27  ;;  %1001 = vst [vmem:[#allocation1] ss:$2 sm:$0xff] %v3851_v2  ;;  %vm947_vm5 = vcmp.lt.s32.totalorder %v4051_v13, 113  ;;  %vm409_vm7 = vcmp.lt.s32.totalorder %v4051_v13, 17  ;;  %vm502_vm8 = vcmp.lt.s32.totalorder %v4051_v13, 16  ;;  %vm595_vm9 = vcmp.lt.s32.totalorder %v4051_v13, 15 }
  0x5e   : > { %v919_v34 = vld.sshfl [vmem:[#allocation1 + $0x20] sm:$0xff pattern:$0x75316420]  ;;  %v920_v36 = vld.sshfl [vmem:[#allocation1 + $0x28] sm:$0xff pattern:$0x75316420] }
  0x5f   : > { %1005 = vst [vmem:[#allocation1 + $0x20] ss:$2 sm:$0xff] %v3853_v3  ;;  %v3448_v13 = vld [vmem:[%s5723_s6 + $0x130] sm:$0xff] }
  0x60   : > { %v1011_v37 = vld.sshfl [vmem:[#allocation1 + $0x18] sm:$0xff pattern:$0x75316420]  ;;  %v1010_v38 = vld.sshfl [vmem:[#allocation1 + $0x10] sm:$0xff pattern:$0x75316420] }
  0x61   : > { %1096 = vst [vmem:[#allocation1 + $0x10] ss:$2 sm:$0xff] %v3848_v1  ;;  %931 = vrot.lane.b32.xlu2 %v915_v31, %s5728_s28  ;;  %v3146_v31 = vld [vmem:[%s5718_s1 + $0x7] ss:$8 sm:$0xf] }
  0x62   : > { %v1014_v43 = vld.sshfl [vmem:[#allocation1 + $0x30] sm:$0xff pattern:$0x75316420]  ;;  %v1015_v45 = vld.sshfl [vmem:[#allocation1 + $0x38] sm:$0xff pattern:$0x75316420] }
  0x63   : > { %1100 = vst [vmem:[#allocation1 + $0x30] ss:$2 sm:$0xff] %v3846_v0 }
  0x64   : > { %v1008_v39 = vld.sshfl [vmem:[#allocation1] sm:$0xff pattern:$0x75316420]  ;;  %v1009_v40 = vld.sshfl [vmem:[#allocation1 + $0x8] sm:$0xff pattern:$0x75316420]  ;;  %937 = vrot.lane.b32.xlu1 %v918_v27, %s5728_s28 }
  0x65   : > { %935 = vrot.lane.b32.xlu0 %v917_v28, %s5728_s28  ;;  %1094 = vst [vmem:[#allocation1] ss:$2 sm:$0xff] %v3851_v2 }
  0x66   : > { %v1012_v41 = vld.sshfl [vmem:[#allocation1 + $0x20] sm:$0xff pattern:$0x75316420]  ;;  %v1013_v42 = vld.sshfl [vmem:[#allocation1 + $0x28] sm:$0xff pattern:$0x75316420] }
  0x67   : > { %1098 = vst [vmem:[#allocation1 + $0x20] ss:$2 sm:$0xff] %v3853_v3 }
  0x68   : > { %v1103_v3 = vld.sshfl [vmem:[#allocation1 + $0x10] sm:$0xff pattern:$0x75316420]  ;;  %v1104_v48 = vld.sshfl [vmem:[#allocation1 + $0x18] sm:$0xff pattern:$0x75316420] }
  0x69   : > { %933 = vrot.lane.b32.xlu2 %v916_v33, %s5728_s28  ;;  %v3147_v33 = vld [vmem:[%s5718_s1 + $0x7] ss:$8 sm:$0xf0] }
  0x6a   : > { %v1107_v53 = vld.sshfl [vmem:[#allocation1 + $0x30] sm:$0xff pattern:$0x75316420] }
  0x6c   : > { %1024 = vrot.lane.b32.xlu1 %v1008_v39, %s5738_s29  ;;  %v1101_v1 = vld.sshfl [vmem:[#allocation1] sm:$0xff pattern:$0x75316420]  ;;  %v1102_v2 = vld.sshfl [vmem:[#allocation1 + $0x8] sm:$0xff pattern:$0x75316420]  ;;  %v4142_v39 = vor.u32 %v3147_v33, %v3146_v31 }
  0x6d   : > { %1032 = vrot.lane.b32.xlu0 %v1012_v41, %s5738_s29 }
  0x6e   : > { %v1105_v47 = vld.sshfl [vmem:[#allocation1 + $0x20] sm:$0xff pattern:$0x75316420] }
  0x71   : > { %939 = vrot.lane.b32.xlu2 %v919_v34, %s5728_s28  ;;  %v3142_v34 = vld [vmem:[%s5718_s1 + $0x5] ss:$8 sm:$0xf] }
  0x74   : > { %1026 = vrot.lane.b32.xlu1 %v1009_v40, %s5738_s29 }
  0x75   : > { %1117 = vrot.lane.b32.xlu0 %v1101_v1, %s5740_s11  ;;  %v3138_v1 = vld [vmem:[%s5718_s1 + $0x3] ss:$8 sm:$0xf] }
  0x79   : > { %1030 = vrot.lane.b32.xlu2 %v1011_v37, %s5738_s29  ;;  %v3144_v37 = vld [vmem:[%s5718_s1 + $0x6] ss:$8 sm:$0xf] }
  0x7c   : > { %1028 = vrot.lane.b32.xlu1 %v1010_v38, %s5738_s29  ;;  %v3145_v38 = vld [vmem:[%s5718_s1 + $0x6] ss:$8 sm:$0xf0] }
  0x7d   : > { %1119 = vrot.lane.b32.xlu0 %v1102_v2, %s5740_s11  ;;  %v4159_v2 = vor.u32 %v3145_v38, %v3144_v37  ;;  %v3134_v37 = vld [vmem:[%s5718_s1 + $0x1] ss:$8 sm:$0xf]  ;;  %v418_v38 = vld [vmem:[%s5718_s1] ss:$8 sm:$0xf] }
  0x7f   : > { %v961_v31 = vperm.slane %v4159_v2, 0  ;;  %v962_v33 = vperm.slane %v4159_v2, 1 }
  0x81   : > { %1121 = vrot.lane.b32.xlu2 %v1103_v3, %s5740_s11  ;;  %v1054_v3 = vperm.slane %v4142_v39, 0 }
  0x83   : > { %v3997_v0 = vpop.permute.xlu2 %391 }
  0x84   : > { %1125 = vrot.lane.b32.xlu1 %v1105_v47, %s5740_s11  ;;  %v1055_v47 = vperm.slane %v4142_v39, 1 }
  0x85   : > { %1123 = vrot.lane.b32.xlu0 %v1104_v48, %s5740_s11 }
  0x89   : > { %490 = vrot.lane.b32.xlu2 %v3882_v15, %s5732_s21  ;;  %v1108_v15 = vld.sshfl [vmem:[#allocation1 + $0x38] sm:$0xff pattern:$0x75316420] }
  0x8c   : > { %488 = vrot.lane.b32.xlu1 %v3891_v22, %s5732_s21 }
  0x8d   : > { %585 = vrot.lane.b32.xlu0 %v3900_v32, %s5742_s25  ;;  %v1106_v32 = vld.sshfl [vmem:[#allocation1 + $0x28] sm:$0xff pattern:$0x75316420] }
  0x91   : > { %395 = vrot.lane.b32.xlu2 %v3861_v6, %s5730_s30 }
  0x93   : > { %v4009_v49 = vpop.permute.xlu2 %593 }
  0x94   : > { %393 = vrot.lane.b32.xlu1 %v3870_v10, %s5730_s30 }
  0x95   : > { %492 = vrot.lane.b32.xlu0 %v3884_v16, %s5732_s21 }
  0x98   : > { %v4017_v6 = vpop.permute.xlu0 %405 }
  0x99   : > { %1038 = vrot.lane.b32.xlu2 %v1015_v45, %s5738_s29  ;;  %v3139_v45 = vld [vmem:[%s5718_s1 + $0x3] ss:$8 sm:$0xf0] }
  0x9a   : > { %v4185_v56 = vor.u32 %v3139_v45, %v3138_v1 }
  0x9b   : > { %v4015_v22 = vpop.permute.xlu2 %583 }
  0x9c   : > { %1131 = vrot.lane.b32.xlu1 %v1108_v15, %s5740_s11 }
  0x9d   : > { %397 = vrot.lane.b32.xlu0 %v3863_v7, %s5730_s30 }
  0xa1   : > { %1127 = vrot.lane.b32.xlu2 %v1106_v32, %s5740_s11 }
  0xa2   : > { %v4023_v10 = vpop.permute.xlu1 %500 }
  0xa3   : > { %v4025_v16 = vpop.permute.xlu2 %672 }
  0xa4   : > { %852 = vrot.lane.b32.xlu1 %v3957_v19, %s5736_s27  ;;  %v4028_v50 = vpop.permute.xlu0 %486 }
  0xa5   : > { %945 = vrot.lane.b32.xlu0 %v922_v30, %s5728_s28 }
  0xa9   : > { %941 = vrot.lane.b32.xlu2 %v920_v36, %s5728_s28  ;;  %v3143_v36 = vld [vmem:[%s5718_s1 + $0x5] ss:$8 sm:$0xf0] }
  0xab   : > { %v4033_v7 = vpop.permute.xlu2 %676 }
  0xac   : > { %684 = vrot.lane.b32.xlu1 %v3921_v52, %s5734_s26 }
  0xad   : > { %1034 = vrot.lane.b32.xlu0 %v1013_v42, %s5738_s29  ;;  %v4035_v51 = vpop.permute.xlu1 %579 }
  0xb1   : > { %1129 = vrot.lane.b32.xlu2 %v1107_v53, %s5740_s11 }
  0xb3   : > { %v4042_v54 = vpop.permute.xlu0 %686  ;;  %v4044_v55 = vpop.permute.xlu2 %842 }
  0xb4   : > { %848 = vrot.lane.b32.xlu1 %v3964_v26, %s5736_s27 }
  0xb5   : > { %591 = vrot.lane.b32.xlu0 %v3903_v35, %s5742_s25  ;;  %v4046_v52 = vpop.permute.xlu1 %581 }
  0xb9   : > { %403 = vrot.lane.b32.xlu2 %v3858_v5, %s5730_s30 }
  0xbb   : > { %v4056_v14 = vpop.permute.xlu0 %678  ;;  %v4058_v35 = vpop.permute.xlu2 %931 }
  0xbc   : > { %1036 = vrot.lane.b32.xlu1 %v1014_v43, %s5738_s29  ;;  %v4153_v43 = vor.u32 %v3143_v36, %v3142_v34 }
  0xbd   : > { %498 = vrot.lane.b32.xlu0 %v3888_v18, %s5732_s21  ;;  %v4061_v19 = vpop.permute.xlu1 %674 }
  0xbe   : > { %v4067_v5 = vsel %vm688_vm1, %v4061_v19, %v4033_v7  ;;  %v868_v1 = vperm.slane %v4153_v43, 0 }
  0xc1   : > { %587 = vrot.lane.b32.xlu2 %v3912_v44, %s5742_s25 }
  0xc3   : > { %v934_v18 = vpop.permute.xlu2 %933 }
  0xc4   : > { %943 = vrot.lane.b32.xlu1 %v3968_v29, %s5728_s28  ;;  %s5767_s28 = smov 112  }
  0xc5   : > { %680 = vrot.lane.b32.xlu0 %v3927_v57, %s5734_s26 }
  0xc6   : > { %v4075_v20 = vpop.permute.xlu1 %840 }
  0xc7   : > { %v4077_v21 = vpop.permute.xlu0 %838  ;;  %v860_v9 = vsel %vm854_vm3, %v4075_v20, %v4044_v55 }
  0xc9   : > { %399 = vrot.lane.b32.xlu2 %v3873_v11, %s5730_s30 }
  0xcb   : > { %v4085_v44 = vpop.permute.xlu2 %939 }
  0xcc   : > { %494 = vrot.lane.b32.xlu1 %v3894_v23, %s5732_s21 }
  0xcd   : > { %850 = vrot.lane.b32.xlu0 %v3955_v17, %s5736_s27 }
  0xce   : > { %v4087_v24 = vpop.permute.xlu1 %846 }
  0xcf   : > { %v4089_v26 = vpop.permute.xlu0 %844 }
  0xd1   : > { %496 = vrot.lane.b32.xlu2 %v3897_v25, %s5732_s21  ;;  %s5770_s21 = smov 16  }
  0xd3   : > { %v4097_v11 = vpop.permute.xlu2 %1030 }
  0xd4   : > { %589 = vrot.lane.b32.xlu1 %v3915_v46, %s5742_s25  ;;  %v3148_v46 = vld [vmem:[%s5718_s1 + $0x40] ss:$8 sm:$0xf]  ;;  %s5772_s25 = smov 113  }
  0xd5   : > { %682 = vrot.lane.b32.xlu0 %v3929_v58, %s5734_s26  ;;  %v3149_v58 = vld [vmem:[%s5718_s1 + $0x40] ss:$8 sm:$0xf0] }
  0xd6   : > { %v4099_v23 = vpop.permute.xlu1 %937 }
  0xd7   : > { %v4101_v57 = vpop.permute.xlu0 %935 }
  0xdb   : > { %v4105_v17 = vpop.permute.xlu2 %1121 }
  0xdd   : > { %401 = vrot.lane.b32.xlu0 %v3876_v12, %s5730_s30  ;;  %v4121_v12 = vor.u32 %v3149_v58, %v3148_v46  ;;  %s5769_s30 = smov 1  }
  0xde   : > { %v4109_v25 = vpop.permute.xlu1 %1024 }
  0xdf   : > { %v4107_v27 = vpop.permute.xlu0 %1032  ;;  %v1147_v41 = vperm.slane %v4121_v12, 0  ;;  %v1148_v42 = vperm.slane %v4121_v12, 1 }
  0xe3   : > { %v4111_v28 = vpop.permute.xlu2 %490 }
  0xe6   : > { %v1027_v29 = vpop.permute.xlu1 %1026 }
  0xe7   : > { %v4119_v30 = vpop.permute.xlu0 %1117  ;;  %v1047_v32 = vsel %vm1040_vm4, %v4109_v25, %v1027_v29 }
  0xe8   : > { %v1070_v45 = vmul.f32 %v1054_v3, %v1047_v32  ;;  %v861_v3 = vsel %vm854_vm3, %v4077_v21, %v4075_v20  ;;  %v703_v20 = vperm.slane %v4185_v56, 1 }
  0xeb   : > { %v4144_v40 = vpop.permute.xlu2 %395 }
  0xee   : > { %v1029_v48 = vpop.permute.xlu1 %1028 }
  0xef   : > { %v1120_v15 = vpop.permute.xlu0 %1119  ;;  %v1046_v53 = vsel %vm1040_vm4, %v1027_v29, %v1029_v48  ;;  %v3135_v29 = vld [vmem:[%s5718_s1 + $0x1] ss:$8 sm:$0xf0] }
  0xf0   : > { %v1139_v46 = vsel %vm1133_vm2, %v1120_v15, %v4105_v17  ;;  %v1140_v58 = vsel %vm1133_vm2, %v4119_v30, %v1120_v15  ;;  %v954_v15 = vsel %vm947_vm5, %v4058_v35, %v934_v18  ;;  %v1071_v61 = vmul.f32 %v1055_v47, %v1046_v53 }
  0xf1   : > { %v1163_v34 = vmul.f32 %v1147_v41, %v1140_v58  ;;  %v1164_v36 = vmul.f32 %v1148_v42, %v1139_v46  ;;  %v953_v41 = vsel %vm947_vm5, %v934_v18, %v4101_v57  ;;  %v3136_v42 = vld [vmem:[%s5718_s1 + $0x2] ss:$8 sm:$0xf]  ;;  %v869_v58 = vperm.slane %v4153_v43, 1 }
  0xf2   : > { %v3137_v46 = vld [vmem:[%s5718_s1 + $0x2] ss:$8 sm:$0xf0]  ;;  %v419_v18 = vld [vmem:[%s5718_s1] ss:$8 sm:$0xf0]  ;;  %v977_v47 = vmul.f32 %v961_v31, %v954_v15  ;;  %v978_v32 = vmul.f32 %v962_v33, %v953_v41  ;;  %v4224_v8 = vor.u32 %v3135_v29, %v3134_v37  ;;  %v884_v33 = vmul.f32 %v868_v1, %v861_v3 }
  0xf3   : > { %3466 = vmatpush.msk.msra.mxu3 %vm446_vm6, %v1163_v34  ;;  %3475 = vmatpush.msk.msra.mxu1 %vm446_vm6, %v1164_v36  ;;  %v4218_v53 = vpop.permute.xlu2 %1038  ;;  %v1149_v34 = vperm.slane %v4121_v12, 2  ;;  %v4221_v36 = vor.u32 %v3137_v46, %v3136_v42  ;;  %v4226_v62 = vor.u32 %v419_v18, %v418_v38  ;;  %v885_v31 = vmul.f32 %v869_v58, %v860_v9  ;;  %v1260_v42 = vld [vmem:[%s5720_s3] sm:$0x7] }
  0xf4   : > { %v702_v41 = vperm.slane %v4185_v56, 0  ;;  %v696_v37 = vsel %vm688_vm1, %v4042_v54, %v4025_v16  ;;  %v695_v9 = vsel %vm688_vm1, %v4025_v16, %v4061_v19  ;;  %v1056_v29 = vperm.slane %v4142_v39, 2 }
  0xf5   : > { %3467 = vmatpush.msk.msra.mxu3 %vm446_vm6, %v1070_v45  ;;  %3476 = vmatpush.msk.msra.mxu1 %vm446_vm6, %v1071_v61  ;;  %v3738_v46 = vmov 0   ;;  %v1045_v58 = vsel %vm1040_vm4, %v1029_v48, %v4097_v11  ;;  %v609_v16 = vperm.slane %v4221_v36, 0  ;;  %v610_v19 = vperm.slane %v4221_v36, 1 }
  0xf6   : > { %v1126_v15 = vpop.permute.xlu1 %1125  ;;  %3658 = vset.pattern.permute.xlu1 %v3738_v46  ;;  %3659 = vset.pattern.permute.xlu0 %v3738_v46  ;;  %v602_v45 = vsel %vm595_vm9, %v4035_v51, %v4046_v52  ;;  %v963_v48 = vperm.slane %v4159_v2, 2  ;;  %v516_v18 = vperm.slane %v4224_v8, 0  ;;  %v719_v3 = vmul.f32 %v703_v20, %v695_v9 }
  0xf7   : > { %3468 = vmatpush.msk.msra.mxu3 %vm446_vm6, %v977_v47  ;;  %3477 = vmatpush.msk.msra.mxu1 %vm446_vm6, %v978_v32  ;;  %v1124_v61 = vpop.permute.xlu0 %1123  ;;  %v952_v47 = vsel %vm947_vm5, %v4101_v57, %v4099_v23  ;;  %v718_v32 = vmul.f32 %v702_v41, %v696_v37  ;;  %v870_v20 = vperm.slane %v4153_v43, 2  ;;  %v422_v57 = vperm.slane %v4226_v62, 0 }
  0xf8   : > { %v1138_v38 = vsel %vm1133_vm2, %v4105_v17, %v1124_v61  ;;  %v603_v17 = vsel %vm595_vm9, %v4009_v49, %v4035_v51  ;;  %1263 = vperm.xlu1 %3658, %v1260_v42   ;;  %v1151_v51 = vperm.slane %v4121_v12, 4  ;;  %v626_v42 = vmul.f32 %v610_v19, %v602_v45 }
  0xf9   : > { %3469 = vmatpush.msk.msra.mxu3 %vm446_vm6, %v884_v33  ;;  %3478 = vmatpush.msk.msra.mxu1 %vm446_vm6, %v885_v31  ;;  %v1165_v1 = vmul.f32 %v1149_v34, %v1138_v38  ;;  %v510_v34 = vsel %vm502_vm8, %v4023_v10, %v4028_v50  ;;  %v1072_v31 = vmul.f32 %v1056_v29, %v1045_v58  ;;  %v517_v33 = vperm.slane %v4224_v8, 1 }
  0xfa   : > { %v625_v41 = vmul.f32 %v609_v16, %v603_v17  ;;  %v417_v37 = vsel %vm409_vm7, %v4017_v6, %v3997_v0  ;;  %v979_v9 = vmul.f32 %v963_v48, %v952_v47  ;;  %v1150_v29 = vperm.slane %v4121_v12, 3 }
  0xfb   : > { %3470 = vmatpush.msk.msra.mxu3 %vm446_vm6, %v3943_v63  ;;  %3479 = vmatpush.msk.msra.mxu1 %vm446_vm6, %v3945_v4  ;;  %v859_v63 = vsel %vm854_vm3, %v4044_v55, %v4089_v26  ;;  %v4286_v4 = vpop.permute.xlu2 %1127  ;;  %v704_v38 = vperm.slane %v4185_v56, 2  ;;  %v1137_v46 = vsel %vm1133_vm2, %v1124_v61, %v1126_v15  ;;  %v532_v16 = vmul.f32 %v516_v18, %v510_v34 }
  0xfc   : > { %3484 = vmatpush.msk.msra.mxu2 %vm446_vm6, %v1165_v1  ;;  %v1136_v55 = vsel %vm1133_vm2, %v1126_v15, %v4286_v4  ;;  %v886_v17 = vmul.f32 %v870_v20, %v859_v63  ;;  %v1057_v45 = vperm.slane %v4142_v39, 3  ;;  %v1044_v15 = vsel %vm1040_vm4, %v4097_v11, %v4107_v27 }
  0xfd   : > { %3471 = vmatpush.msk.msra.mxu3 %vm446_vm6, %v718_v32  ;;  %3480 = vmatpush.msk.msra.mxu1 %vm446_vm6, %v719_v3  ;;  %v1167_v19 = vmul.f32 %v1151_v51, %v1136_v55  ;;  %v438_v3 = vmul.f32 %v422_v57, %v417_v37  ;;  %v964_v18 = vperm.slane %v4159_v2, 3  ;;  %v1166_v47 = vmul.f32 %v1150_v29, %v1137_v46 }
  0xfe   : > { %3485 = vmatpush.msk.msra.mxu2 %vm446_vm6, %v1072_v31  ;;  %v489_v58 = vpop.permute.xlu1 %488  ;;  %v601_v32 = vsel %vm595_vm9, %v4046_v52, %v4015_v22  ;;  %v720_v11 = vmul.f32 %v704_v38, %v4067_v5  ;;  %v871_v51 = vperm.slane %v4153_v43, 3  ;;  %v951_v34 = vsel %vm947_vm5, %v4099_v23, %v4085_v44  ;;  %v4342_v5 = vld [vmem:[%s5760_s2] sm:$0x7] }
  0xff   : > { %3472 = vmatpush.msk.msra.mxu3 %vm446_vm6, %v625_v41  ;;  %3481 = vmatpush.msk.msra.mxu1 %vm446_vm6, %v626_v42  ;;  %v4303_v1 = vpop.permute.xlu0 %585  ;;  %v509_v48 = vsel %vm502_vm8, %v4028_v50, %v489_v58  ;;  %v611_v50 = vperm.slane %v4221_v36, 2  ;;  %v858_v20 = vsel %vm854_vm3, %v4089_v26, %v4087_v24  ;;  %v1073_v31 = vmul.f32 %v1057_v45, %v1044_v15 }
 0x100   : > { %3486 = vmatpush.msk.msra.mxu2 %vm446_vm6, %v979_v9  ;;  %v533_v61 = vmul.f32 %v517_v33, %v509_v48  ;;  %3502 = vmatpush.msk.msra.mxu0 %vm446_vm6, %v1167_v19  ;;  %v518_v52 = vperm.slane %v4224_v8, 2  ;;  %v508_v23 = vsel %vm502_vm8, %v489_v58, %v4111_v28  ;;  %v423_v26 = vperm.slane %v4226_v62, 1 }
 0x101   : > { %3473 = vmatpush.msk.msra.mxu3 %vm446_vm6, %v532_v16  ;;  %v424_v63 = vperm.slane %v4226_v62, 2  ;;  %v627_v33 = vmul.f32 %v611_v50, %v601_v32  ;;  %v887_v41 = vmul.f32 %v871_v51, %v858_v20  ;;  %v705_v38 = vperm.slane %v4185_v56, 3 }
 0x102   : > { %3487 = vmatpush.msk.msra.mxu2 %vm446_vm6, %v886_v17  ;;  %3482 = vmatpush.msk.msra.mxu1 %vm446_vm6, %v533_v61  ;;  %v534_v9 = vmul.f32 %v518_v52, %v508_v23  ;;  %v693_v16 = vsel %vm688_vm1, %v4033_v7, %v4056_v14  ;;  %v612_v19 = vperm.slane %v4221_v36, 3  ;;  %v600_v17 = vsel %vm595_vm9, %v4015_v22, %v4303_v1 }
 0x103   : > { %3474 = vmatpush.msk.msra.mxu3 %vm446_vm6, %v438_v3  ;;  %v4347_v57 = vpop.permute.xlu2 %941  ;;  %v519_v45 = vperm.slane %v4224_v8, 3  ;;  %v721_v7 = vmul.f32 %v705_v38, %v693_v16  ;;  %v1153_v61 = vperm.slane %v4121_v12, 6  ;;  %v425_v22 = vperm.slane %v4226_v62, 3  ;;  %v5761_v38 = vld [vmem:[#allocation8_spill] sm:$0xff] }
 0x104   : > { %3488 = vmatpush.msk.msra.mxu2 %vm446_vm6, %v3931_v59  ;;  %3150 = vmatmul.msk.f32.vlgmr.msra.gmra.mxu3 %vm1266_vm10, %v4342_v5  ;;  %v980_v59 = vmul.f32 %v964_v18, %v951_v34  ;;  %v628_v18 = vmul.f32 %v612_v19, %v600_v17  ;;  %v1154_v32 = vperm.slane %v4121_v12, 7  ;;  %v875_v23 = vperm.slane %v4153_v43, 7 }
 0x105   : > { %3493 = vmatpush.msk.msrb.mxu3 %vm446_vm6, %v1166_v47  ;;  %v616_v17 = vperm.slane %v4221_v36, 7 }
 0x106   : > { %3489 = vmatpush.msk.msra.mxu2 %vm446_vm6, %v720_v11  ;;  %v394_v42 = vpop.permute.xlu1 %393 }
 0x107   : > { %3494 = vmatpush.msk.msrb.mxu3 %vm446_vm6, %v1073_v31  ;;  %v4355_v37 = vpop.permute.xlu0 %492  ;;  %v415_v29 = vsel %vm409_vm7, %v394_v42, %v4144_v40  ;;  %v416_v55 = vsel %vm409_vm7, %v3997_v0, %v394_v42  ;;  %v1152_v0 = vperm.slane %v4121_v12, 5  ;;  %v1061_v12 = vperm.slane %v4142_v39, 7 }
 0x108   : > { %3490 = vmatpush.msk.msra.mxu2 %vm446_vm6, %v627_v33  ;;  %v439_v46 = vmul.f32 %v423_v26, %v416_v55  ;;  %v440_v58 = vmul.f32 %v424_v63, %v415_v29  ;;  %v507_v48 = vsel %vm502_vm8, %v4111_v28, %v4355_v37  ;;  %v1048_v31 = vsel %vm1040_vm4, %v4218_v53, %v4109_v25 }
 0x109   : > { %3495 = vmatpush.msk.msrb.mxu3 %vm446_vm6, %v980_v59  ;;  %v1077_v52 = vmul.f32 %v1061_v12, %v1048_v31  ;;  %v709_v42 = vperm.slane %v4185_v56, 7  ;;  %v965_v29 = vperm.slane %v4159_v2, 4  ;;  %v966_v12 = vperm.slane %v4159_v2, 5 }
 0x10a   : > { %3491 = vmatpush.msk.msra.mxu2 %vm446_vm6, %v534_v9  ;;  %3483 = vmatpush.msk.msra.mxu1 %vm446_vm6, %v439_v46  ;;  %v1058_v9 = vperm.slane %v4142_v39, 4  ;;  %v706_v31 = vperm.slane %v4185_v56, 4 }
 0x10b   : > { %3496 = vmatpush.msk.msrb.mxu3 %vm446_vm6, %v887_v41  ;;  %3151 = vmatmul.msk.f32.vlgmr.msra.gmra.mxu1 %vm1266_vm10, %v4342_v5  ;;  %v1130_v15 = vpop.permute.xlu2 %1129 }
 0x10c   : > { %3492 = vmatpush.msk.msra.mxu2 %vm446_vm6, %v440_v58  ;;  %v1135_v3 = vsel %vm1133_vm2, %v4286_v4, %v1130_v15 }
 0x10d   : > { %3497 = vmatpush.msk.msrb.mxu3 %vm446_vm6, %v3933_v60  ;;  %3152 = vmatmul.msk.f32.vlgmr.msra.gmra.mxu2 %vm1266_vm10, %v4342_v5  ;;  %v1168_v47 = vmul.f32 %v1152_v0, %v1135_v3  ;;  %v535_v60 = vmul.f32 %v519_v45, %v507_v48  ;;  %v1060_v3 = vperm.slane %v4142_v39, 6 }
 0x10e   : > { %v1132_v28 = vpop.permute.xlu1 %1131 }
 0x10f   : > { %3498 = vmatpush.msk.msrb.mxu3 %vm446_vm6, %v721_v7  ;;  %v4397_v50 = vpop.permute.xlu0 %397  ;;  %v1134_v11 = vsel %vm1133_vm2, %v1130_v15, %v1132_v28  ;;  %v1141_v4 = vsel %vm1133_vm2, %v1132_v28, %v4119_v30  ;;  %3511 = vmatpush.msk.msrb.mxu1 %vm446_vm6, %v1168_v47  ;;  %v968_v30 = vperm.slane %v4159_v2, 7 }
 0x110   : > { %v414_v51 = vsel %vm409_vm7, %v4144_v40, %v4397_v50  ;;  %v1169_v34 = vmul.f32 %v1153_v61, %v1134_v11  ;;  %v1170_v40 = vmul.f32 %v1154_v32, %v1141_v4 }
 0x111   : > { %v441_v20 = vmul.f32 %v425_v22, %v414_v51  ;;  %3499 = vmatpush.msk.msrb.mxu3 %vm446_vm6, %v628_v18  ;;  %v1059_v22 = vperm.slane %v4142_v39, 5  ;;  %v523_v18 = vperm.slane %v4224_v8, 7 }
 0x112   : > { %3520 = vmatpush.msk.msrb.mxu2 %vm446_vm6, %v1169_v34 }
 0x113   : > { %3500 = vmatpush.msk.msrb.mxu3 %vm446_vm6, %v535_v60  ;;  %v4471_v48 = vpop.permute.xlu2 %403 }
 0x114   : > { %v410_v11 = vsel %vm409_vm7, %v4471_v48, %v4017_v6  ;;  %v613_v6 = vperm.slane %v4221_v36, 4 }
 0x115   : > { %3501 = vmatpush.msk.msrb.mxu3 %vm446_vm6, %v441_v20 }
 0x116   : > { %v4422_v26 = vpop.permute.xlu1 %852  ;;  %3153 = vmatmul.msk.f32.vlgmr.msrb.gmra.mxu3 %vm1266_vm10, %v4342_v5 }
 0x117   : > { %3529 = vmatpush.msk.msra.mxu3 %vm446_vm6, %v1170_v40  ;;  %v4424_v63 = vpop.permute.xlu0 %945  ;;  %v862_v25 = vsel %vm854_vm3, %v4422_v26, %v4077_v21 }
 0x118   : > { %v955_v59 = vsel %vm947_vm5, %v4424_v63, %v4058_v35  ;;  %v891_v41 = vmul.f32 %v875_v23, %v862_v25  ;;  %v950_v35 = vsel %vm947_vm5, %v4085_v44, %v4347_v57  ;;  %v872_v44 = vperm.slane %v4153_v43, 4 }
 0x119   : > { %3530 = vmatpush.msk.msra.mxu3 %vm446_vm6, %v1077_v52  ;;  %v984_v33 = vmul.f32 %v968_v30, %v955_v59  ;;  %v981_v0 = vmul.f32 %v965_v29, %v950_v35 }
 0x11b   : > { %3531 = vmatpush.msk.msra.mxu3 %vm446_vm6, %v984_v33  ;;  %v588_v20 = vpop.permute.xlu2 %587 }
 0x11c   : > { %v599_v52 = vsel %vm595_vm9, %v4303_v1, %v588_v20 }
 0x11d   : > { %3532 = vmatpush.msk.msra.mxu3 %vm446_vm6, %v891_v41 }
 0x11e   : > { %v4442_v21 = vpop.permute.xlu1 %684 }
 0x11f   : > { %v1035_v55 = vpop.permute.xlu0 %1034  ;;  %3533 = vmatpush.msk.msra.mxu3 %vm446_vm6, %v5761_v38  ;;  %v689_v46 = vsel %vm688_vm1, %v4442_v21, %v4042_v54 }
 0x120   : > { %v1043_v58 = vsel %vm1040_vm4, %v4107_v27, %v1035_v55  ;;  %v725_v16 = vmul.f32 %v709_v42, %v689_v46  ;;  %v629_v42 = vmul.f32 %v613_v6, %v599_v52 }
 0x121   : > { %v1074_v19 = vmul.f32 %v1058_v9, %v1043_v58  ;;  %v874_v9 = vperm.slane %v4153_v43, 6 }
 0x122   : > { %3534 = vmatpush.msk.msra.mxu3 %vm446_vm6, %v725_v16 }
 0x123   : > { %3503 = vmatpush.msk.msra.mxu0 %vm446_vm6, %v1074_v19  ;;  %v400_v1 = vpop.permute.xlu2 %399 }
 0x124   : > { %v413_v38 = vsel %vm409_vm7, %v4397_v50, %v400_v1  ;;  %v708_v50 = vperm.slane %v4185_v56, 6 }
 0x125   : > { %3504 = vmatpush.msk.msra.mxu0 %vm446_vm6, %v981_v0 }
 0x126   : > { %v849_v45 = vpop.permute.xlu1 %848 }
 0x127   : > { %v4462_v7 = vpop.permute.xlu0 %591  ;;  %v857_v54 = vsel %vm854_vm3, %v4087_v24, %v849_v45  ;;  %v5762_v24 = vld [vmem:[#allocation9_spill] sm:$0xff] }
 0x128   : > { %v596_v27 = vsel %vm595_vm9, %v4462_v7, %v4009_v49  ;;  %v888_v15 = vmul.f32 %v872_v44, %v857_v54  ;;  %v429_v49 = vperm.slane %v4226_v62, 7  ;;  %v615_v54 = vperm.slane %v4221_v36, 6 }
 0x129   : > { %v632_v61 = vmul.f32 %v616_v17, %v596_v27  ;;  %v5764_v17 = vld [vmem:[#allocation7_spill] sm:$0xff] }
 0x12a   : > { %3505 = vmatpush.msk.msra.mxu0 %vm446_vm6, %v888_v15 }
 0x12b   : > { %3535 = vmatpush.msk.msra.mxu3 %vm446_vm6, %v632_v61  ;;  %v497_v44 = vpop.permute.xlu2 %496 }
 0x12c   : > { %3506 = vmatpush.msk.msra.mxu0 %vm446_vm6, %v5762_v24 }
 0x12e   : > { %v1037_v47 = vpop.permute.xlu1 %1036 }
 0x12f   : > { %v4480_v28 = vpop.permute.xlu0 %498  ;;  %v1041_v60 = vsel %vm1040_vm4, %v1037_v47, %v4218_v53  ;;  %v1042_v32 = vsel %vm1040_vm4, %v1035_v55, %v1037_v47  ;;  %v445_v53 = vmul.f32 %v429_v49, %v410_v11  ;;  %v428_v11 = vperm.slane %v4226_v62, 6 }
 0x130   : > { %v503_v39 = vsel %vm502_vm8, %v4480_v28, %v4023_v10  ;;  %v1075_v51 = vmul.f32 %v1059_v22, %v1042_v32  ;;  %v1076_v4 = vmul.f32 %v1060_v3, %v1041_v60  ;;  %v967_v10 = vperm.slane %v4159_v2, 6 }
 0x131   : > { %v539_v34 = vmul.f32 %v523_v18, %v503_v39  ;;  %v522_v18 = vperm.slane %v4224_v8, 6 }
 0x132   : > { %3512 = vmatpush.msk.msrb.mxu1 %vm446_vm6, %v1075_v51  ;;  %3521 = vmatpush.msk.msrb.mxu2 %vm446_vm6, %v1076_v4 }
 0x133   : > { %3536 = vmatpush.msk.msra.mxu3 %vm446_vm6, %v539_v34 }
 0x135   : > { %3537 = vmatpush.msk.msra.mxu3 %vm446_vm6, %v445_v53 }
 0x136   : > { %3157 = vmatmul.msk.f32.vlgmr.msra.gmra.mxu3 %vm1266_vm10, %v4342_v5  ;;  %v944_v40 = vpop.permute.xlu1 %943 }
 0x137   : > { %v681_v30 = vpop.permute.xlu0 %680  ;;  %v948_v23 = vsel %vm947_vm5, %v944_v40, %v4424_v63  ;;  %v949_v2 = vsel %vm947_vm5, %v4347_v57, %v944_v40  ;;  %v520_v63 = vperm.slane %v4224_v8, 4  ;;  %v873_v57 = vperm.slane %v4153_v43, 5 }
 0x138   : > { %v692_v25 = vsel %vm688_vm1, %v4056_v14, %v681_v30  ;;  %v982_v59 = vmul.f32 %v966_v12, %v949_v2  ;;  %v983_v33 = vmul.f32 %v967_v10, %v948_v23  ;;  %v426_v14 = vperm.slane %v4226_v62, 4 }
 0x139   : > { %v722_v41 = vmul.f32 %v706_v31, %v692_v25 }
 0x13a   : > { %3513 = vmatpush.msk.msrb.mxu1 %vm446_vm6, %v982_v59  ;;  %3522 = vmatpush.msk.msrb.mxu2 %vm446_vm6, %v983_v33  ;;  %v442_v0 = vmul.f32 %v426_v14, %v413_v38  ;;  %v3173_v14 = vld [vmem:[%s5718_s1 + $0x40] ss:$8 sm:$0xf0] }
 0x13b   : > { %3507 = vmatpush.msk.msra.mxu0 %vm446_vm6, %v722_v41 }
 0x13d   : > { %3508 = vmatpush.msk.msra.mxu0 %vm446_vm6, %v629_v42 }
 0x13e   : > { %v495_v29 = vpop.permute.xlu1 %494 }
 0x13f   : > { %v851_v55 = vpop.permute.xlu0 %850  ;;  %v506_v35 = vsel %vm502_vm8, %v4355_v37, %v495_v29  ;;  %v707_v37 = vperm.slane %v4185_v56, 5  ;;  %v505_v49 = vsel %vm502_vm8, %v495_v29, %v497_v44 }
 0x140   : > { %v855_v46 = vsel %vm854_vm3, %v851_v55, %v4422_v26  ;;  %v856_v58 = vsel %vm854_vm3, %v849_v45, %v851_v55  ;;  %v536_v43 = vmul.f32 %v520_v63, %v506_v35  ;;  %v5763_v26 = vld [vmem:[#allocation10_spill] sm:$0xff]  ;;  %v614_v45 = vperm.slane %v4221_v36, 5 }
 0x141   : > { %v889_v16 = vmul.f32 %v873_v57, %v856_v58  ;;  %v890_v19 = vmul.f32 %v874_v9, %v855_v46  ;;  %v521_v36 = vperm.slane %v4224_v8, 5  ;;  %v427_v8 = vperm.slane %v4226_v62, 5  ;;  %v3172_v9 = vld [vmem:[%s5718_s1 + $0x40] ss:$8 sm:$0xf] }
 0x142   : > { %3509 = vmatpush.msk.msra.mxu0 %vm446_vm6, %v536_v43  ;;  %v4687_v55 = vor.u32 %v3173_v14, %v3172_v9 }
 0x143   : > { %3514 = vmatpush.msk.msrb.mxu1 %vm446_vm6, %v889_v16  ;;  %3523 = vmatpush.msk.msrb.mxu2 %vm446_vm6, %v890_v19  ;;  %v537_v39 = vmul.f32 %v521_v36, %v505_v49 }
 0x144   : > { %3510 = vmatpush.msk.msra.mxu0 %vm446_vm6, %v442_v0  ;;  %v1987_v35 = vperm.slane %v4687_v55, 1 }
 0x145   : > { %3515 = vmatpush.msk.msrb.mxu1 %vm446_vm6, %v5763_v26  ;;  %3154 = vmatmul.msk.f32.vlgmr.msra.gmra.mxu0 %vm1266_vm10, %v4342_v5 }
 0x146   : > { %3524 = vmatpush.msk.msrb.mxu2 %vm446_vm6, %v5764_v17  ;;  %v590_v27 = vpop.permute.xlu1 %589 }
 0x147   : > { %v683_v15 = vpop.permute.xlu0 %682  ;;  %v597_v56 = vsel %vm595_vm9, %v590_v27, %v4462_v7  ;;  %v598_v61 = vsel %vm595_vm9, %v588_v20, %v590_v27  ;;  %v504_v7 = vsel %vm502_vm8, %v497_v44, %v4480_v28 }
 0x148   : > { %v690_v22 = vsel %vm688_vm1, %v683_v15, %v4442_v21  ;;  %v691_v3 = vsel %vm688_vm1, %v681_v30, %v683_v15  ;;  %v630_v60 = vmul.f32 %v614_v45, %v598_v61  ;;  %v631_v32 = vmul.f32 %v615_v54, %v597_v56 }
 0x149   : > { %v723_v24 = vmul.f32 %v707_v37, %v691_v3  ;;  %v724_v47 = vmul.f32 %v708_v50, %v690_v22  ;;  %v538_v21 = vmul.f32 %v522_v18, %v504_v7 }
 0x14b   : > { %3516 = vmatpush.msk.msrb.mxu1 %vm446_vm6, %v723_v24  ;;  %3525 = vmatpush.msk.msrb.mxu2 %vm446_vm6, %v724_v47 }
 0x14d   : > { %3517 = vmatpush.msk.msrb.mxu1 %vm446_vm6, %v630_v60  ;;  %3526 = vmatpush.msk.msrb.mxu2 %vm446_vm6, %v631_v32 }
 0x14f   : > { %3518 = vmatpush.msk.msrb.mxu1 %vm446_vm6, %v537_v39  ;;  %3527 = vmatpush.msk.msrb.mxu2 %vm446_vm6, %v538_v21  ;;  %v402_v28 = vpop.permute.xlu0 %401 }
 0x150   : > { %v411_v51 = vsel %vm409_vm7, %v402_v28, %v4471_v48  ;;  %v412_v4 = vsel %vm409_vm7, %v400_v1, %v402_v28  ;;  %v3170_v28 = vld [vmem:[%s5718_s1 + $0x7] ss:$8 sm:$0xf] }
 0x151   : > { %v443_v34 = vmul.f32 %v427_v8, %v412_v4  ;;  %v444_v20 = vmul.f32 %v428_v11, %v411_v51  ;;  %v3171_v51 = vld [vmem:[%s5718_s1 + $0x7] ss:$8 sm:$0xf0] }
 0x152   : > { %v4813_v4 = vor.u32 %v3171_v51, %v3170_v28 }
 0x153   : > { %3519 = vmatpush.msk.msrb.mxu1 %vm446_vm6, %v443_v34  ;;  %3528 = vmatpush.msk.msrb.mxu2 %vm446_vm6, %v444_v20  ;;  %v1988_v34 = vperm.slane %v4687_v55, 2  ;;  %v1989_v20 = vperm.slane %v4687_v55, 3 }
 0x154   : > { %3155 = vmatmul.msk.f32.vlgmr.msrb.gmra.mxu1 %vm1266_vm10, %v4342_v5  ;;  %3156 = vmatmul.msk.f32.vlgmr.msrb.gmra.mxu2 %vm1266_vm10, %v4342_v5 }
 0x16a   : > { %v4587_v62 = vpop.permute.xlu1 %1263 }
 0x187   : > { %v1287_v6 = vpop.f32.mrf.mxu3 }
 0x188   : > { %v1307_v53 = vpop.f32.mrf.mxu1  ;;  %v1288_v40 = vadd.f32 %v1287_v6, %v4587_v62 }
 0x189   : > { %v1308_v48 = vadd.f32 %v1307_v53, %v4587_v62 }
 0x18a   : > { %v4616_v30 = vmax.f32 %v1288_v40, 0.0 }
 0x18b   : > { %v4590_v12 = vmax.f32 %v1308_v48, 0.0 }
 0x18d   : > { %1576 = vrot.lane.b32.xlu0 %v4590_v12, %s5765_s12  ;;  %1960 = vrot.lane.b32.xlu2 %v4590_v12, %s5766_s18 }
 0x18e   : > { %1892 = vrot.lane.b32.xlu1 %v4590_v12, %s5767_s28 }
 0x190   : > { %v1327_v5 = vpop.f32.mrf.mxu2 }
 0x191   : > { %v1328_v10 = vadd.f32 %v1327_v5, %v4587_v62 }
 0x193   : > { %v4609_v31 = vmax.f32 %v1328_v10, 0.0 }
 0x195   : > { %1756 = vrot.lane.b32.xlu0 %v4590_v12, %s5768_s20  ;;  %1644 = vrot.lane.b32.xlu2 %v4590_v12, %s5769_s30 }
 0x196   : > { %1508 = vrot.lane.b32.xlu1 %v4590_v12, %s5770_s21 }
 0x199   : > { %v1347_v41 = vpop.f32.mrf.mxu3 }
 0x19a   : > { %v1348_v42 = vadd.f32 %v1347_v41, %v4587_v62 }
 0x19c   : > { %v4649_v1 = vmax.f32 %v1348_v42, 0.0 }
 0x19d   : > { %1440 = vrot.lane.b32.xlu0 %v4590_v12, %s5771_s0  ;;  %1824 = vrot.lane.b32.xlu2 %v4590_v12, %s5772_s25 }
 0x1a5   : > { %1826 = vrot.lane.b32.xlu0 %v4609_v31, %s5772_s25  ;;  %1962 = vrot.lane.b32.xlu2 %v4609_v31, %s5766_s18 }
 0x1ad   : > { %1890 = vrot.lane.b32.xlu0 %v4616_v30, %s5767_s28  ;;  %1758 = vrot.lane.b32.xlu2 %v4609_v31, %s5768_s20 }
 0x1b5   : > { %1646 = vrot.lane.b32.xlu0 %v4609_v31, %s5769_s30  ;;  %1754 = vrot.lane.b32.xlu2 %v4616_v30, %s5768_s20 }
 0x1b9   : > { %v1427_v38 = vpop.f32.mrf.mxu3 }
 0x1ba   : > { %v1428_v46 = vadd.f32 %v1427_v38, %v4587_v62 }
 0x1bc   : > { %v4703_v19 = vmax.f32 %v1428_v46, 0.0  ;;  %v3168_v46 = vld [vmem:[%s5718_s1 + $0x6] ss:$8 sm:$0xf] }
 0x1bd   : > { %1510 = vrot.lane.b32.xlu2 %v4609_v31, %s5770_s21 }
 0x1be   : > { %5773 = vst [vmem:[#allocation8_spill] sm:$0xff] %v4703_v19 }
 0x1c2   : > { %v1367_v52 = vpop.f32.mrf.mxu0 }
 0x1c3   : > { %v1368_v23 = vadd.f32 %v1367_v52, %v4587_v62 }
 0x1c5   : > { %v4629_v2 = vmax.f32 %v1368_v23, 0.0  ;;  %1642 = vrot.lane.b32.xlu2 %v4616_v30, %s5769_s30 }
 0x1c7   : > { %1966 = vrot.lane.b32.xlu1 %v4629_v2, %s5766_s18 }
 0x1cd   : > { %1574 = vrot.lane.b32.xlu2 %v4616_v30, %s5765_s12 }
 0x1cf   : > { %1898 = vrot.lane.b32.xlu1 %v4629_v2, %s5767_s28 }
 0x1d1   : > { %v1387_v25 = vpop.f32.mrf.mxu1 }
 0x1d2   : > { %v1388_v59 = vadd.f32 %v1387_v25, %v4587_v62 }
 0x1d4   : > { %v4640_v33 = vmax.f32 %v1388_v59, 0.0 }
 0x1d5   : > { %1506 = vrot.lane.b32.xlu2 %v4616_v30, %s5770_s21 }
 0x1d6   : > { %1900 = vrot.lane.b32.xlu0 %v4640_v33, %s5767_s28 }
 0x1d7   : > { %1830 = vrot.lane.b32.xlu1 %v4629_v2, %s5772_s25  ;;  %v1407_v0 = vpop.f32.mrf.mxu2 }
 0x1d8   : > { %v1408_v37 = vadd.f32 %v1407_v0, %v4587_v62  ;;  %v1921_v62 = vperm.slane %v4813_v4, 3 }
 0x1da   : > { %v4715_v26 = vmax.f32 %v1408_v37, 0.0  ;;  %v3164_v37 = vld [vmem:[%s5718_s1 + $0x4] ss:$8 sm:$0xf] }
 0x1dd   : > { %1438 = vrot.lane.b32.xlu2 %v4616_v30, %s5771_s0 }
 0x1de   : > { %1964 = vrot.lane.b32.xlu0 %v4649_v1, %s5766_s18 }
 0x1df   : > { %1762 = vrot.lane.b32.xlu1 %v4629_v2, %s5768_s20 }
 0x1e5   : > { %1968 = vrot.lane.b32.xlu2 %v4640_v33, %s5766_s18 }
 0x1e6   : > { %1760 = vrot.lane.b32.xlu0 %v4649_v1, %s5768_s20 }
 0x1e7   : > { %v4661_v63 = vpop.permute.xlu2 %1960  ;;  %1650 = vrot.lane.b32.xlu1 %v4629_v2, %s5769_s30 }
 0x1ed   : > { %1832 = vrot.lane.b32.xlu2 %v4640_v33, %s5772_s25 }
 0x1ee   : > { %1584 = vrot.lane.b32.xlu0 %v4640_v33, %s5765_s12 }
 0x1ef   : > { %v4669_v57 = vpop.permute.xlu2 %1644  ;;  %1582 = vrot.lane.b32.xlu1 %v4629_v2, %s5765_s12 }
 0x1f5   : > { %1896 = vrot.lane.b32.xlu2 %v4649_v1, %s5767_s28 }
 0x1f6   : > { %1580 = vrot.lane.b32.xlu0 %v4649_v1, %s5765_s12 }
 0x1f7   : > { %v4683_v29 = vpop.permute.xlu2 %1824  ;;  %1894 = vrot.lane.b32.xlu1 %v4609_v31, %s5767_s28 }
 0x1fd   : > { %1516 = vrot.lane.b32.xlu2 %v4640_v33, %s5770_s21 }
 0x1fe   : > { %1444 = vrot.lane.b32.xlu0 %v4649_v1, %s5771_s0 }
 0x1ff   : > { %v4695_v58 = vpop.permute.xlu2 %1962  ;;  %1958 = vrot.lane.b32.xlu1 %v4616_v30, %s5766_s18  ;;  %v4717_v44 = vpop.permute.xlu0 %1576 }
 0x200   : > { %v1979_v43 = vsel %vm1133_vm2, %v4661_v63, %v4695_v58  ;;  %v4751_v56 = vpop.permute.xlu1 %1892 }
 0x201   : > { %v2003_v16 = vmul.f32 %v1987_v35, %v1979_v43  ;;  %v3166_v43 = vld [vmem:[%s5718_s1 + $0x5] ss:$8 sm:$0xf] }
 0x203   : > { %3547 = vmatpush.msk.msra.mxu1 %vm446_vm6, %v2003_v16  ;;  %v3167_v16 = vld [vmem:[%s5718_s1 + $0x5] ss:$8 sm:$0xf0] }
 0x205   : > { %1512 = vrot.lane.b32.xlu2 %v4649_v1, %s5770_s21 }
 0x206   : > { %1656 = vrot.lane.b32.xlu0 %v4703_v19, %s5769_s30 }
 0x207   : > { %v4711_v50 = vpop.permute.xlu2 %1758  ;;  %1822 = vrot.lane.b32.xlu1 %v4616_v30, %s5772_s25  ;;  %v4731_v45 = vpop.permute.xlu0 %1756 }
 0x208   : > { %v4767_v18 = vpop.permute.xlu1 %1508 }
 0x20d   : > { %1970 = vrot.lane.b32.xlu2 %v4715_v26, %s5766_s18 }
 0x20e   : > { %1588 = vrot.lane.b32.xlu0 %v4703_v19, %s5765_s12 }
 0x20f   : > { %v4723_v17 = vpop.permute.xlu2 %1754  ;;  %1578 = vrot.lane.b32.xlu1 %v4609_v31, %s5765_s12  ;;  %v4745_v15 = vpop.permute.xlu0 %1440 }
 0x215   : > { %1902 = vrot.lane.b32.xlu2 %v4715_v26, %s5767_s28 }
 0x216   : > { %1520 = vrot.lane.b32.xlu0 %v4703_v19, %s5770_s21 }
 0x217   : > { %v4733_v54 = vpop.permute.xlu2 %1510  ;;  %1442 = vrot.lane.b32.xlu1 %v4609_v31, %s5771_s0  ;;  %v4757_v22 = vpop.permute.xlu0 %1826 }
 0x21d   : > { %1834 = vrot.lane.b32.xlu2 %v4715_v26, %s5772_s25 }
 0x21e   : > { %1452 = vrot.lane.b32.xlu0 %v4703_v19, %s5771_s0 }
 0x21f   : > { %v4741_v27 = vpop.permute.xlu2 %1642  ;;  %1764 = vrot.lane.b32.xlu1 %v4640_v33, %s5768_s20  ;;  %v4769_v36 = vpop.permute.xlu0 %1890 }
 0x220   : > { %5774 = vst [vmem:[#allocation9_spill] sm:$0xff] %v4769_v36 }
 0x225   : > { %1766 = vrot.lane.b32.xlu2 %v4715_v26, %s5768_s20 }
 0x226   : > { %1972 = vrot.lane.b32.xlu0 %v4703_v19, %s5766_s18 }
 0x227   : > { %v4753_v61 = vpop.permute.xlu2 %1574  ;;  %1828 = vrot.lane.b32.xlu1 %v4649_v1, %s5772_s25  ;;  %v4781_v7 = vpop.permute.xlu0 %1646 }
 0x22d   : > { %1654 = vrot.lane.b32.xlu2 %v4715_v26, %s5769_s30 }
 0x22e   : > { %1904 = vrot.lane.b32.xlu0 %v4703_v19, %s5767_s28 }
 0x22f   : > { %v4763_v3 = vpop.permute.xlu2 %1506  ;;  %1514 = vrot.lane.b32.xlu1 %v4629_v2, %s5770_s21 }
 0x235   : > { %1450 = vrot.lane.b32.xlu2 %v4715_v26, %s5771_s0 }
 0x236   : > { %1836 = vrot.lane.b32.xlu0 %v4703_v19, %s5772_s25 }
 0x237   : > { %v4775_v24 = vpop.permute.xlu2 %1438  ;;  %1446 = vrot.lane.b32.xlu1 %v4629_v2, %s5771_s0 }
 0x239   : > { %v1967_v47 = vpop.permute.xlu1 %1966 }
 0x23e   : > { %1768 = vrot.lane.b32.xlu0 %v4703_v19, %s5768_s20 }
 0x23f   : > { %1648 = vrot.lane.b32.xlu1 %v4649_v1, %s5769_s30  ;;  %v4785_v49 = vpop.permute.xlu2 %1968 }
 0x240   : > { %v4790_v60 = vsel %vm1133_vm2, %v1967_v47, %v4785_v49 }
 0x241   : > { %v1899_v32 = vpop.permute.xlu1 %1898 }
 0x246   : > { %1518 = vrot.lane.b32.xlu0 %v4715_v26, %s5770_s21 }
 0x247   : > { %1652 = vrot.lane.b32.xlu1 %v4640_v33, %s5769_s30  ;;  %v4796_v21 = vpop.permute.xlu2 %1832  ;;  %s351_s30 = sand.u32 1, %s3720_s14  }
 0x248   : > { %v4798_v39 = vpop.permute.xlu0 %1900  ;;  %s3053_s26 = scalar_lea.sflag [#allocation5], %s351_s30 }
 0x249   : > { %v4803_v8 = vsel %vm1040_vm4, %v1899_v32, %v4798_v39  ;;  %v4805_v11 = vpop.permute.xlu1 %1830 }
 0x24f   : > { %v1897_v53 = vpop.permute.xlu2 %1896  ;;  %1586 = vrot.lane.b32.xlu1 %v4715_v26, %s5765_s12 }
 0x250   : > { %v1965_v48 = vpop.permute.xlu0 %1964  ;;  %v1909_v5 = vsel %vm1040_vm4, %v1897_v53, %v1899_v32  ;;  %v4872_v32 = vor.u32 %v3167_v16, %v3166_v43 }
 0x251   : > { %v1977_v10 = vsel %vm1133_vm2, %v1965_v48, %v1967_v47  ;;  %v1978_v6 = vsel %vm1133_vm2, %v4695_v58, %v1965_v48  ;;  %v4827_v23 = vpop.permute.xlu1 %1762  ;;  %v1937_v25 = vmul.f32 %v1921_v62, %v1909_v5  ;;  %v3169_v58 = vld [vmem:[%s5718_s1 + $0x6] ss:$8 sm:$0xf0]  ;;  %v3165_v47 = vld [vmem:[%s5718_s1 + $0x4] ss:$8 sm:$0xf0] }
 0x252   : > { %v2004_v40 = vmul.f32 %v1988_v34, %v1978_v6  ;;  %v2005_v52 = vmul.f32 %v1989_v20, %v1977_v10  ;;  %v4864_v0 = vor.u32 %v3169_v58, %v3168_v46  ;;  %v1919_v34 = vperm.slane %v4813_v4, 1  ;;  %v3162_v62 = vld [vmem:[%s5718_s1 + $0x3] ss:$8 sm:$0xf] }
 0x253   : > { %v1920_v20 = vperm.slane %v4813_v4, 2  ;;  %v3163_v48 = vld [vmem:[%s5718_s1 + $0x3] ss:$8 sm:$0xf0]  ;;  %v4892_v10 = vor.u32 %v3165_v47, %v3164_v37  ;;  %v1783_v16 = vperm.slane %v4872_v32, 1 }
 0x254   : > { %3556 = vmatpush.msk.msra.mxu2 %vm446_vm6, %v2004_v40  ;;  %3565 = vmatpush.msk.msrb.mxu3 %vm446_vm6, %v2005_v52  ;;  %v1851_v6 = vperm.slane %v4864_v0, 1  ;;  %v1843_v52 = vsel %vm947_vm5, %v4683_v29, %v4757_v22  ;;  %v3161_v46 = vld [vmem:[%s5718_s1 + $0x2] ss:$8 sm:$0xf0]  ;;  %v4911_v37 = vor.u32 %v3163_v48, %v3162_v62 }
 0x256   : > { %3566 = vmatpush.msk.msrb.mxu3 %vm446_vm6, %v1937_v25  ;;  %v3160_v25 = vld [vmem:[%s5718_s1 + $0x2] ss:$8 sm:$0xf] }
 0x257   : > { %v4832_v59 = vpop.permute.xlu2 %1516  ;;  %1448 = vrot.lane.b32.xlu1 %v4640_v33, %s5771_s0  ;;  %v4924_v62 = vor.u32 %v3161_v46, %v3160_v25 }
 0x258   : > { %5775 = vst [vmem:[#allocation10_spill] sm:$0xff] %v4832_v59  ;;  %v4836_v41 = vpop.permute.xlu0 %1760  ;;  %v1775_v59 = vsel %vm854_vm3, %v4731_v45, %v4711_v50 }
 0x259   : > { %v4842_v42 = vsel %vm854_vm3, %v4836_v41, %v4827_v23  ;;  %v4844_v9 = vpop.permute.xlu1 %1650  ;;  %v1799_v48 = vmul.f32 %v1783_v16, %v1775_v59  ;;  %v1918_v59 = vperm.slane %v4813_v4, 0  ;;  %v1603_v16 = vperm.slane %v4924_v62, 1 }
 0x25f   : > { %v4846_v14 = vpop.permute.xlu2 %1512 }
 0x260   : > { %v4848_v38 = vpop.permute.xlu0 %1584 }
 0x261   : > { %5776 = vst [vmem:[#allocation7_spill] sm:$0xff] %v4848_v38  ;;  %v4850_v35 = vpop.permute.xlu1 %1582  ;;  %v1867_v38 = vmul.f32 %v1851_v6, %v1843_v52  ;;  %v1986_v52 = vperm.slane %v4687_v55, 0 }
 0x262   : > { %5777 = vst [vmem:[#allocation11_spill] sm:$0xff] %v4850_v35 }
 0x267   : > { %v4874_v28 = vpop.permute.xlu2 %1970 }
 0x268   : > { %v4876_v51 = vpop.permute.xlu0 %1580 }
 0x269   : > { %v4890_v5 = vsel %vm595_vm9, %v4876_v51, %v4850_v35  ;;  %v1895_v40 = vpop.permute.xlu1 %1894  ;;  %v1715_v35 = vperm.slane %v4892_v10, 1 }
 0x26a   : > { %v1910_v58 = vsel %vm1040_vm4, %v1895_v40, %v1897_v53  ;;  %v1911_v43 = vsel %vm1040_vm4, %v4751_v56, %v1895_v40  ;;  %v3158_v53 = vld [vmem:[%s5718_s1 + $0x1] ss:$8 sm:$0xf] }
 0x26b   : > { %v1935_v47 = vmul.f32 %v1919_v34, %v1911_v43  ;;  %v1936_v19 = vmul.f32 %v1920_v20, %v1910_v58  ;;  %v3159_v40 = vld [vmem:[%s5718_s1 + $0x1] ss:$8 sm:$0xf0]  ;;  %v1462_v34 = vld [vmem:[%s5718_s1] ss:$8 sm:$0xf]  ;;  %v1731_v25 = vmul.f32 %v1715_v35, %v4590_v12  ;;  %v1596_v12 = vsel %vm595_vm9, %v4753_v61, %v4717_v44 }
 0x26c   : > { %v1463_v20 = vld [vmem:[%s5718_s1] ss:$8 sm:$0xf0]  ;;  %v1671_v58 = vperm.slane %v4911_v37, 1  ;;  %v4946_v46 = vor.u32 %v3159_v40, %v3158_v53 }
 0x26d   : > { %3548 = vmatpush.msk.msra.mxu1 %vm446_vm6, %v1935_v47  ;;  %3557 = vmatpush.msk.msra.mxu2 %vm446_vm6, %v1936_v19  ;;  %v1664_v19 = vsel %vm688_vm1, %v4741_v27, %v4669_v57  ;;  %v4950_v47 = vor.u32 %v1463_v20, %v1462_v34  ;;  %v1528_v20 = vsel %vm502_vm8, %v4763_v3, %v4767_v18 }
 0x26e   : > { %v1687_v53 = vmul.f32 %v1671_v58, %v1664_v19  ;;  %v1535_v40 = vperm.slane %v4946_v46, 1  ;;  %v1460_v58 = vsel %vm409_vm7, %v4775_v24, %v4745_v15 }
 0x26f   : > { %v4935_v43 = vpop.permute.xlu2 %1902  ;;  %3549 = vmatpush.msk.msra.mxu1 %vm446_vm6, %v1867_v38 }
 0x270   : > { %v4938_v6 = vpop.permute.xlu0 %1444  ;;  %v1551_v19 = vmul.f32 %v1535_v40, %v1528_v20 }
 0x271   : > { %5778 = vst [vmem:[#allocation12_spill] sm:$0xff] %v4938_v6  ;;  %v4952_v38 = vpop.permute.xlu1 %1958  ;;  %3550 = vmatpush.msk.msra.mxu1 %vm446_vm6, %v1799_v48  ;;  %v1912_v6 = vsel %vm1040_vm4, %v4769_v36, %v4751_v56  ;;  %v2099_v56 = vld [vmem:[%s5722_s5] sm:$0x7]  ;;  %v1619_v36 = vmul.f32 %v1603_v16, %v1596_v12  ;;  %v1923_v16 = vperm.slane %v4813_v4, 5 }
 0x272   : > { %v1980_v35 = vsel %vm1133_vm2, %v4952_v38, %v4661_v63  ;;  %2102 = vperm.xlu0 %3659, %v2099_v56   ;;  %v1934_v48 = vmul.f32 %v1918_v59, %v1912_v6  ;;  %v1467_v63 = vperm.slane %v4950_v47, 1  ;;  %v1975_v6 = vsel %vm1133_vm2, %v4785_v49, %v4874_v28 }
 0x273   : > { %v2002_v34 = vmul.f32 %v1986_v52, %v1980_v35  ;;  %3551 = vmatpush.msk.msra.mxu1 %vm446_vm6, %v1731_v25  ;;  %v1991_v52 = vperm.slane %v4687_v55, 5  ;;  %v1850_v59 = vperm.slane %v4864_v0, 0  ;;  %v1782_v35 = vperm.slane %v4872_v32, 0 }
 0x274   : > { %v1907_v49 = vsel %vm1040_vm4, %v4798_v39, %v4935_v43  ;;  %v1855_v56 = vperm.slane %v4864_v0, 5  ;;  %v5016_v39 = vld [vmem:[%s5721_s4] sm:$0x7] }
 0x275   : > { %3538 = vmatpush.msk.msrb.mxu0 %vm446_vm6, %v2002_v34  ;;  %3552 = vmatpush.msk.msra.mxu1 %vm446_vm6, %v1687_v53  ;;  %v1483_v53 = vmul.f32 %v1467_v63, %v1460_v58  ;;  %v2007_v34 = vmul.f32 %v1991_v52, %v1975_v6  ;;  %v1939_v58 = vmul.f32 %v1923_v16, %v1907_v49 }
 0x277   : > { %3539 = vmatpush.msk.msrb.mxu0 %vm446_vm6, %v1934_v48  ;;  %3553 = vmatpush.msk.msra.mxu1 %vm446_vm6, %v1619_v36  ;;  %v4994_v12 = vpop.permute.xlu2 %1834  ;;  %v1776_v36 = vsel %vm854_vm3, %v4723_v17, %v4731_v45  ;;  %v1714_v45 = vperm.slane %v4892_v10, 0 }
 0x278   : > { %v4990_v25 = vpop.permute.xlu0 %1656  ;;  %v1839_v48 = vsel %vm947_vm5, %v4796_v21, %v4994_v12  ;;  %v1798_v52 = vmul.f32 %v1782_v35, %v1776_v36 }
 0x279   : > { %v5001_v40 = vpop.permute.xlu1 %1822  ;;  %3554 = vmatpush.msk.msra.mxu1 %vm446_vm6, %v1551_v19  ;;  %v1871_v19 = vmul.f32 %v1855_v56, %v1839_v48  ;;  %v1665_v6 = vsel %vm688_vm1, %v4990_v25, %v4741_v27  ;;  %v1730_v35 = vmul.f32 %v1714_v45, %v4616_v30  ;;  %v1466_v48 = vperm.slane %v4950_v47, 0 }
 0x27a   : > { %v1844_v20 = vsel %vm947_vm5, %v5001_v40, %v4683_v29  ;;  %v1670_v29 = vperm.slane %v4911_v37, 0 }
 0x27b   : > { %v1866_v63 = vmul.f32 %v1850_v59, %v1844_v20  ;;  %3555 = vmatpush.msk.msra.mxu1 %vm446_vm6, %v1483_v53  ;;  %v1602_v59 = vperm.slane %v4924_v62, 0 }
 0x27c   : > { %3175 = vmatmul.msk.f32.vlgmr.msra.gmra.mxu1 %vm1266_vm10, %v5016_v39  ;;  %v1686_v49 = vmul.f32 %v1670_v29, %v1665_v6 }
 0x27d   : > { %3583 = vmatpush.msk.msrb.mxu1 %vm446_vm6, %v2007_v34  ;;  %3540 = vmatpush.msk.msrb.mxu0 %vm446_vm6, %v1866_v63  ;;  %v1534_v34 = vperm.slane %v4946_v46, 0  ;;  %v1990_v63 = vperm.slane %v4687_v55, 4 }
 0x27f   : > { %3584 = vmatpush.msk.msrb.mxu1 %vm446_vm6, %v1939_v58  ;;  %3541 = vmatpush.msk.msrb.mxu0 %vm446_vm6, %v1798_v52  ;;  %v1787_v58 = vperm.slane %v4872_v32, 5  ;;  %v5069_v29 = vpop.permute.xlu2 %1766 }
 0x280   : > { %v5036_v16 = vpop.permute.xlu0 %1588 }
 0x281   : > { %v1597_v53 = vsel %vm595_vm9, %v5036_v16, %v4753_v61  ;;  %3585 = vmatpush.msk.msrb.mxu1 %vm446_vm6, %v1871_v19  ;;  %v5044_v36 = vpop.permute.xlu1 %1578  ;;  %3542 = vmatpush.msk.msrb.mxu0 %vm446_vm6, %v1730_v35 }
 0x282   : > { %v1618_v27 = vmul.f32 %v1602_v59, %v1597_v53  ;;  %v1719_v59 = vperm.slane %v4892_v10, 5  ;;  %v2006_v53 = vmul.f32 %v1990_v63, %v4790_v60  ;;  %v1853_v63 = vperm.slane %v4864_v0, 3 }
 0x283   : > { %3543 = vmatpush.msk.msrb.mxu0 %vm446_vm6, %v1686_v49  ;;  %v1854_v49 = vperm.slane %v4864_v0, 4 }
 0x284   : > { %v1735_v60 = vmul.f32 %v1719_v59, %v4640_v33 }
 0x285   : > { %3544 = vmatpush.msk.msrb.mxu0 %vm446_vm6, %v1618_v27 }
 0x288   : > { %v5050_v30 = vpop.permute.xlu0 %1520 }
 0x289   : > { %v1529_v61 = vsel %vm502_vm8, %v5050_v30, %v4763_v3  ;;  %v5056_v20 = vpop.permute.xlu1 %1442  ;;  %v1922_v3 = vperm.slane %v4813_v4, 4 }
 0x28a   : > { %v1550_v56 = vmul.f32 %v1534_v34, %v1529_v61  ;;  %v1786_v61 = vperm.slane %v4872_v32, 4 }
 0x28b   : > { %v1938_v34 = vmul.f32 %v1922_v3, %v4803_v8  ;;  %v1852_v8 = vperm.slane %v4864_v0, 2 }
 0x28c   : > { %3545 = vmatpush.msk.msrb.mxu0 %vm446_vm6, %v1550_v56 }
 0x290   : > { %v5061_v45 = vpop.permute.xlu0 %1452 }
 0x291   : > { %v1461_v52 = vsel %vm409_vm7, %v5061_v45, %v4775_v24  ;;  %v1765_v6 = vpop.permute.xlu1 %1764  ;;  %v1840_v24 = vsel %vm947_vm5, %v4805_v11, %v4796_v21 }
 0x292   : > { %v1482_v19 = vmul.f32 %v1466_v48, %v1461_v52  ;;  %v1771_v35 = vsel %vm854_vm3, %v1765_v6, %v5069_v29  ;;  %v1772_v56 = vsel %vm854_vm3, %v4827_v23, %v1765_v6  ;;  %v1870_v48 = vmul.f32 %v1854_v49, %v1840_v24 }
 0x293   : > { %v1803_v27 = vmul.f32 %v1787_v58, %v1771_v35  ;;  %v1718_v58 = vperm.slane %v4892_v10, 4  ;;  %v1784_v52 = vperm.slane %v4872_v32, 2  ;;  %v1802_v33 = vmul.f32 %v1786_v61, %v1772_v56 }
 0x294   : > { %3546 = vmatpush.msk.msrb.mxu0 %vm446_vm6, %v1482_v19  ;;  %v1785_v23 = vperm.slane %v4872_v32, 3  ;;  %v1774_v19 = vsel %vm854_vm3, %v4711_v50, %v4836_v41  ;;  %v1717_v24 = vperm.slane %v4892_v10, 3  ;;  %v1672_v50 = vperm.slane %v4911_v37, 2 }
 0x295   : > { %3174 = vmatmul.msk.f32.vlgmr.msrb.gmra.mxu0 %vm1266_vm10, %v5016_v39  ;;  %3586 = vmatpush.msk.msrb.mxu1 %vm446_vm6, %v1803_v27  ;;  %v1734_v49 = vmul.f32 %v1718_v58, %v4629_v2  ;;  %v1716_v27 = vperm.slane %v4892_v10, 2  ;;  %v1800_v41 = vmul.f32 %v1784_v52, %v1774_v19  ;;  %v1604_v2 = vperm.slane %v4924_v62, 2 }
 0x296   : > { %3574 = vmatpush.msk.msra.mxu0 %vm446_vm6, %v2006_v53  ;;  %v1992_v58 = vperm.slane %v4687_v55, 6  ;;  %v1856_v19 = vperm.slane %v4864_v0, 6 }
 0x297   : > { %3587 = vmatpush.msk.msrb.mxu1 %vm446_vm6, %v1735_v60  ;;  %v1732_v61 = vmul.f32 %v1716_v27, %v4609_v31  ;;  %v1595_v60 = vsel %vm595_vm9, %v4717_v44, %v5044_v36  ;;  %v1527_v31 = vsel %vm502_vm8, %v4767_v18, %v4733_v54  ;;  %v1468_v44 = vperm.slane %v4950_v47, 2 }
 0x298   : > { %3575 = vmatpush.msk.msra.mxu0 %vm446_vm6, %v1938_v34  ;;  %v5094_v21 = vpop.permute.xlu0 %1972  ;;  %v1674_v27 = vperm.slane %v4911_v37, 4 }
 0x299   : > { %v1829_v3 = vpop.permute.xlu1 %1828  ;;  %v1974_v18 = vsel %vm1133_vm2, %v4874_v28, %v5094_v21 }
 0x29a   : > { %3576 = vmatpush.msk.msra.mxu0 %vm446_vm6, %v1870_v48  ;;  %v1841_v6 = vsel %vm947_vm5, %v1829_v3, %v4805_v11  ;;  %v1842_v59 = vsel %vm947_vm5, %v4757_v22, %v1829_v3  ;;  %v1663_v22 = vsel %vm688_vm1, %v4669_v57, %v4781_v7  ;;  %v1801_v11 = vmul.f32 %v1785_v23, %v4842_v42 }
 0x29b   : > { %v1868_v35 = vmul.f32 %v1852_v8, %v1842_v59  ;;  %v1869_v53 = vmul.f32 %v1853_v63, %v1841_v6  ;;  %v1733_v57 = vmul.f32 %v1717_v24, %v4649_v1  ;;  %v1536_v42 = vperm.slane %v4946_v46, 2 }
 0x29c   : > { %3577 = vmatpush.msk.msra.mxu0 %vm446_vm6, %v1802_v33  ;;  %v1688_v56 = vmul.f32 %v1672_v50, %v1663_v22  ;;  %v1620_v8 = vmul.f32 %v1604_v2, %v1595_v60  ;;  %v1459_v1 = vsel %vm409_vm7, %v4745_v15, %v5056_v20  ;;  %v1924_v33 = vperm.slane %v4813_v4, 6 }
 0x29d   : > { %3558 = vmatpush.msk.msra.mxu2 %vm446_vm6, %v1868_v35  ;;  %3567 = vmatpush.msk.msrb.mxu3 %vm446_vm6, %v1869_v53  ;;  %v1552_v63 = vmul.f32 %v1536_v42, %v1527_v31  ;;  %v1484_v52 = vmul.f32 %v1468_v44, %v1459_v1  ;;  %v2008_v23 = vmul.f32 %v1992_v58, %v1974_v18  ;;  %v1720_v24 = vperm.slane %v4892_v10, 6 }
 0x29e   : > { %3578 = vmatpush.msk.msra.mxu0 %vm446_vm6, %v1734_v49  ;;  %v1673_v49 = vperm.slane %v4911_v37, 3  ;;  %v1606_v50 = vperm.slane %v4924_v62, 4  ;;  %v1537_v2 = vperm.slane %v4946_v46, 3  ;;  %v1538_v42 = vperm.slane %v4946_v46, 4 }
 0x29f   : > { %3559 = vmatpush.msk.msra.mxu2 %vm446_vm6, %v1800_v41  ;;  %3568 = vmatpush.msk.msrb.mxu3 %vm446_vm6, %v1801_v11  ;;  %v1605_v41 = vperm.slane %v4924_v62, 3  ;;  %v1469_v44 = vperm.slane %v4950_v47, 3  ;;  %v1675_v18 = vperm.slane %v4911_v37, 5 }
 0x2a0   : > { %v5127_v34 = vpop.permute.xlu0 %1904 }
 0x2a1   : > { %v5137_v48 = vpop.permute.xlu1 %1514  ;;  %3560 = vmatpush.msk.msra.mxu2 %vm446_vm6, %v1732_v61  ;;  %3569 = vmatpush.msk.msrb.mxu3 %vm446_vm6, %v1733_v57  ;;  %v1906_v15 = vsel %vm1040_vm4, %v4935_v43, %v5127_v34  ;;  %v1788_v43 = vperm.slane %v4872_v32, 6  ;;  %v1594_v61 = vsel %vm595_vm9, %v5044_v36, %v4876_v51  ;;  %v1526_v57 = vsel %vm502_vm8, %v4733_v54, %v4846_v14 }
 0x2a2   : > { %v1940_v59 = vmul.f32 %v1924_v33, %v1906_v15  ;;  %v1525_v51 = vsel %vm502_vm8, %v4846_v14, %v5137_v48  ;;  %v1736_v36 = vmul.f32 %v1720_v24, %v4715_v26  ;;  %v1470_v54 = vperm.slane %v4950_v47, 4  ;;  %v5780_v15 = vld [vmem:[#allocation7_spill] sm:$0xff] }
 0x2a3   : > { %3561 = vmatpush.msk.msra.mxu2 %vm446_vm6, %v1688_v56  ;;  %v1553_v1 = vmul.f32 %v1537_v2, %v1526_v57  ;;  %v1993_v14 = vperm.slane %v4687_v55, 7  ;;  %v1981_v33 = vsel %vm1133_vm2, %v5094_v21, %v4952_v38  ;;  %v1539_v21 = vperm.slane %v4946_v46, 5 }
 0x2a4   : > { %v1857_v24 = vperm.slane %v4864_v0, 7  ;;  %v1789_v2 = vperm.slane %v4872_v32, 7  ;;  %v1608_v32 = vperm.slane %v4924_v62, 6 }
 0x2a5   : > { %3562 = vmatpush.msk.msra.mxu2 %vm446_vm6, %v1620_v8  ;;  %v1621_v8 = vmul.f32 %v1605_v41, %v1594_v61 }
 0x2a7   : > { %3563 = vmatpush.msk.msra.mxu2 %vm446_vm6, %v1552_v63  ;;  %v5779_v63 = vld [vmem:[#allocation12_spill] sm:$0xff] }
 0x2a8   : > { %v5159_v3 = vpop.permute.xlu0 %1836  ;;  %v1458_v58 = vsel %vm409_vm7, %v5056_v20, %v5779_v63  ;;  %v1607_v20 = vperm.slane %v4924_v62, 5 }
 0x2a9   : > { %v5166_v6 = vpop.permute.xlu1 %1446  ;;  %3564 = vmatpush.msk.msra.mxu2 %vm446_vm6, %v1484_v52  ;;  %v1838_v28 = vsel %vm947_vm5, %v4994_v12, %v5159_v3  ;;  %v1676_v52 = vperm.slane %v4911_v37, 6 }
 0x2aa   : > { %3176 = vmatmul.msk.f32.vlgmr.msra.gmra.mxu2 %vm1266_vm10, %v5016_v39  ;;  %v1872_v35 = vmul.f32 %v1856_v19, %v1838_v28  ;;  %v1457_v26 = vsel %vm409_vm7, %v5779_v63, %v5166_v6  ;;  %v1655_v19 = vpop.permute.xlu2 %1654  ;;  %v1485_v28 = vmul.f32 %v1469_v44, %v1458_v58  ;;  %v1541_v44 = vperm.slane %v4946_v46, 7 }
 0x2ab   : > { %3592 = vmatpush.msk.msrb.mxu2 %vm446_vm6, %v2008_v23  ;;  %v5781_v23 = vld [vmem:[#allocation11_spill] sm:$0xff] }
 0x2ac   : > { %v1592_v55 = vsel %vm595_vm9, %v5781_v23, %v5780_v15 }
 0x2ad   : > { %3593 = vmatpush.msk.msrb.mxu2 %vm446_vm6, %v1940_v59  ;;  %v1925_v59 = vperm.slane %v4813_v4, 7 }
 0x2af   : > { %3594 = vmatpush.msk.msrb.mxu2 %vm446_vm6, %v1872_v35  ;;  %v1486_v35 = vmul.f32 %v1470_v54, %v1457_v26 }
 0x2b0   : > { %v5179_v53 = vpop.permute.xlu0 %1768 }
 0x2b1   : > { %v1770_v12 = vsel %vm854_vm3, %v5069_v29, %v5179_v53  ;;  %v1649_v11 = vpop.permute.xlu1 %1648 }
 0x2b2   : > { %v1804_v22 = vmul.f32 %v1788_v43, %v1770_v12  ;;  %v1661_v60 = vsel %vm688_vm1, %v1649_v11, %v4844_v9  ;;  %v1662_v29 = vsel %vm688_vm1, %v4781_v7, %v1649_v11  ;;  %v1622_v7 = vmul.f32 %v1606_v50, %v4890_v5 }
 0x2b3   : > { %v1689_v56 = vmul.f32 %v1673_v49, %v1662_v29  ;;  %v1690_v31 = vmul.f32 %v1674_v27, %v1661_v60  ;;  %v1554_v5 = vmul.f32 %v1538_v42, %v1525_v51  ;;  %v5782_v49 = vld [vmem:[#allocation9_spill] sm:$0xff]  ;;  %v2009_v12 = vmul.f32 %v1993_v14, %v1981_v33  ;;  %v5784_v51 = vld [vmem:[#allocation8_spill] sm:$0xff] }
 0x2b4   : > { %3595 = vmatpush.msk.msrb.mxu2 %vm446_vm6, %v1804_v22  ;;  %v1913_v38 = vsel %vm1040_vm4, %v5127_v34, %v5782_v49  ;;  %v5783_v22 = vld [vmem:[#allocation10_spill] sm:$0xff]  ;;  %v1845_v11 = vsel %vm947_vm5, %v5159_v3, %v5001_v40  ;;  %v1721_v60 = vperm.slane %v4892_v10, 7  ;;  %v1677_v29 = vperm.slane %v4911_v37, 7 }
 0x2b5   : > { %3570 = vmatpush.msk.msrb.mxu3 %vm446_vm6, %v1689_v56  ;;  %3579 = vmatpush.msk.msra.mxu0 %vm446_vm6, %v1690_v31  ;;  %v1524_v34 = vsel %vm502_vm8, %v5137_v48, %v5783_v22  ;;  %v1941_v0 = vmul.f32 %v1925_v59, %v1913_v38  ;;  %v1777_v48 = vsel %vm854_vm3, %v5179_v53, %v4723_v17  ;;  %v1540_v42 = vperm.slane %v4946_v46, 6 }
 0x2b6   : > { %3596 = vmatpush.msk.msrb.mxu2 %vm446_vm6, %v1736_v36  ;;  %v1555_v40 = vmul.f32 %v1539_v21, %v1524_v34  ;;  %v1873_v3 = vmul.f32 %v1857_v24, %v1845_v11  ;;  %v1805_v57 = vmul.f32 %v1789_v2, %v1777_v48  ;;  %v1658_v53 = vsel %vm688_vm1, %v1655_v19, %v4990_v25 }
 0x2b7   : > { %3571 = vmatpush.msk.msrb.mxu3 %vm446_vm6, %v1621_v8  ;;  %3580 = vmatpush.msk.msra.mxu0 %vm446_vm6, %v1622_v7  ;;  %v1609_v37 = vperm.slane %v4924_v62, 7  ;;  %v1737_v36 = vmul.f32 %v1721_v60, %v5784_v51  ;;  %v1693_v25 = vmul.f32 %v1677_v29, %v1658_v53  ;;  %v1451_v8 = vpop.permute.xlu2 %1450  ;;  %v1472_v46 = vperm.slane %v4950_v47, 6 }
 0x2b8   : > { %v1519_v61 = vpop.permute.xlu0 %1518  ;;  %v1454_v58 = vsel %vm409_vm7, %v1451_v8, %v5061_v45 }
 0x2b9   : > { %v1653_v43 = vpop.permute.xlu1 %1652  ;;  %3572 = vmatpush.msk.msrb.mxu3 %vm446_vm6, %v1553_v1  ;;  %3581 = vmatpush.msk.msra.mxu0 %vm446_vm6, %v1554_v5  ;;  %v1523_v56 = vsel %vm502_vm8, %v5783_v22, %v1519_v61  ;;  %v1522_v62 = vsel %vm502_vm8, %v1519_v61, %v5050_v30  ;;  %v1473_v1 = vperm.slane %v4950_v47, 7 }
 0x2ba   : > { %v1659_v27 = vsel %vm688_vm1, %v1653_v43, %v1655_v19  ;;  %v1660_v4 = vsel %vm688_vm1, %v4844_v9, %v1653_v43  ;;  %v1623_v9 = vmul.f32 %v1607_v20, %v1592_v55  ;;  %v1556_v54 = vmul.f32 %v1540_v42, %v1523_v56 }
 0x2bb   : > { %v1691_v50 = vmul.f32 %v1675_v18, %v1660_v4  ;;  %v1692_v41 = vmul.f32 %v1676_v52, %v1659_v27  ;;  %3573 = vmatpush.msk.msrb.mxu3 %vm446_vm6, %v1485_v28  ;;  %3582 = vmatpush.msk.msra.mxu0 %vm446_vm6, %v1486_v35  ;;  %v1557_v26 = vmul.f32 %v1541_v44, %v1522_v62  ;;  %v3417_v62 = vld [vmem:[%s5723_s6 + $0x38] sm:$0xff] }
 0x2bc   : > { %3177 = vmatmul.msk.f32.vlgmr.msrb.gmra.mxu3 %vm1266_vm10, %v5016_v39  ;;  %3178 = vmatmul.msk.f32.vlgmr.msra.gmra.mxu0 %vm1266_vm10, %v5016_v39  ;;  %v1489_v18 = vmul.f32 %v1473_v1, %v1454_v58  ;;  %v3425_v1 = vld [vmem:[%s5723_s6 + $0x78] sm:$0xff] }
 0x2bd   : > { %3601 = vmatpush.msk.msra.mxu3 %vm446_vm6, %v2009_v12  ;;  %3588 = vmatpush.msk.msrb.mxu1 %vm446_vm6, %v1691_v50 }
 0x2be   : > { %3597 = vmatpush.msk.msrb.mxu2 %vm446_vm6, %v1692_v41  ;;  %2877 = vmatpush.bf16.msrb.mxu0 %v3417_v62 }
 0x2bf   : > { %3602 = vmatpush.msk.msra.mxu3 %vm446_vm6, %v1941_v0  ;;  %3589 = vmatpush.msk.msrb.mxu1 %vm446_vm6, %v1623_v9 }
 0x2c1   : > { %3603 = vmatpush.msk.msra.mxu3 %vm446_vm6, %v1873_v3  ;;  %v1587_v17 = vpop.permute.xlu1 %1586  ;;  %3590 = vmatpush.msk.msrb.mxu1 %vm446_vm6, %v1555_v40 }
 0x2c2   : > { %v1591_v10 = vsel %vm595_vm9, %v5780_v15, %v1587_v17  ;;  %v1590_v7 = vsel %vm595_vm9, %v1587_v17, %v5036_v16  ;;  %v1471_v16 = vperm.slane %v4950_v47, 5 }
 0x2c3   : > { %v1624_v31 = vmul.f32 %v1608_v32, %v1591_v10  ;;  %3604 = vmatpush.msk.msra.mxu3 %vm446_vm6, %v1805_v57  ;;  %v1625_v63 = vmul.f32 %v1609_v37, %v1590_v7 }
 0x2c5   : > { %3605 = vmatpush.msk.msra.mxu3 %vm446_vm6, %v1737_v36  ;;  %3598 = vmatpush.msk.msrb.mxu2 %vm446_vm6, %v1624_v31 }
 0x2c7   : > { %3606 = vmatpush.msk.msra.mxu3 %vm446_vm6, %v1693_v25  ;;  %3599 = vmatpush.msk.msrb.mxu2 %vm446_vm6, %v1556_v54 }
 0x2c9   : > { %3607 = vmatpush.msk.msra.mxu3 %vm446_vm6, %v1625_v63  ;;  %v1449_v14 = vpop.permute.xlu1 %1448  ;;  %v5785_v63 = vlaneseq }
 0x2ca   : > { %v1455_v30 = vsel %vm409_vm7, %v1449_v14, %v1451_v8  ;;  %v1456_v5 = vsel %vm409_vm7, %v5166_v6, %v1449_v14  ;;  %v3424_v14 = vld [vmem:[%s5723_s6 + $0x70] sm:$0xff] }
 0x2cb   : > { %v1487_v52 = vmul.f32 %v1471_v16, %v1456_v5  ;;  %v1488_v20 = vmul.f32 %v1472_v46, %v1455_v30  ;;  %3608 = vmatpush.msk.msra.mxu3 %vm446_vm6, %v1557_v26  ;;  %vm5419_vm12 = vcmp.lt.s32.totalorder %v5785_v63, 256  ;;  %v3416_v26 = vld [vmem:[%s5723_s6 + $0x30] sm:$0xff] }
 0x2cc   : > { %2878 = vmatpush.bf16.msrb.mxu0 %v3416_v26 }
 0x2cd   : > { %3609 = vmatpush.msk.msra.mxu3 %vm446_vm6, %v1489_v18  ;;  %3591 = vmatpush.msk.msrb.mxu1 %vm446_vm6, %v1487_v52 }
 0x2ce   : > { %3600 = vmatpush.msk.msrb.mxu2 %vm446_vm6, %v1488_v20  ;;  %3181 = vmatmul.msk.f32.vlgmr.msra.gmra.mxu3 %vm1266_vm10, %v5016_v39 }
 0x2cf   : > { %3179 = vmatmul.msk.f32.vlgmr.msrb.gmra.mxu1 %vm1266_vm10, %v5016_v39  ;;  %3180 = vmatmul.msk.f32.vlgmr.msrb.gmra.mxu2 %vm1266_vm10, %v5016_v39 }
 0x2d0   : > { %2890 = vmatpush.bf16.msra.mxu1 %v3425_v1 }
 0x2d4   : > { %2891 = vmatpush.bf16.msra.mxu1 %v3424_v14 }
 0x2e4   : > { %v2103_v47 = vpop.permute.xlu0 %2102 }
 0x2f9   : > { %v2145_v45 = vpop.f32.mrf.mxu1 }
 0x2fa   : > { %v2146_v6 = vadd.f32 %v2145_v45, %v2103_v47 }
 0x2fc   : > { %v5329_v33 = vmax.f32 %v2146_v6, 0.0 }
 0x2fe   : > { %2310 = vrot.lane.b32.xlu0 %v5329_v33, %s5767_s28  ;;  %2278 = vrot.lane.b32.xlu2 %v5329_v33, %s5768_s20 }
 0x306   : > { %2334 = vrot.lane.b32.xlu0 %v5329_v33, %s5766_s18 }
 0x312   : > { %v2125_v15 = vpop.f32.mrf.mxu0 }
 0x313   : > { %v2126_v23 = vadd.f32 %v2125_v15, %v2103_v47 }
 0x315   : > { %v2268_v55 = vmax.f32 %v2126_v23, 0.0 }
 0x317   : > { %2276 = vrot.lane.b32.xlu1 %v2268_v55, %s5768_s20  ;;  %2308 = vrot.lane.b32.xlu2 %v2268_v55, %s5767_s28 }
 0x31f   : > { %2332 = vrot.lane.b32.xlu2 %v2268_v55, %s5766_s18 }
 0x32d   : > { %v2165_v39 = vpop.f32.mrf.mxu2 }
 0x32e   : > { %v2166_v19 = vadd.f32 %v2165_v39, %v2103_v47 }
 0x330   : > { %v5340_v28 = vmax.f32 %v2166_v19, 0.0  ;;  %v3415_v19 = vld [vmem:[%s5723_s6 + $0x28] sm:$0xff] }
 0x331   : > { %2879 = vmatpush.bf16.msrb.mxu0 %v3415_v19 }
 0x332   : > { %2280 = vrot.lane.b32.xlu1 %v5340_v28, %s5768_s20 }
 0x339   : > { %v2205_v49 = vpop.f32.mrf.mxu0 }
 0x33a   : > { %2312 = vrot.lane.b32.xlu1 %v5340_v28, %s5767_s28  ;;  %v2206_v38 = vadd.f32 %v2205_v49, %v2103_v47 }
 0x33c   : > { %v5354_v21 = vmax.f32 %v2206_v38, 0.0 }
 0x33f   : > { %v2185_v59 = vpop.f32.mrf.mxu3 }
 0x340   : > { %v2186_v35 = vadd.f32 %v2185_v59, %v2103_v47  ;;  %v3423_v59 = vld [vmem:[%s5723_s6 + $0x68] sm:$0xff] }
 0x341   : > { %2892 = vmatpush.bf16.msra.mxu1 %v3423_v59 }
 0x342   : > { %v5346_v43 = vmax.f32 %v2186_v35, 0.0  ;;  %2336 = vrot.lane.b32.xlu1 %v5340_v28, %s5766_s18 }
 0x344   : > { %2338 = vrot.lane.b32.xlu0 %v5346_v43, %s5766_s18  ;;  %2282 = vrot.lane.b32.xlu2 %v5346_v43, %s5768_s20 }
 0x34a   : > { %2314 = vrot.lane.b32.xlu1 %v5346_v43, %s5767_s28 }
 0x34c   : > { %v2225_v27 = vpop.f32.mrf.mxu1  ;;  %2284 = vrot.lane.b32.xlu0 %v5354_v21, %s5768_s20  ;;  %2316 = vrot.lane.b32.xlu2 %v5354_v21, %s5767_s28 }
 0x34d   : > { %v2226_v4 = vadd.f32 %v2225_v27, %v2103_v47 }
 0x34f   : > { %v5362_v12 = vmax.f32 %v2226_v4, 0.0 }
 0x351   : > { %v2265_v22 = vpop.f32.mrf.mxu3 }
 0x352   : > { %v2245_v24 = vpop.f32.mrf.mxu2  ;;  %2340 = vrot.lane.b32.xlu1 %v5354_v21, %s5766_s18  ;;  %v2266_v34 = vadd.f32 %v2265_v22, %v2103_v47  ;;  %v3441_v22 = vld [vmem:[%s5723_s6 + $0xf8] sm:$0xff] }
 0x353   : > { %v2246_v50 = vadd.f32 %v2245_v24, %v2103_v47  ;;  %2916 = vmatpush.bf16.msrb.mxu3 %v3441_v22  ;;  %v3455_v22 = vld [vmem:[%s5723_s6 + $0x168] sm:$0xff] }
 0x354   : > { %2286 = vrot.lane.b32.xlu2 %v5362_v12, %s5768_s20  ;;  %v5378_v11 = vmax.f32 %v2266_v34, 0.0 }
 0x355   : > { %v5368_v41 = vmax.f32 %v2246_v50, 0.0  ;;  %v3422_v50 = vld [vmem:[%s5723_s6 + $0x60] sm:$0xff] }
 0x356   : > { %2893 = vmatpush.bf16.msra.mxu1 %v3422_v50 }
 0x357   : > { %2288 = vrot.lane.b32.xlu0 %v5368_v41, %s5768_s20 }
 0x358   : > { %v2279_v9 = vpop.permute.xlu2 %2278 }
 0x35a   : > { %2318 = vrot.lane.b32.xlu1 %v5362_v12, %s5767_s28 }
 0x35c   : > { %2320 = vrot.lane.b32.xlu2 %v5368_v41, %s5767_s28 }
 0x35f   : > { %2342 = vrot.lane.b32.xlu0 %v5362_v12, %s5766_s18 }
 0x362   : > { %2344 = vrot.lane.b32.xlu1 %v5368_v41, %s5766_s18 }
 0x364   : > { %2290 = vrot.lane.b32.xlu2 %v5378_v11, %s5768_s20 }
 0x367   : > { %2322 = vrot.lane.b32.xlu0 %v5378_v11, %s5767_s28  ;;  %s3407_s28 = sshll.u32 %s3815_s17, 2 }
 0x368   : > { %s3063_s29 = scalar_lea.hbm %s5727_s10, %s3407_s28  ;;  %s3686_s28 = scalar_lea.hbm %s5727_s10, 8 }
 0x369   : > { %s3067_s25 = sshll.u32 %s3063_s29, 4  ;;  %s3068_s25 = int_to_ptr.hbm [resolvable:$true] %s3067_s25 }
 0x36a   : > { %2346 = vrot.lane.b32.xlu1 %v5378_v11, %s5766_s18  ;;  %s3131_s18 = sshll.u32 %s351_s30, 2  ;;  %s3680_s27 = sshra.s32 %s3068_s25, 4  ;;  %s3681_s27 = int_to_ptr.hbm [resolvable:$true] %s3680_s27 }
 0x36b   : > { %s353_s2 = scalar_lea.vmem [#allocation4], %s3131_s18  ;;  %s3682_s21 = scalar_lea.hbm %s3681_s27, 4 }
 0x36c   : > { %s3065_s11 = sshll.u32 %s353_s2, 4  ;;  %p3683_p11 = scmp.ne.s32.totalorder %s3681_s27, %s3682_s21  ;;  %s3066_s11 = int_to_ptr.vmem [resolvable:$true] %s3065_s11 }
 0x36d   : > { %p3687_p0 = scmp.lt.s32.totalorder %s3681_s27, %s5727_s10  ;;  %p3688_p1 = scmp.lt.s32.totalorder %s3686_s28, %s3682_s21 }
 0x36e   : > { %p3684_p12 = pnand %p3683_p11, %p3832_p5 }
 0x36f   : > { %p3689_p2 = por %p3688_p1, %p3687_p0 }
 0x370   : > { %v2311_v0 = vpop.permute.xlu0 %2310  ;;  %p3685_p13 = pneg %p3684_p12 }
 0x371   : > { %v5388_v2 = vpop.permute.xlu2 %2308 }
 0x372   : > { %v2330_v3 = vsel %vm1040_vm4, %v5388_v2, %v2311_v0  ;;  %p3690_p3 = pnand %p3689_p2, %p3685_p13 }
 0x378   : > { %v2335_v48 = vpop.permute.xlu0 %2334 }
 0x379   : > { %v5390_v40 = vpop.permute.xlu2 %2332 }
 0x37a   : > { %v2354_v61 = vsel %vm1133_vm2, %v5390_v40, %v2335_v48 }
 0x37b   : > { %v2356_v29 = vmax.f32 %v2330_v3, %v2354_v61  ;;  %v3421_v3 = vld [vmem:[%s5723_s6 + $0x58] sm:$0xff]  ;;  %v3432_v61 = vld [vmem:[%s5723_s6 + $0xb0] sm:$0xff] }
 0x37c   : > { %2894 = vmatpush.bf16.msra.mxu1 %v3421_v3  ;;  %v3446_v3 = vld [vmem:[%s5723_s6 + $0x120] sm:$0xff] }
 0x389   : > { %v5398_v32 = vpop.permute.xlu1 %2276 }
 0x38a   : > { %v2298_v60 = vsel %vm854_vm3, %v5398_v32, %v2279_v9 }
 0x38b   : > { %v2300_v57 = vmax.f32 %v2268_v55, %v2298_v60  ;;  %v3440_v60 = vld [vmem:[%s5723_s6 + $0xf0] sm:$0xff] }
 0x38c   : > { %2917 = vmatpush.bf16.msrb.mxu3 %v3440_v60 }
 0x38d   : > { %v2364_v42 = vmax.f32 %v2300_v57, %v2356_v29  ;;  %v3412_v57 = vld [vmem:[%s5723_s6 + $0x10] sm:$0xff] }
 0x38f   : > { %2383 = vst [vmem:[#allocation1] sm:$0xff] %v2364_v42 }
 0x39e   : > { %v2283_v56 = vpop.permute.xlu2 %2282 }
 0x3a4   : > { %v2281_v17 = vpop.permute.xlu1 %2280 }
 0x3a5   : > { %v2297_v10 = vsel %vm854_vm3, %v2279_v9, %v2281_v17  ;;  %v2296_v20 = vsel %vm854_vm3, %v2281_v17, %v2283_v56  ;;  %v3431_v17 = vld [vmem:[%s5723_s6 + $0xa8] sm:$0xff] }
 0x3a6   : > { %v2301_v36 = vmax.f32 %v5329_v33, %v2297_v10  ;;  %v5410_v44 = vpop.permute.xlu2 %2316  ;;  %v2302_v35 = vmax.f32 %v5340_v28, %v2296_v20  ;;  %v3433_v28 = vld [vmem:[%s5723_s6 + $0xb8] sm:$0xff]  ;;  %v3439_v10 = vld [vmem:[%s5723_s6 + $0xe8] sm:$0xff] }
 0x3a7   : > { %2903 = vmatpush.bf16.msra.mxu2 %v3433_v28  ;;  %2918 = vmatpush.bf16.msrb.mxu3 %v3439_v10 }
 0x3ab   : > { %2904 = vmatpush.bf16.msra.mxu2 %v3432_v61  ;;  %v3454_v61 = vld [vmem:[%s5723_s6 + $0x160] sm:$0xff] }
 0x3ac   : > { %v2313_v53 = vpop.permute.xlu1 %2312 }
 0x3ad   : > { %v2329_v31 = vsel %vm1040_vm4, %v2311_v0, %v2313_v53 }
 0x3ae   : > { %v5441_v47 = vpop.permute.xlu2 %2286 }
 0x3af   : > { %2905 = vmatpush.bf16.msra.mxu2 %v3431_v17  ;;  %v3452_v17 = vld [vmem:[%s5723_s6 + $0x150] sm:$0xff] }
 0x3b4   : > { %v2337_v37 = vpop.permute.xlu1 %2336 }
 0x3b5   : > { %v2353_v51 = vsel %vm1133_vm2, %v2335_v48, %v2337_v37  ;;  %v3413_v48 = vld [vmem:[%s5723_s6 + $0x18] sm:$0xff] }
 0x3b6   : > { %v2357_v7 = vmax.f32 %v2329_v31, %v2353_v51  ;;  %v2339_v25 = vpop.permute.xlu0 %2338  ;;  %v2321_v0 = vpop.permute.xlu2 %2320  ;;  %v3411_v51 = vld [vmem:[%s5723_s6 + $0x8] sm:$0xff] }
 0x3b7   : > { %v2352_v45 = vsel %vm1133_vm2, %v2337_v37, %v2339_v25 }
 0x3b8   : > { %v2365_v8 = vmax.f32 %v2301_v36, %v2357_v7  ;;  %v3419_v36 = vld [vmem:[%s5723_s6 + $0x48] sm:$0xff] }
 0x3ba   : > { %v2374_v54 = vrot.slane %v2365_v8, 7  ;;  %2384 = vst [vmem:[#allocation1 + $0x9] sm:$0xff] %v2365_v8 }
 0x3bc   : > { %v2315_v46 = vpop.permute.xlu1 %2314  ;;  %v2376_v58 = vsel %vm2375_vm11, %v2364_v42, %v2374_v54  ;;  %v3438_v54 = vld [vmem:[%s5723_s6 + $0xe0] sm:$0xff] }
 0x3bd   : > { %2382 = vst.msk [vmem:[#allocation3] ss:$4 sm:$0x3] %vm5419_vm12, %v2376_v58  ;;  %v2328_v18 = vsel %vm1040_vm4, %v2313_v53, %v2315_v46  ;;  %v2327_v33 = vsel %vm1040_vm4, %v2315_v46, %v5410_v44  ;;  %2919 = vmatpush.bf16.msrb.mxu3 %v3438_v54 }
 0x3be   : > { %v5432_v30 = vpop.permute.xlu0 %2284  ;;  %v2358_v15 = vmax.f32 %v2328_v18, %v2352_v45  ;;  %v2291_v26 = vpop.permute.xlu2 %2290  ;;  %v3429_v18 = vld [vmem:[%s5723_s6 + $0x98] sm:$0xff] }
 0x3bf   : > { %v2295_v52 = vsel %vm854_vm3, %v2283_v56, %v5432_v30  ;;  %v2294_v62 = vsel %vm854_vm3, %v5432_v30, %v5441_v47  ;;  %v3410_v30 = vld [vmem:[%s5723_s6] sm:$0xff]  ;;  %v2299_v45 = vsel %vm854_vm3, %v2291_v26, %v5398_v32 }
 0x3c0   : > { %v2303_v55 = vmax.f32 %v5346_v43, %v2295_v52  ;;  %v2366_v38 = vmax.f32 %v2302_v35, %v2358_v15  ;;  %v3414_v43 = vld [vmem:[%s5723_s6 + $0x20] sm:$0xff]  ;;  %v3437_v52 = vld [vmem:[%s5723_s6 + $0xd8] sm:$0xff]  ;;  %v3428_v35 = vld [vmem:[%s5723_s6 + $0x90] sm:$0xff] }
 0x3c1   : > { %v2386_v5 = vld [vmem:[#allocation1 + $0x1] ss:$9 sm:$0xff]  ;;  %2880 = vmatpush.bf16.msrb.mxu0 %v3414_v43  ;;  %2920 = vmatpush.bf16.msrb.mxu3 %v3437_v52 }
 0x3c2   : > { %2390 = vst [vmem:[#allocation1] sm:$0xff] %v2364_v42  ;;  %v3420_v42 = vld [vmem:[%s5723_s6 + $0x50] sm:$0xff]  ;;  %v3435_v43 = vld [vmem:[%s5723_s6 + $0xc8] sm:$0xff]  ;;  %v3462_v52 = vld [vmem:[%s5725_s8 + $0x20] sm:$0xff] }
 0x3c3   : > { %2391 = vst [vmem:[#allocation1 + $0x9] sm:$0xff] %v2365_v8  ;;  %2895 = vmatpush.bf16.msra.mxu1 %v3420_v42  ;;  %v3430_v8 = vld [vmem:[%s5723_s6 + $0xa0] sm:$0xff]  ;;  %v3444_v42 = vld [vmem:[%s5723_s6 + $0x110] sm:$0xff] }
 0x3c4   : > { %v2341_v6 = vpop.permute.xlu1 %2340  ;;  %2389 = vst.msk [vmem:[#allocation3 + $0x8] ss:$4 sm:$0x3] %vm5419_vm12, %v2386_v5  ;;  %2906 = vmatpush.bf16.msra.mxu2 %v3430_v8 }
 0x3c5   : > { %v2351_v23 = vsel %vm1133_vm2, %v2339_v25, %v2341_v6  ;;  %2881 = vmatpush.bf16.msrb.mxu0 %v3413_v48  ;;  %v3434_v48 = vld [vmem:[%s5723_s6 + $0xc0] sm:$0xff] }
 0x3c6   : > { %v2359_v39 = vmax.f32 %v2327_v33, %v2351_v23 }
 0x3c7   : > { %2896 = vmatpush.bf16.msra.mxu1 %v3419_v36  ;;  %v3464_v36 = vld [vmem:[%s5725_s8 + $0x30] sm:$0xff] }
 0x3c8   : > { %v2367_v49 = vmax.f32 %v2303_v55, %v2359_v39  ;;  %2907 = vmatpush.bf16.msra.mxu2 %v3429_v18  ;;  %v3463_v18 = vld [vmem:[%s5725_s8 + $0x28] sm:$0xff] }
 0x3c9   : > { %v5460_v27 = vpop.permute.xlu0 %2288  ;;  %2882 = vmatpush.bf16.msrb.mxu0 %v3412_v57  ;;  %v3453_v57 = vld [vmem:[%s5723_s6 + $0x158] sm:$0xff] }
 0x3ca   : > { %v2393_v4 = vld [vmem:[#allocation1 + $0x2] ss:$9 sm:$0xff]  ;;  %v2399_v24 = vrot.slane %v2367_v49, 7  ;;  %v2293_v53 = vsel %vm854_vm3, %v5441_v47, %v5460_v27  ;;  %v2292_v33 = vsel %vm854_vm3, %v5460_v27, %v2291_v26 }
 0x3cb   : > { %2404 = vst [vmem:[#allocation1] sm:$0xff] %v2366_v38  ;;  %v2305_v1 = vmax.f32 %v5362_v12, %v2293_v53  ;;  %v3418_v12 = vld [vmem:[%s5723_s6 + $0x40] sm:$0xff]  ;;  %v3449_v47 = vld [vmem:[%s5723_s6 + $0x138] sm:$0xff]  ;;  %v3443_v53 = vld [vmem:[%s5723_s6 + $0x108] sm:$0xff] }
 0x3cc   : > { %2405 = vst [vmem:[#allocation1 + $0x9] sm:$0xff] %v2367_v49  ;;  %v2319_v34 = vpop.permute.xlu1 %2318  ;;  %v2400_v9 = vsel %vm2375_vm11, %v2366_v38, %v2399_v24  ;;  %2897 = vmatpush.bf16.msra.mxu1 %v3418_v12  ;;  %2908 = vmatpush.bf16.msra.mxu2 %v3428_v35  ;;  %v3427_v24 = vld [vmem:[%s5723_s6 + $0x88] sm:$0xff] }
 0x3cd   : > { %2396 = vst.msk [vmem:[#allocation3 + $0x10] ss:$4 sm:$0x3] %vm5419_vm12, %v2393_v4  ;;  %v2325_v7 = vsel %vm1040_vm4, %v2319_v34, %v2321_v0  ;;  %v2326_v63 = vsel %vm1040_vm4, %v5410_v44, %v2319_v34  ;;  %2883 = vmatpush.bf16.msrb.mxu0 %v3411_v51  ;;  %v2304_v44 = vmax.f32 %v5354_v21, %v2294_v62  ;;  %v3457_v21 = vld [vmem:[%s5723_s6 + $0x178] sm:$0xff] }
 0x3ce   : > { %2403 = vst.msk [vmem:[#allocation3 + $0x1] ss:$4 sm:$0x3] %vm5419_vm12, %v2400_v9  ;;  %v2306_v4 = vmax.f32 %v5368_v41, %v2292_v33  ;;  %v3447_v41 = vld [vmem:[%s5723_s6 + $0x128] sm:$0xff]  ;;  %v3426_v9 = vld [vmem:[%s5723_s6 + $0x80] sm:$0xff]  ;;  %v3465_v51 = vld [vmem:[%s5725_s8 + $0x38] sm:$0xff] }
 0x3cf   : > { %v3660_v33 = vld [vmem:[%s5724_s7] ss:$0 sm:$0xff] }
 0x3d0   : > { %2942 = vmatpush.bf16.msrb.mxu1 %v3457_v21  ;;  %2909 = vmatpush.bf16.msra.mxu2 %v3427_v24  ;;  %v3459_v21 = vld [vmem:[%s5725_s8 + $0x8] sm:$0xff] }
 0x3d1   : > { %v2343_v29 = vpop.permute.xlu0 %2342  ;;  %2884 = vmatpush.bf16.msrb.mxu0 %v3410_v30 }
 0x3d2   : > { %v2350_v37 = vsel %vm1133_vm2, %v2341_v6, %v2343_v29 }
 0x3d3   : > { %v2407_v56 = vld [vmem:[#allocation1 + $0x1] ss:$9 sm:$0xff]  ;;  %v2360_v58 = vmax.f32 %v2326_v63, %v2350_v37 }
 0x3d4   : > { %2411 = vst [vmem:[#allocation1] sm:$0xff] %v2366_v38  ;;  %v2345_v31 = vpop.permute.xlu1 %2344  ;;  %2910 = vmatpush.bf16.msra.mxu2 %v3426_v9  ;;  %v3442_v37 = vld [vmem:[%s5723_s6 + $0x100] sm:$0xff] }
 0x3d5   : > { %2412 = vst [vmem:[#allocation1 + $0x9] sm:$0xff] %v2367_v49  ;;  %v2349_v25 = vsel %vm1133_vm2, %v2343_v29, %v2345_v31  ;;  %v2368_v6 = vmax.f32 %v2304_v44, %v2360_v58  ;;  %v2307_v49 = vmax.f32 %v5378_v11, %v2299_v45  ;;  %2929 = vmatpush.bf16.msra.mxu0 %v3449_v47  ;;  %v3445_v29 = vld [vmem:[%s5723_s6 + $0x118] sm:$0xff]  ;;  %v3460_v47 = vld [vmem:[%s5725_s8 + $0x10] sm:$0xff]  ;;  %v3458_v45 = vld [vmem:[%s5725_s8] sm:$0xff] }
 0x3d6   : > { %v2361_v46 = vmax.f32 %v2325_v7, %v2349_v25  ;;  %2410 = vst.msk [vmem:[#allocation3 + $0x9] ss:$4 sm:$0x3] %vm5419_vm12, %v2407_v56  ;;  %v3451_v56 = vld [vmem:[%s5723_s6 + $0x148] sm:$0xff] }
 0x3d8   : > { %v5535_v14 = vmax.f32 %v2305_v1, %v2361_v46  ;;  %3025 = vmatpush.bf16.msrb.mxu2 %v3465_v51 }
 0x3d9   : > { %v2323_v5 = vpop.permute.xlu0 %2322  ;;  %2930 = vmatpush.bf16.msra.mxu0 %v3448_v13 }
 0x3da   : > { %v2420_v20 = vrot.slane %v5535_v14, 7  ;;  %v2324_v23 = vsel %vm1040_vm4, %v2321_v0, %v2323_v5  ;;  %v2331_v55 = vsel %vm1040_vm4, %v2323_v5, %v5388_v2  ;;  %v3436_v2 = vld [vmem:[%s5723_s6 + $0xd0] sm:$0xff] }
 0x3db   : > { %2921 = vmatpush.bf16.msrb.mxu3 %v3436_v2 }
 0x3dc   : > { %v2414_v15 = vld [vmem:[#allocation1 + $0x2] ss:$9 sm:$0xff]  ;;  %v2347_v39 = vpop.permute.xlu1 %2346  ;;  %v2421_v19 = vsel %vm2375_vm11, %v2368_v6, %v2420_v20  ;;  %3026 = vmatpush.bf16.msrb.mxu2 %v3464_v36 }
 0x3dd   : > { %2425 = vst [vmem:[#allocation1] sm:$0xff] %v2368_v6  ;;  %v2348_v32 = vsel %vm1133_vm2, %v2345_v31, %v2347_v39  ;;  %v2355_v59 = vsel %vm1133_vm2, %v2347_v39, %v5390_v40  ;;  %v3456_v40 = vld [vmem:[%s5723_s6 + $0x170] sm:$0xff]  ;;  %2931 = vmatpush.bf16.msra.mxu0 %v3447_v41  ;;  %v3450_v31 = vld [vmem:[%s5723_s6 + $0x140] sm:$0xff]  ;;  %v3461_v20 = vld [vmem:[%s5725_s8 + $0x18] sm:$0xff] }
 0x3de   : > { %2426 = vst [vmem:[#allocation1 + $0x9] sm:$0xff] %v5535_v14  ;;  %v2362_v38 = vmax.f32 %v2324_v23, %v2348_v32  ;;  %v2363_v27 = vmax.f32 %v2331_v55, %v2355_v59  ;;  %2943 = vmatpush.bf16.msrb.mxu1 %v3456_v40 }
 0x3df   : > { %2417 = vst.msk [vmem:[#allocation3 + $0x11] ss:$4 sm:$0x3] %vm5419_vm12, %v2414_v15  ;;  %2922 = vmatpush.bf16.msrb.mxu3 %v3435_v43 }
 0x3e0   : > { %2424 = vst.msk [vmem:[#allocation3 + $0x2] ss:$4 sm:$0x3] %vm5419_vm12, %v2421_v19  ;;  %v2371_v11 = vmax.f32 %v2307_v49, %v2363_v27  ;;  %v2370_v50 = vmax.f32 %v2306_v4, %v2362_v38  ;;  %3027 = vmatpush.bf16.msrb.mxu2 %v3463_v18 }
 0x3e1   : > { %2932 = vmatpush.bf16.msra.mxu0 %v3446_v3 }
 0x3e2   : > { %v2441_v28 = vrot.slane %v2371_v11, 7  ;;  %2944 = vmatpush.bf16.msrb.mxu1 %v3455_v22 }
 0x3e3   : > { %2923 = vmatpush.bf16.msrb.mxu3 %v3434_v48 }
 0x3e4   : > { %v2442_v34 = vsel %vm2375_vm11, %v2370_v50, %v2441_v28  ;;  %3028 = vmatpush.bf16.msrb.mxu2 %v3462_v52  ;;  %v3661_v28 = vld [vmem:[%s5726_s9] ss:$0 sm:$0xff] }
 0x3e5   : > { %v2428_v0 = vld [vmem:[#allocation1 + $0x1] ss:$9 sm:$0xff]  ;;  %2445 = vst.msk [vmem:[#allocation3 + $0x3] ss:$4 sm:$0x3] %vm5419_vm12, %v2442_v34  ;;  %2933 = vmatpush.bf16.msra.mxu0 %v3445_v29 }
 0x3e6   : > { %2431 = vst.msk [vmem:[#allocation3 + $0xa] ss:$4 sm:$0x3] %vm5419_vm12, %v2428_v0  ;;  %2945 = vmatpush.bf16.msrb.mxu1 %v3454_v61 }
 0x3e7   : > { %2432 = vst [vmem:[#allocation1] sm:$0xff] %v2368_v6 }
 0x3e8   : > { %2433 = vst [vmem:[#allocation1 + $0x9] sm:$0xff] %v5535_v14  ;;  %3029 = vmatpush.bf16.msrb.mxu2 %v3461_v20 }
 0x3e9   : > { %2934 = vmatpush.bf16.msra.mxu0 %v3444_v42 }
 0x3ea   : > { %2946 = vmatpush.bf16.msrb.mxu1 %v3453_v57 }
 0x3ec   : > { %v2460_v8 = vld [vmem:[#allocation3] sm:$0xff]  ;;  %3030 = vmatpush.bf16.msrb.mxu2 %v3460_v47 }
 0x3ed   : > { %2935 = vmatpush.bf16.msra.mxu0 %v3443_v53 }
 0x3ee   : > { %2947 = vmatpush.bf16.msrb.mxu1 %v3452_v17 }
 0x3ef   : > { %v2435_v60 = vld [vmem:[#allocation1 + $0x2] ss:$9 sm:$0xff] }
 0x3f0   : > { %2438 = vst.msk [vmem:[#allocation3 + $0x12] ss:$4 sm:$0x3] %vm5419_vm12, %v2435_v60  ;;  %3031 = vmatpush.bf16.msrb.mxu2 %v3459_v21 }
 0x3f1   : > { %2446 = vst [vmem:[#allocation1] sm:$0xff] %v2370_v50  ;;  %2936 = vmatpush.bf16.msra.mxu0 %v3442_v37 }
 0x3f2   : > { %2447 = vst [vmem:[#allocation1 + $0x9] sm:$0xff] %v2371_v11  ;;  %2948 = vmatpush.bf16.msrb.mxu1 %v3451_v56 }
 0x3f4   : > { %3032 = vmatpush.bf16.msrb.mxu2 %v3458_v45 }
 0x3f6   : > { %2949 = vmatpush.bf16.msrb.mxu1 %v3450_v31 }
 0x3f9   : > { %v2449_v10 = vld [vmem:[#allocation1 + $0x1] ss:$9 sm:$0xff] }
 0x3fa   : > { %2452 = vst.msk [vmem:[#allocation3 + $0xb] ss:$4 sm:$0x3] %vm5419_vm12, %v2449_v10 }
 0x3fb   : > { %2453 = vst [vmem:[#allocation1] sm:$0xff] %v2370_v50 }
 0x3fc   : > { %2454 = vst [vmem:[#allocation1 + $0x9] sm:$0xff] %v2371_v11 }
 0x401   : > { %v2461_v25 = vld [vmem:[#allocation3 + $0x8] sm:$0xff] }
 0x403   : > { %v2456_v7 = vld [vmem:[#allocation1 + $0x2] ss:$9 sm:$0xff] }
 0x404   : > { %2459 = vst.msk [vmem:[#allocation3 + $0x13] ss:$4 sm:$0x3] %vm5419_vm12, %v2456_v7 }
 0x405   : > { %2466 = vst [vmem:[#allocation1] ss:$2 sm:$0xff] %v2460_v8 }
 0x406   : > { %2468 = vst [vmem:[#allocation1 + $0x10] ss:$2 sm:$0xff] %v2461_v25 }
 0x40b   : > { %v2462_v54 = vld [vmem:[#allocation3 + $0x10] sm:$0xff] }
 0x40c   : > { %v2471_v62 = vld.sshfl [vmem:[#allocation1] sm:$0xff pattern:$0x75316420]  ;;  %2470 = vst [vmem:[#allocation1 + $0x20] ss:$2 sm:$0xff] %v2462_v54 }
 0x40d   : > { %v2483_v1 = vpack.c.bf16 %v2471_v62, %v2471_v62  ;;  %v2472_v63 = vld.sshfl [vmem:[#allocation1 + $0x8] sm:$0xff pattern:$0x75316420]  ;;  %v2473_v46 = vld.sshfl [vmem:[#allocation1 + $0x10] sm:$0xff pattern:$0x75316420] }
 0x40e   : > { %v2484_v58 = vpack.c.bf16 %v2472_v63, %v2472_v63  ;;  %v2485_v26 = vpack.c.bf16 %v2473_v46, %v2473_v46  ;;  %v2474_v14 = vld.sshfl [vmem:[#allocation1 + $0x18] sm:$0xff pattern:$0x75316420] }
 0x40f   : > { %2885 = vmatmul.bf16.vlgmr.msrb.gmra.mxu0 %v2483_v1  ;;  %v2486_v30 = vpack.c.bf16 %v2474_v14, %v2474_v14 }
 0x410   : > { %2898 = vmatmul.bf16.vlgmr.msra.gmra.mxu1 %v2484_v58  ;;  %2911 = vmatmul.bf16.vlgmr.msra.gmra.mxu2 %v2485_v26 }
 0x411   : > { %2924 = vmatmul.bf16.vlgmr.msrb.gmra.mxu3 %v2486_v30 }
 0x413   : > { %v2475_v12 = vld.sshfl [vmem:[#allocation1 + $0x20] sm:$0xff pattern:$0x75316420]  ;;  %v2476_v16 = vld.sshfl [vmem:[#allocation1 + $0x28] sm:$0xff pattern:$0x75316420] }
 0x414   : > { %v2487_v44 = vpack.c.bf16 %v2475_v12, %v2475_v12  ;;  %v2488_v5 = vpack.c.bf16 %v2476_v16, %v2476_v16 }
 0x41f   : > { %2937 = vmatmul.bf16.vlgmr.msra.gmra.mxu0 %v2487_v44 }
 0x420   : > { %2950 = vmatmul.bf16.vlgmr.msrb.gmra.mxu1 %v2488_v5 }
 0x48c   : > { %v2886_v6 = vpop.f32.mrf.mxu0 }
 0x48d   : > { %v2899_v15 = vpop.f32.mrf.mxu1  ;;  %v2887_v23 = vadd.f32 %v3660_v33, %v2886_v6 }
 0x48f   : > { %v2900_v32 = vadd.f32 %v2899_v15, %v2887_v23 }
 0x493   : > { %v2912_v55 = vpop.f32.mrf.mxu2 }
 0x494   : > { %v2925_v39 = vpop.f32.mrf.mxu3  ;;  %v2888_v19 = vpop.f32.mrf.mxu0  ;;  %v2913_v35 = vadd.f32 %v2912_v55, %v2900_v32 }
 0x495   : > { %v2901_v59 = vpop.f32.mrf.mxu1 }
 0x496   : > { %v2926_v2 = vadd.f32 %v2925_v39, %v2913_v35 }
 0x49b   : > { %v2914_v49 = vpop.f32.mrf.mxu2 }
 0x49c   : > { %v2927_v38 = vpop.f32.mrf.mxu3  ;;  %v2938_v27 = vpop.f32.mrf.mxu0 }
 0x49d   : > { %v2939_v13 = vadd.f32 %v2938_v27, %v2926_v2  ;;  %v2951_v40 = vpop.f32.mrf.mxu1 }
 0x49f   : > { %v2952_v4 = vadd.f32 %v2951_v40, %v2939_v13 }
 0x4a1   : > { %v2955_v11 = vmax.f32 %v2952_v4, 0.0 }
 0x4a3   : > { %v2956_v24 = vpack.c.bf16 %v2955_v11, %v2955_v11 }
 0x4a4   : > { %v2940_v43 = vpop.f32.mrf.mxu0 }
 0x4a5   : > { %v2953_v50 = vpop.f32.mrf.mxu1  ;;  %3033 = vmatmul.bf16.vlgmr.msrb.gmra.mxu2 %v2956_v24 }
 0x528   : > { %v3034_v41 = vpop.f32.mrf.mxu2 }
 0x529   : > { %v3035_v22 = vadd.f32 %v3661_v28, %v3034_v41 }
 0x52b   : > { %v3038_v34 = vsel %vm759_vm0, %v3035_v22, -inf }
 0x52c   : > { %3039 = vmax.xlane.f32.xlu2 %v3038_v34 }
 0x530   : > { %v3036_v9 = vpop.f32.mrf.mxu2 }
 0x59f   : > { %v3040_v0 = vpop.xlane.xlu2 %3039 }
 0x5a0   : > { %v3041_v48 = vsub.f32 %v3035_v22, %v3040_v0 }
 0x5a2   : > { %v3042_v3 = vmul.f32 1.442695, %v3041_v48 }
 0x5a4   : > { %3662 = vpow2.f32 %v3042_v3 }
 0x5aa   : > { %v3663_v61 = vpop.eup %3662 }
 0x5ab   : > { %v3044_v60 = vsel %vm759_vm0, %v3663_v61, 0.0 }
 0x5ac   : > { %3045 = vadd.xlane.f32.xlu0 %v3044_v60 }
 0x61f   : > { %v3046_v29 = vpop.xlane.xlu0 %3045 }
 0x620   : > { %3664 = vlog2.f32 %v3046_v29 }
 0x626   : > { %v3665_v57 = vpop.eup %3664 }
 0x627   : > { %v3048_v42 = vmul.f32 0.6931472, %v3665_v57 }
 0x629   : > { %v3049_v17 = vadd.f32 %v3048_v42, %v3040_v0 }
 0x62b   : > { %v3050_v53 = vsub.f32 %v3035_v22, %v3049_v17 }
 0x62d   : > { %3051 = vst [vmem:[%s353_s2] sm:$0xf] %v3050_v53 }
 0x62e   : > { %3693 = shalt.err (!%p3690_p3)
}
 0x62f   : > { %3610 = dma.vmem_to_hbm [thread:$0]  (%p3832_p5), %s3066_s11, 64, %s3068_s25, %s3053_s26  }
 0x630 PF: > { %p3616_p4 = scmp.ge.s32.totalorder %s3728_s16, 2  ;;  %s3079_s30 = sand.u32 1, %s3716_s13  }
 0x631   : > { %s3080_s0 = scalar_lea.sflag [#allocation5], %s3079_s30 }
 0x632   : > { %p3613_p7 = pnand %p3616_p4, %p3836_p6 }
 0x634   : > { %p3614_p8 = pneg %p3613_p7 }
 0x636   : > { %3711 = dma.done.wait (%p3614_p8), %s3080_s0, 64  }
 0x637   : > { %3713 = vsyncadd (%p3614_p8), %s3080_s0, 4294967232  ;;  %p20_p9 = scmp.ge.s32.totalorder %s3819_s19, 4   ;;  %s5788_s13 = smov %s3720_s14 }
 0x638   : > { %s5789_s14 = smov %s3724_s15  ;;  %s5790_s15 = smov %s3830_s22 }
 0x639   : > { %s5791_s16 = smov %s3819_s19  ;;  %22 = sbr.rel (!%p20_p9) target bundleno = 6 (0x6), region = 151 }
 0x63e   :  { %3086 = vsyncpa [#allocation5], 1 }
 0x63f   :  { %3088 = vsyncpa [#allocation5 + $0x1], 1 }

</bundles_post_ra>
